<compile_context>
chip_gen: v7x
topology: tpu7x:2x2x1
jax: 0.10.0
libtpu: 0.0.40
codegen_flags: <defaults>
</compile_context>

<pallas_src>
import functools

import jax
import jax.numpy as jnp
from jax.experimental import pallas as pl
from jax.experimental.pallas import tpu as pltpu

LANES = 256        # full MXU width on v6e/v7x; neutral on v5e (two passes)
BLOCK_ROWS = 2048  # 2048 x 256 x 4 B = 2 MiB per int32 input block


def _cdiv(a, b):
    return -(-a // b)


def _round_up(x, m):
    return _cdiv(x, m) * m


def _miou_counts_kernel(preds_ref, targets_ref, out_ref, acc_i, acc_tot, *, nb_class):
    """Accumulates per-class (intersection, |pred|+|target|) counts for one split."""
    step = pl.program_id(1)

    # Zero the per-class accumulators on the first tile of this split.
    @pl.when(step == 0)
    def _init():
        acc_i[...] = jnp.zeros_like(acc_i)
        acc_tot[...] = jnp.zeros_like(acc_tot)

    p = preds_ref[...]                      # (block_rows, LANES) int32 labels
    t = targets_ref[...]
    block_rows = p.shape[0]

    # Row reduction offloaded to the MXU: ones(8, R) @ mask(R, LANES) puts the
    # per-lane column sum into every one of the 8 output sublanes (undone by
    # * 0.125 in the finalize).  Hoisted out of the class loop (no CSE of
    # broadcasts in JAX).  bf16 operands, f32 accumulation -> exact counts.
    ones8 = jnp.ones((8, block_rows), jnp.bfloat16)

    for cls in range(nb_class):             # nb_class is static -> unrolled
        pm = (p == cls).astype(jnp.bfloat16)            # 0/1, exact in bf16
        tm = (t == cls).astype(jnp.bfloat16)
        acc_tot[cls] = acc_tot[cls] + jnp.dot(
            ones8, pm + tm, preferred_element_type=jnp.float32)
        acc_i[cls] = acc_i[cls] + jnp.dot(
            ones8, pm * tm, preferred_element_type=jnp.float32)

    # Finalize this split: one small cross-lane reduce per accumulator, then
    # write per-class partial counts (the scalar IoU epilogue runs in JAX).
    @pl.when(step == pl.num_programs(1) - 1)
    def _finalize():
        def count(acc):
            # (C, 8, LANES) -> (C, 1). The 8 sublanes hold identical column
            # sums, hence * 0.125.  Exact while per-lane counts stay < 2^24
            # (~4e9 total elements) - plenty for segmentation workloads.
            return jnp.sum(jnp.sum(acc[...], axis=2), axis=1, keepdims=True) * 0.125

        out_ref[0, 0] = count(acc_i)        # per-class intersection, (C, 1)
        out_ref[0, 1] = count(acc_tot)      # per-class |pred| + |target|, (C, 1)


def miou_loss(preds, targets, nb_class=20, smooth=1.0):
    """Pallas equivalent of mIoULoss.forward(preds, targets, nb_class, smooth)."""
    assert preds.shape == targets.shape
    nb_class = int(nb_class)
    smooth = float(smooth)

    n = int(preds.size)
    rows = _cdiv(n, LANES)

    # Row tile: multiple of 8 sublanes, capped at BLOCK_ROWS.
    block_rows = min(BLOCK_ROWS, _round_up(rows, 8))
    total_tiles = _cdiv(rows, block_rows)
    # Leading "parallel" axis: splits the tile range across v7x's 2 TensorCores
    # (a harmless size-1/2 sequential axis on single-core v5e/v6e).
    num_splits = 2 if total_tiles >= 2 else 1
    tiles_per_split = _cdiv(total_tiles, num_splits)
    rows_padded = num_splits * tiles_per_split * block_rows
    pad = rows_padded * LANES - n

    def _prep(x):
        # Integer label maps; pad value -1 matches no class, so padded
        # elements contribute nothing to any count (no in-kernel masking).
        x = x.reshape(-1).astype(jnp.int32)
        if pad:
            x = jnp.pad(x, (0, pad), constant_values=-1)
        return x.reshape(rows_padded, LANES)

    p2 = _prep(preds)
    t2 = _prep(targets)

    kernel = functools.partial(_miou_counts_kernel, nb_class=nb_class)

    counts = pl.pallas_call(
        kernel,
        out_shape=jax.ShapeDtypeStruct((num_splits, 2, nb_class, 1), jnp.float32),
        grid=(num_splits, tiles_per_split),
        in_specs=[
            pl.BlockSpec((block_rows, LANES),
                         lambda s, i: (s * tiles_per_split + i, 0)),
            pl.BlockSpec((block_rows, LANES),
                         lambda s, i: (s * tiles_per_split + i, 0)),
        ],
        out_specs=pl.BlockSpec((1, 2, nb_class, 1), lambda s, i: (s, 0, 0, 0)),
        scratch_shapes=[
            pltpu.VMEM((nb_class, 8, LANES), jnp.float32),  # intersection counts
            pltpu.VMEM((nb_class, 8, LANES), jnp.float32),  # pred+target counts
        ],
        compiler_params=pltpu.CompilerParams(
            dimension_semantics=("parallel", "arbitrary"),
            vmem_limit_bytes=48 * 1024 * 1024,
        ),
    )(p2, t2)

    # Tiny O(C) epilogue in plain JAX on the per-split partial counts.
    counts = counts[..., 0]                       # (splits, 2, C)
    inter = jnp.sum(counts[:, 0, :], axis=0)      # (C,)
    total = jnp.sum(counts[:, 1, :], axis=0)      # (C,)
    union = total - inter
    iou = (inter + smooth) / (union + smooth)     # (C,), exact f32 counts
    return 1.0 - jnp.mean(iou)


def _miou_loss_ref(preds, targets, nb_class=20, smooth=1.0):
    # Pure-JAX reference mirroring the PyTorch forward exactly.
    pf = preds.reshape(-1)
    tf = targets.reshape(-1)
    ious = []
    for cls in range(nb_class):
        pm = (pf == cls).astype(jnp.float32)
        tm = (tf == cls).astype(jnp.float32)
        inter = jnp.sum(pm * tm)
        total = jnp.sum(pm + tm)
        union = total - inter
        ious.append((inter + smooth) / (union + smooth))
    return 1.0 - jnp.mean(jnp.stack(ious))


if __name__ == "__main__":
    key = jax.random.PRNGKey(0)
    NB_CLASS = 20
    SMOOTH = 1.0

    # Label-map shapes exercising: aligned single tile, ragged lanes, tiny
    # input, a mid-size single tile, and the multi-tile + core-split path.
    shapes = [(2, 64, 64), (2, 96, 100), (1, 30, 30), (2, 256, 320), (2, 720, 736)]
    for idx, (B, H, W) in enumerate(shapes):
        kp, kt, key = jax.random.split(key, 3)
        preds = jax.random.randint(kp, (B, H, W), 0, NB_CLASS, dtype=jnp.int32)
        targets = jax.random.randint(kt, (B, H, W), 0, NB_CLASS, dtype=jnp.int32)

        loss = miou_loss(preds, targets, nb_class=NB_CLASS, smooth=SMOOTH)
        loss = jax.block_until_ready(loss)

        ref = _miou_loss_ref(preds, targets, nb_class=NB_CLASS, smooth=SMOOTH)
        assert jnp.allclose(loss, ref, rtol=1e-5, atol=1e-5), (idx, loss, ref)

    print("KERNEL_OK")
</pallas_src>

<mosaic_0001>
module attributes {stable_mosaic.version = 11 : i64} {
  func.func @_miou_counts_kernel(%arg0: i32, %arg1: i32, %arg2: memref<32x256xi32, #tpu.memory_space<vmem>>, %arg3: memref<32x256xi32, #tpu.memory_space<vmem>>, %arg4: memref<1x2x20x1xf32, #tpu.memory_space<vmem>>, %arg5: memref<20x8x256xf32, #tpu.memory_space<vmem>>, %arg6: memref<20x8x256xf32, #tpu.memory_space<vmem>>) attributes {dimension_semantics = [#tpu.dimension_semantics<parallel>, #tpu.dimension_semantics<arbitrary>], iteration_bounds = array<i64: 1, 1>, scalar_prefetch = 0 : i64, scratch_operands = 2 : i64, tpu.core_type = #tpu.core_type<tc>, window_params = [{transform_indices = @transform_0, window_bounds = array<i64: 32, 256>}, {transform_indices = @transform_1, window_bounds = array<i64: 32, 256>}, {transform_indices = @transform_2, window_bounds = array<i64: 1, 2, 20, 1>}]} {
    %c0_i32 = arith.constant 0 : i32
    %0 = arith.cmpi eq, %arg1, %c0_i32 : i32
    %1 = arith.extui %0 : i1 to i32
    %c0_i32_0 = arith.constant 0 : i32
    %2 = arith.cmpi ne, %1, %c0_i32_0 : i32
    scf.if %2 {
      %cst_288 = arith.constant 0.000000e+00 : f32
      %529 = vector.broadcast %cst_288 : f32 to vector<20x8x256xf32>
      %c0_289 = arith.constant 0 : index
      %c0_290 = arith.constant 0 : index
      %c0_291 = arith.constant 0 : index
      %530 = vector.load %arg5[%c0_289, %c0_290, %c0_291] : memref<20x8x256xf32, #tpu.memory_space<vmem>>, vector<20x8x256xf32>
      tpu.vector_store %arg5[%c0_289, %c0_290, %c0_291], %529 {strides = array<i32>} : memref<20x8x256xf32, #tpu.memory_space<vmem>>, vector<20x8x256xf32>,
      %cst_292 = arith.constant 0.000000e+00 : f32
      %531 = vector.broadcast %cst_292 : f32 to vector<20x8x256xf32>
      %c0_293 = arith.constant 0 : index
      %c0_294 = arith.constant 0 : index
      %c0_295 = arith.constant 0 : index
      %532 = vector.load %arg6[%c0_293, %c0_294, %c0_295] : memref<20x8x256xf32, #tpu.memory_space<vmem>>, vector<20x8x256xf32>
      tpu.vector_store %arg6[%c0_293, %c0_294, %c0_295], %531 {strides = array<i32>} : memref<20x8x256xf32, #tpu.memory_space<vmem>>, vector<20x8x256xf32>,
    } else {
    }
    %c0 = arith.constant 0 : index
    %c0_1 = arith.constant 0 : index
    %3 = vector.load %arg2[%c0, %c0_1] : memref<32x256xi32, #tpu.memory_space<vmem>>, vector<32x256xi32>
    %c0_2 = arith.constant 0 : index
    %c0_3 = arith.constant 0 : index
    %4 = vector.load %arg3[%c0_2, %c0_3] : memref<32x256xi32, #tpu.memory_space<vmem>>, vector<32x256xi32>
    %cst = arith.constant 1.000000e+00 : bf16
    %5 = vector.broadcast %cst : bf16 to vector<8x32xbf16>
    %c0_i32_4 = arith.constant 0 : i32
    %6 = vector.broadcast %c0_i32_4 : i32 to vector<32x256xi32>
    %7 = arith.cmpi eq, %3, %6 : vector<32x256xi32>
    %8 = arith.extui %7 : vector<32x256xi1> to vector<32x256xi32>
    %9 = arith.sitofp %8 : vector<32x256xi32> to vector<32x256xf32>
    %10 = arith.truncf %9 : vector<32x256xf32> to vector<32x256xbf16>
    %c0_i32_5 = arith.constant 0 : i32
    %11 = vector.broadcast %c0_i32_5 : i32 to vector<32x256xi32>
    %12 = arith.cmpi eq, %4, %11 : vector<32x256xi32>
    %13 = arith.extui %12 : vector<32x256xi1> to vector<32x256xi32>
    %14 = arith.sitofp %13 : vector<32x256xi32> to vector<32x256xf32>
    %15 = arith.truncf %14 : vector<32x256xf32> to vector<32x256xbf16>
    %c0_6 = arith.constant 0 : index
    %c0_7 = arith.constant 0 : index
    %c0_8 = arith.constant 0 : index
    %16 = vector.load %arg6[%c0_6, %c0_7, %c0_8] : memref<20x8x256xf32, #tpu.memory_space<vmem>>, vector<1x8x256xf32>
    %17 = vector.shape_cast %16 : vector<1x8x256xf32> to vector<8x256xf32>
    %18 = arith.addf %10, %15 : vector<32x256xbf16>
    %cst_9 = arith.constant dense<0.000000e+00> : vector<8x256xf32>
    %19 = tpu.matmul %5, %18, %cst_9 {dimension_numbers = #tpu.dot_dimension_numbers<[1], [0], [0], [1], [0, 0, 1, 1], [], []>} : vector<8x32xbf16>, vector<32x256xbf16>, vector<8x256xf32> -> vector<8x256xf32>
    %20 = arith.addf %17, %19 : vector<8x256xf32>
    %c0_10 = arith.constant 0 : index
    %c0_11 = arith.constant 0 : index
    %c0_12 = arith.constant 0 : index
    %21 = vector.load %arg6[%c0_10, %c0_11, %c0_12] : memref<20x8x256xf32, #tpu.memory_space<vmem>>, vector<1x8x256xf32>
    %22 = vector.shape_cast %21 : vector<1x8x256xf32> to vector<8x256xf32>
    %23 = vector.shape_cast %20 : vector<8x256xf32> to vector<1x8x256xf32>
    tpu.vector_store %arg6[%c0_10, %c0_11, %c0_12], %23 {strides = array<i32>} : memref<20x8x256xf32, #tpu.memory_space<vmem>>, vector<1x8x256xf32>,
    %c0_13 = arith.constant 0 : index
    %c0_14 = arith.constant 0 : index
    %c0_15 = arith.constant 0 : index
    %24 = vector.load %arg5[%c0_13, %c0_14, %c0_15] : memref<20x8x256xf32, #tpu.memory_space<vmem>>, vector<1x8x256xf32>
    %25 = vector.shape_cast %24 : vector<1x8x256xf32> to vector<8x256xf32>
    %26 = arith.mulf %10, %15 : vector<32x256xbf16>
    %cst_16 = arith.constant dense<0.000000e+00> : vector<8x256xf32>
    %27 = tpu.matmul %5, %26, %cst_16 {dimension_numbers = #tpu.dot_dimension_numbers<[1], [0], [0], [1], [0, 0, 1, 1], [], []>} : vector<8x32xbf16>, vector<32x256xbf16>, vector<8x256xf32> -> vector<8x256xf32>
    %28 = arith.addf %25, %27 : vector<8x256xf32>
    %c0_17 = arith.constant 0 : index
    %c0_18 = arith.constant 0 : index
    %c0_19 = arith.constant 0 : index
    %29 = vector.load %arg5[%c0_17, %c0_18, %c0_19] : memref<20x8x256xf32, #tpu.memory_space<vmem>>, vector<1x8x256xf32>
    %30 = vector.shape_cast %29 : vector<1x8x256xf32> to vector<8x256xf32>
    %31 = vector.shape_cast %28 : vector<8x256xf32> to vector<1x8x256xf32>
    tpu.vector_store %arg5[%c0_17, %c0_18, %c0_19], %31 {strides = array<i32>} : memref<20x8x256xf32, #tpu.memory_space<vmem>>, vector<1x8x256xf32>,
    %c1_i32 = arith.constant 1 : i32
    %32 = vector.broadcast %c1_i32 : i32 to vector<32x256xi32>
    %33 = arith.cmpi eq, %3, %32 : vector<32x256xi32>
    %34 = arith.extui %33 : vector<32x256xi1> to vector<32x256xi32>
    %35 = arith.sitofp %34 : vector<32x256xi32> to vector<32x256xf32>
    %36 = arith.truncf %35 : vector<32x256xf32> to vector<32x256xbf16>
    %c1_i32_20 = arith.constant 1 : i32
    %37 = vector.broadcast %c1_i32_20 : i32 to vector<32x256xi32>
    %38 = arith.cmpi eq, %4, %37 : vector<32x256xi32>
    %39 = arith.extui %38 : vector<32x256xi1> to vector<32x256xi32>
    %40 = arith.sitofp %39 : vector<32x256xi32> to vector<32x256xf32>
    %41 = arith.truncf %40 : vector<32x256xf32> to vector<32x256xbf16>
    %c1 = arith.constant 1 : index
    %c0_21 = arith.constant 0 : index
    %c0_22 = arith.constant 0 : index
    %42 = vector.load %arg6[%c1, %c0_21, %c0_22] : memref<20x8x256xf32, #tpu.memory_space<vmem>>, vector<1x8x256xf32>
    %43 = vector.shape_cast %42 : vector<1x8x256xf32> to vector<8x256xf32>
    %44 = arith.addf %36, %41 : vector<32x256xbf16>
    %cst_23 = arith.constant dense<0.000000e+00> : vector<8x256xf32>
    %45 = tpu.matmul %5, %44, %cst_23 {dimension_numbers = #tpu.dot_dimension_numbers<[1], [0], [0], [1], [0, 0, 1, 1], [], []>} : vector<8x32xbf16>, vector<32x256xbf16>, vector<8x256xf32> -> vector<8x256xf32>
    %46 = arith.addf %43, %45 : vector<8x256xf32>
    %c1_24 = arith.constant 1 : index
    %c0_25 = arith.constant 0 : index
    %c0_26 = arith.constant 0 : index
    %47 = vector.load %arg6[%c1_24, %c0_25, %c0_26] : memref<20x8x256xf32, #tpu.memory_space<vmem>>, vector<1x8x256xf32>
    %48 = vector.shape_cast %47 : vector<1x8x256xf32> to vector<8x256xf32>
    %49 = vector.shape_cast %46 : vector<8x256xf32> to vector<1x8x256xf32>
    tpu.vector_store %arg6[%c1_24, %c0_25, %c0_26], %49 {strides = array<i32>} : memref<20x8x256xf32, #tpu.memory_space<vmem>>, vector<1x8x256xf32>,
    %c1_27 = arith.constant 1 : index
    %c0_28 = arith.constant 0 : index
    %c0_29 = arith.constant 0 : index
    %50 = vector.load %arg5[%c1_27, %c0_28, %c0_29] : memref<20x8x256xf32, #tpu.memory_space<vmem>>, vector<1x8x256xf32>
    %51 = vector.shape_cast %50 : vector<1x8x256xf32> to vector<8x256xf32>
    %52 = arith.mulf %36, %41 : vector<32x256xbf16>
    %cst_30 = arith.constant dense<0.000000e+00> : vector<8x256xf32>
    %53 = tpu.matmul %5, %52, %cst_30 {dimension_numbers = #tpu.dot_dimension_numbers<[1], [0], [0], [1], [0, 0, 1, 1], [], []>} : vector<8x32xbf16>, vector<32x256xbf16>, vector<8x256xf32> -> vector<8x256xf32>
    %54 = arith.addf %51, %53 : vector<8x256xf32>
    %c1_31 = arith.constant 1 : index
    %c0_32 = arith.constant 0 : index
    %c0_33 = arith.constant 0 : index
    %55 = vector.load %arg5[%c1_31, %c0_32, %c0_33] : memref<20x8x256xf32, #tpu.memory_space<vmem>>, vector<1x8x256xf32>
    %56 = vector.shape_cast %55 : vector<1x8x256xf32> to vector<8x256xf32>
    %57 = vector.shape_cast %54 : vector<8x256xf32> to vector<1x8x256xf32>
    tpu.vector_store %arg5[%c1_31, %c0_32, %c0_33], %57 {strides = array<i32>} : memref<20x8x256xf32, #tpu.memory_space<vmem>>, vector<1x8x256xf32>,
    %c2_i32 = arith.constant 2 : i32
    %58 = vector.broadcast %c2_i32 : i32 to vector<32x256xi32>
    %59 = arith.cmpi eq, %3, %58 : vector<32x256xi32>
    %60 = arith.extui %59 : vector<32x256xi1> to vector<32x256xi32>
    %61 = arith.sitofp %60 : vector<32x256xi32> to vector<32x256xf32>
    %62 = arith.truncf %61 : vector<32x256xf32> to vector<32x256xbf16>
    %c2_i32_34 = arith.constant 2 : i32
    %63 = vector.broadcast %c2_i32_34 : i32 to vector<32x256xi32>
    %64 = arith.cmpi eq, %4, %63 : vector<32x256xi32>
    %65 = arith.extui %64 : vector<32x256xi1> to vector<32x256xi32>
    %66 = arith.sitofp %65 : vector<32x256xi32> to vector<32x256xf32>
    %67 = arith.truncf %66 : vector<32x256xf32> to vector<32x256xbf16>
    %c2 = arith.constant 2 : index
    %c0_35 = arith.constant 0 : index
    %c0_36 = arith.constant 0 : index
    %68 = vector.load %arg6[%c2, %c0_35, %c0_36] : memref<20x8x256xf32, #tpu.memory_space<vmem>>, vector<1x8x256xf32>
    %69 = vector.shape_cast %68 : vector<1x8x256xf32> to vector<8x256xf32>
    %70 = arith.addf %62, %67 : vector<32x256xbf16>
    %cst_37 = arith.constant dense<0.000000e+00> : vector<8x256xf32>
    %71 = tpu.matmul %5, %70, %cst_37 {dimension_numbers = #tpu.dot_dimension_numbers<[1], [0], [0], [1], [0, 0, 1, 1], [], []>} : vector<8x32xbf16>, vector<32x256xbf16>, vector<8x256xf32> -> vector<8x256xf32>
    %72 = arith.addf %69, %71 : vector<8x256xf32>
    %c2_38 = arith.constant 2 : index
    %c0_39 = arith.constant 0 : index
    %c0_40 = arith.constant 0 : index
    %73 = vector.load %arg6[%c2_38, %c0_39, %c0_40] : memref<20x8x256xf32, #tpu.memory_space<vmem>>, vector<1x8x256xf32>
    %74 = vector.shape_cast %73 : vector<1x8x256xf32> to vector<8x256xf32>
    %75 = vector.shape_cast %72 : vector<8x256xf32> to vector<1x8x256xf32>
    tpu.vector_store %arg6[%c2_38, %c0_39, %c0_40], %75 {strides = array<i32>} : memref<20x8x256xf32, #tpu.memory_space<vmem>>, vector<1x8x256xf32>,
    %c2_41 = arith.constant 2 : index
    %c0_42 = arith.constant 0 : index
    %c0_43 = arith.constant 0 : index
    %76 = vector.load %arg5[%c2_41, %c0_42, %c0_43] : memref<20x8x256xf32, #tpu.memory_space<vmem>>, vector<1x8x256xf32>
    %77 = vector.shape_cast %76 : vector<1x8x256xf32> to vector<8x256xf32>
    %78 = arith.mulf %62, %67 : vector<32x256xbf16>
    %cst_44 = arith.constant dense<0.000000e+00> : vector<8x256xf32>
    %79 = tpu.matmul %5, %78, %cst_44 {dimension_numbers = #tpu.dot_dimension_numbers<[1], [0], [0], [1], [0, 0, 1, 1], [], []>} : vector<8x32xbf16>, vector<32x256xbf16>, vector<8x256xf32> -> vector<8x256xf32>
    %80 = arith.addf %77, %79 : vector<8x256xf32>
    %c2_45 = arith.constant 2 : index
    %c0_46 = arith.constant 0 : index
    %c0_47 = arith.constant 0 : index
    %81 = vector.load %arg5[%c2_45, %c0_46, %c0_47] : memref<20x8x256xf32, #tpu.memory_space<vmem>>, vector<1x8x256xf32>
    %82 = vector.shape_cast %81 : vector<1x8x256xf32> to vector<8x256xf32>
    %83 = vector.shape_cast %80 : vector<8x256xf32> to vector<1x8x256xf32>
    tpu.vector_store %arg5[%c2_45, %c0_46, %c0_47], %83 {strides = array<i32>} : memref<20x8x256xf32, #tpu.memory_space<vmem>>, vector<1x8x256xf32>,
    %c3_i32 = arith.constant 3 : i32
    %84 = vector.broadcast %c3_i32 : i32 to vector<32x256xi32>
    %85 = arith.cmpi eq, %3, %84 : vector<32x256xi32>
    %86 = arith.extui %85 : vector<32x256xi1> to vector<32x256xi32>
    %87 = arith.sitofp %86 : vector<32x256xi32> to vector<32x256xf32>
    %88 = arith.truncf %87 : vector<32x256xf32> to vector<32x256xbf16>
    %c3_i32_48 = arith.constant 3 : i32
    %89 = vector.broadcast %c3_i32_48 : i32 to vector<32x256xi32>
    %90 = arith.cmpi eq, %4, %89 : vector<32x256xi32>
    %91 = arith.extui %90 : vector<32x256xi1> to vector<32x256xi32>
    %92 = arith.sitofp %91 : vector<32x256xi32> to vector<32x256xf32>
    %93 = arith.truncf %92 : vector<32x256xf32> to vector<32x256xbf16>
    %c3 = arith.constant 3 : index
    %c0_49 = arith.constant 0 : index
    %c0_50 = arith.constant 0 : index
    %94 = vector.load %arg6[%c3, %c0_49, %c0_50] : memref<20x8x256xf32, #tpu.memory_space<vmem>>, vector<1x8x256xf32>
    %95 = vector.shape_cast %94 : vector<1x8x256xf32> to vector<8x256xf32>
    %96 = arith.addf %88, %93 : vector<32x256xbf16>
    %cst_51 = arith.constant dense<0.000000e+00> : vector<8x256xf32>
    %97 = tpu.matmul %5, %96, %cst_51 {dimension_numbers = #tpu.dot_dimension_numbers<[1], [0], [0], [1], [0, 0, 1, 1], [], []>} : vector<8x32xbf16>, vector<32x256xbf16>, vector<8x256xf32> -> vector<8x256xf32>
    %98 = arith.addf %95, %97 : vector<8x256xf32>
    %c3_52 = arith.constant 3 : index
    %c0_53 = arith.constant 0 : index
    %c0_54 = arith.constant 0 : index
    %99 = vector.load %arg6[%c3_52, %c0_53, %c0_54] : memref<20x8x256xf32, #tpu.memory_space<vmem>>, vector<1x8x256xf32>
    %100 = vector.shape_cast %99 : vector<1x8x256xf32> to vector<8x256xf32>
    %101 = vector.shape_cast %98 : vector<8x256xf32> to vector<1x8x256xf32>
    tpu.vector_store %arg6[%c3_52, %c0_53, %c0_54], %101 {strides = array<i32>} : memref<20x8x256xf32, #tpu.memory_space<vmem>>, vector<1x8x256xf32>,
    %c3_55 = arith.constant 3 : index
    %c0_56 = arith.constant 0 : index
    %c0_57 = arith.constant 0 : index
    %102 = vector.load %arg5[%c3_55, %c0_56, %c0_57] : memref<20x8x256xf32, #tpu.memory_space<vmem>>, vector<1x8x256xf32>
    %103 = vector.shape_cast %102 : vector<1x8x256xf32> to vector<8x256xf32>
    %104 = arith.mulf %88, %93 : vector<32x256xbf16>
    %cst_58 = arith.constant dense<0.000000e+00> : vector<8x256xf32>
    %105 = tpu.matmul %5, %104, %cst_58 {dimension_numbers = #tpu.dot_dimension_numbers<[1], [0], [0], [1], [0, 0, 1, 1], [], []>} : vector<8x32xbf16>, vector<32x256xbf16>, vector<8x256xf32> -> vector<8x256xf32>
    %106 = arith.addf %103, %105 : vector<8x256xf32>
    %c3_59 = arith.constant 3 : index
    %c0_60 = arith.constant 0 : index
    %c0_61 = arith.constant 0 : index
    %107 = vector.load %arg5[%c3_59, %c0_60, %c0_61] : memref<20x8x256xf32, #tpu.memory_space<vmem>>, vector<1x8x256xf32>
    %108 = vector.shape_cast %107 : vector<1x8x256xf32> to vector<8x256xf32>
    %109 = vector.shape_cast %106 : vector<8x256xf32> to vector<1x8x256xf32>
    tpu.vector_store %arg5[%c3_59, %c0_60, %c0_61], %109 {strides = array<i32>} : memref<20x8x256xf32, #tpu.memory_space<vmem>>, vector<1x8x256xf32>,
    %c4_i32 = arith.constant 4 : i32
    %110 = vector.broadcast %c4_i32 : i32 to vector<32x256xi32>
    %111 = arith.cmpi eq, %3, %110 : vector<32x256xi32>
    %112 = arith.extui %111 : vector<32x256xi1> to vector<32x256xi32>
    %113 = arith.sitofp %112 : vector<32x256xi32> to vector<32x256xf32>
    %114 = arith.truncf %113 : vector<32x256xf32> to vector<32x256xbf16>
    %c4_i32_62 = arith.constant 4 : i32
    %115 = vector.broadcast %c4_i32_62 : i32 to vector<32x256xi32>
    %116 = arith.cmpi eq, %4, %115 : vector<32x256xi32>
    %117 = arith.extui %116 : vector<32x256xi1> to vector<32x256xi32>
    %118 = arith.sitofp %117 : vector<32x256xi32> to vector<32x256xf32>
    %119 = arith.truncf %118 : vector<32x256xf32> to vector<32x256xbf16>
    %c4 = arith.constant 4 : index
    %c0_63 = arith.constant 0 : index
    %c0_64 = arith.constant 0 : index
    %120 = vector.load %arg6[%c4, %c0_63, %c0_64] : memref<20x8x256xf32, #tpu.memory_space<vmem>>, vector<1x8x256xf32>
    %121 = vector.shape_cast %120 : vector<1x8x256xf32> to vector<8x256xf32>
    %122 = arith.addf %114, %119 : vector<32x256xbf16>
    %cst_65 = arith.constant dense<0.000000e+00> : vector<8x256xf32>
    %123 = tpu.matmul %5, %122, %cst_65 {dimension_numbers = #tpu.dot_dimension_numbers<[1], [0], [0], [1], [0, 0, 1, 1], [], []>} : vector<8x32xbf16>, vector<32x256xbf16>, vector<8x256xf32> -> vector<8x256xf32>
    %124 = arith.addf %121, %123 : vector<8x256xf32>
    %c4_66 = arith.constant 4 : index
    %c0_67 = arith.constant 0 : index
    %c0_68 = arith.constant 0 : index
    %125 = vector.load %arg6[%c4_66, %c0_67, %c0_68] : memref<20x8x256xf32, #tpu.memory_space<vmem>>, vector<1x8x256xf32>
    %126 = vector.shape_cast %125 : vector<1x8x256xf32> to vector<8x256xf32>
    %127 = vector.shape_cast %124 : vector<8x256xf32> to vector<1x8x256xf32>
    tpu.vector_store %arg6[%c4_66, %c0_67, %c0_68], %127 {strides = array<i32>} : memref<20x8x256xf32, #tpu.memory_space<vmem>>, vector<1x8x256xf32>,
    %c4_69 = arith.constant 4 : index
    %c0_70 = arith.constant 0 : index
    %c0_71 = arith.constant 0 : index
    %128 = vector.load %arg5[%c4_69, %c0_70, %c0_71] : memref<20x8x256xf32, #tpu.memory_space<vmem>>, vector<1x8x256xf32>
    %129 = vector.shape_cast %128 : vector<1x8x256xf32> to vector<8x256xf32>
    %130 = arith.mulf %114, %119 : vector<32x256xbf16>
    %cst_72 = arith.constant dense<0.000000e+00> : vector<8x256xf32>
    %131 = tpu.matmul %5, %130, %cst_72 {dimension_numbers = #tpu.dot_dimension_numbers<[1], [0], [0], [1], [0, 0, 1, 1], [], []>} : vector<8x32xbf16>, vector<32x256xbf16>, vector<8x256xf32> -> vector<8x256xf32>
    %132 = arith.addf %129, %131 : vector<8x256xf32>
    %c4_73 = arith.constant 4 : index
    %c0_74 = arith.constant 0 : index
    %c0_75 = arith.constant 0 : index
    %133 = vector.load %arg5[%c4_73, %c0_74, %c0_75] : memref<20x8x256xf32, #tpu.memory_space<vmem>>, vector<1x8x256xf32>
    %134 = vector.shape_cast %133 : vector<1x8x256xf32> to vector<8x256xf32>
    %135 = vector.shape_cast %132 : vector<8x256xf32> to vector<1x8x256xf32>
    tpu.vector_store %arg5[%c4_73, %c0_74, %c0_75], %135 {strides = array<i32>} : memref<20x8x256xf32, #tpu.memory_space<vmem>>, vector<1x8x256xf32>,
    %c5_i32 = arith.constant 5 : i32
    %136 = vector.broadcast %c5_i32 : i32 to vector<32x256xi32>
    %137 = arith.cmpi eq, %3, %136 : vector<32x256xi32>
    %138 = arith.extui %137 : vector<32x256xi1> to vector<32x256xi32>
    %139 = arith.sitofp %138 : vector<32x256xi32> to vector<32x256xf32>
    %140 = arith.truncf %139 : vector<32x256xf32> to vector<32x256xbf16>
    %c5_i32_76 = arith.constant 5 : i32
    %141 = vector.broadcast %c5_i32_76 : i32 to vector<32x256xi32>
    %142 = arith.cmpi eq, %4, %141 : vector<32x256xi32>
    %143 = arith.extui %142 : vector<32x256xi1> to vector<32x256xi32>
    %144 = arith.sitofp %143 : vector<32x256xi32> to vector<32x256xf32>
    %145 = arith.truncf %144 : vector<32x256xf32> to vector<32x256xbf16>
    %c5 = arith.constant 5 : index
    %c0_77 = arith.constant 0 : index
    %c0_78 = arith.constant 0 : index
    %146 = vector.load %arg6[%c5, %c0_77, %c0_78] : memref<20x8x256xf32, #tpu.memory_space<vmem>>, vector<1x8x256xf32>
    %147 = vector.shape_cast %146 : vector<1x8x256xf32> to vector<8x256xf32>
    %148 = arith.addf %140, %145 : vector<32x256xbf16>
    %cst_79 = arith.constant dense<0.000000e+00> : vector<8x256xf32>
    %149 = tpu.matmul %5, %148, %cst_79 {dimension_numbers = #tpu.dot_dimension_numbers<[1], [0], [0], [1], [0, 0, 1, 1], [], []>} : vector<8x32xbf16>, vector<32x256xbf16>, vector<8x256xf32> -> vector<8x256xf32>
    %150 = arith.addf %147, %149 : vector<8x256xf32>
    %c5_80 = arith.constant 5 : index
    %c0_81 = arith.constant 0 : index
    %c0_82 = arith.constant 0 : index
    %151 = vector.load %arg6[%c5_80, %c0_81, %c0_82] : memref<20x8x256xf32, #tpu.memory_space<vmem>>, vector<1x8x256xf32>
    %152 = vector.shape_cast %151 : vector<1x8x256xf32> to vector<8x256xf32>
    %153 = vector.shape_cast %150 : vector<8x256xf32> to vector<1x8x256xf32>
    tpu.vector_store %arg6[%c5_80, %c0_81, %c0_82], %153 {strides = array<i32>} : memref<20x8x256xf32, #tpu.memory_space<vmem>>, vector<1x8x256xf32>,
    %c5_83 = arith.constant 5 : index
    %c0_84 = arith.constant 0 : index
    %c0_85 = arith.constant 0 : index
    %154 = vector.load %arg5[%c5_83, %c0_84, %c0_85] : memref<20x8x256xf32, #tpu.memory_space<vmem>>, vector<1x8x256xf32>
    %155 = vector.shape_cast %154 : vector<1x8x256xf32> to vector<8x256xf32>
    %156 = arith.mulf %140, %145 : vector<32x256xbf16>
    %cst_86 = arith.constant dense<0.000000e+00> : vector<8x256xf32>
    %157 = tpu.matmul %5, %156, %cst_86 {dimension_numbers = #tpu.dot_dimension_numbers<[1], [0], [0], [1], [0, 0, 1, 1], [], []>} : vector<8x32xbf16>, vector<32x256xbf16>, vector<8x256xf32> -> vector<8x256xf32>
    %158 = arith.addf %155, %157 : vector<8x256xf32>
    %c5_87 = arith.constant 5 : index
    %c0_88 = arith.constant 0 : index
    %c0_89 = arith.constant 0 : index
    %159 = vector.load %arg5[%c5_87, %c0_88, %c0_89] : memref<20x8x256xf32, #tpu.memory_space<vmem>>, vector<1x8x256xf32>
    %160 = vector.shape_cast %159 : vector<1x8x256xf32> to vector<8x256xf32>
    %161 = vector.shape_cast %158 : vector<8x256xf32> to vector<1x8x256xf32>
    tpu.vector_store %arg5[%c5_87, %c0_88, %c0_89], %161 {strides = array<i32>} : memref<20x8x256xf32, #tpu.memory_space<vmem>>, vector<1x8x256xf32>,
    %c6_i32 = arith.constant 6 : i32
    %162 = vector.broadcast %c6_i32 : i32 to vector<32x256xi32>
    %163 = arith.cmpi eq, %3, %162 : vector<32x256xi32>
    %164 = arith.extui %163 : vector<32x256xi1> to vector<32x256xi32>
    %165 = arith.sitofp %164 : vector<32x256xi32> to vector<32x256xf32>
    %166 = arith.truncf %165 : vector<32x256xf32> to vector<32x256xbf16>
    %c6_i32_90 = arith.constant 6 : i32
    %167 = vector.broadcast %c6_i32_90 : i32 to vector<32x256xi32>
    %168 = arith.cmpi eq, %4, %167 : vector<32x256xi32>
    %169 = arith.extui %168 : vector<32x256xi1> to vector<32x256xi32>
    %170 = arith.sitofp %169 : vector<32x256xi32> to vector<32x256xf32>
    %171 = arith.truncf %170 : vector<32x256xf32> to vector<32x256xbf16>
    %c6 = arith.constant 6 : index
    %c0_91 = arith.constant 0 : index
    %c0_92 = arith.constant 0 : index
    %172 = vector.load %arg6[%c6, %c0_91, %c0_92] : memref<20x8x256xf32, #tpu.memory_space<vmem>>, vector<1x8x256xf32>
    %173 = vector.shape_cast %172 : vector<1x8x256xf32> to vector<8x256xf32>
    %174 = arith.addf %166, %171 : vector<32x256xbf16>
    %cst_93 = arith.constant dense<0.000000e+00> : vector<8x256xf32>
    %175 = tpu.matmul %5, %174, %cst_93 {dimension_numbers = #tpu.dot_dimension_numbers<[1], [0], [0], [1], [0, 0, 1, 1], [], []>} : vector<8x32xbf16>, vector<32x256xbf16>, vector<8x256xf32> -> vector<8x256xf32>
    %176 = arith.addf %173, %175 : vector<8x256xf32>
    %c6_94 = arith.constant 6 : index
    %c0_95 = arith.constant 0 : index
    %c0_96 = arith.constant 0 : index
    %177 = vector.load %arg6[%c6_94, %c0_95, %c0_96] : memref<20x8x256xf32, #tpu.memory_space<vmem>>, vector<1x8x256xf32>
    %178 = vector.shape_cast %177 : vector<1x8x256xf32> to vector<8x256xf32>
    %179 = vector.shape_cast %176 : vector<8x256xf32> to vector<1x8x256xf32>
    tpu.vector_store %arg6[%c6_94, %c0_95, %c0_96], %179 {strides = array<i32>} : memref<20x8x256xf32, #tpu.memory_space<vmem>>, vector<1x8x256xf32>,
    %c6_97 = arith.constant 6 : index
    %c0_98 = arith.constant 0 : index
    %c0_99 = arith.constant 0 : index
    %180 = vector.load %arg5[%c6_97, %c0_98, %c0_99] : memref<20x8x256xf32, #tpu.memory_space<vmem>>, vector<1x8x256xf32>
    %181 = vector.shape_cast %180 : vector<1x8x256xf32> to vector<8x256xf32>
    %182 = arith.mulf %166, %171 : vector<32x256xbf16>
    %cst_100 = arith.constant dense<0.000000e+00> : vector<8x256xf32>
    %183 = tpu.matmul %5, %182, %cst_100 {dimension_numbers = #tpu.dot_dimension_numbers<[1], [0], [0], [1], [0, 0, 1, 1], [], []>} : vector<8x32xbf16>, vector<32x256xbf16>, vector<8x256xf32> -> vector<8x256xf32>
    %184 = arith.addf %181, %183 : vector<8x256xf32>
    %c6_101 = arith.constant 6 : index
    %c0_102 = arith.constant 0 : index
    %c0_103 = arith.constant 0 : index
    %185 = vector.load %arg5[%c6_101, %c0_102, %c0_103] : memref<20x8x256xf32, #tpu.memory_space<vmem>>, vector<1x8x256xf32>
    %186 = vector.shape_cast %185 : vector<1x8x256xf32> to vector<8x256xf32>
    %187 = vector.shape_cast %184 : vector<8x256xf32> to vector<1x8x256xf32>
    tpu.vector_store %arg5[%c6_101, %c0_102, %c0_103], %187 {strides = array<i32>} : memref<20x8x256xf32, #tpu.memory_space<vmem>>, vector<1x8x256xf32>,
    %c7_i32 = arith.constant 7 : i32
    %188 = vector.broadcast %c7_i32 : i32 to vector<32x256xi32>
    %189 = arith.cmpi eq, %3, %188 : vector<32x256xi32>
    %190 = arith.extui %189 : vector<32x256xi1> to vector<32x256xi32>
    %191 = arith.sitofp %190 : vector<32x256xi32> to vector<32x256xf32>
    %192 = arith.truncf %191 : vector<32x256xf32> to vector<32x256xbf16>
    %c7_i32_104 = arith.constant 7 : i32
    %193 = vector.broadcast %c7_i32_104 : i32 to vector<32x256xi32>
    %194 = arith.cmpi eq, %4, %193 : vector<32x256xi32>
    %195 = arith.extui %194 : vector<32x256xi1> to vector<32x256xi32>
    %196 = arith.sitofp %195 : vector<32x256xi32> to vector<32x256xf32>
    %197 = arith.truncf %196 : vector<32x256xf32> to vector<32x256xbf16>
    %c7 = arith.constant 7 : index
    %c0_105 = arith.constant 0 : index
    %c0_106 = arith.constant 0 : index
    %198 = vector.load %arg6[%c7, %c0_105, %c0_106] : memref<20x8x256xf32, #tpu.memory_space<vmem>>, vector<1x8x256xf32>
    %199 = vector.shape_cast %198 : vector<1x8x256xf32> to vector<8x256xf32>
    %200 = arith.addf %192, %197 : vector<32x256xbf16>
    %cst_107 = arith.constant dense<0.000000e+00> : vector<8x256xf32>
    %201 = tpu.matmul %5, %200, %cst_107 {dimension_numbers = #tpu.dot_dimension_numbers<[1], [0], [0], [1], [0, 0, 1, 1], [], []>} : vector<8x32xbf16>, vector<32x256xbf16>, vector<8x256xf32> -> vector<8x256xf32>
    %202 = arith.addf %199, %201 : vector<8x256xf32>
    %c7_108 = arith.constant 7 : index
    %c0_109 = arith.constant 0 : index
    %c0_110 = arith.constant 0 : index
    %203 = vector.load %arg6[%c7_108, %c0_109, %c0_110] : memref<20x8x256xf32, #tpu.memory_space<vmem>>, vector<1x8x256xf32>
    %204 = vector.shape_cast %203 : vector<1x8x256xf32> to vector<8x256xf32>
    %205 = vector.shape_cast %202 : vector<8x256xf32> to vector<1x8x256xf32>
    tpu.vector_store %arg6[%c7_108, %c0_109, %c0_110], %205 {strides = array<i32>} : memref<20x8x256xf32, #tpu.memory_space<vmem>>, vector<1x8x256xf32>,
    %c7_111 = arith.constant 7 : index
    %c0_112 = arith.constant 0 : index
    %c0_113 = arith.constant 0 : index
    %206 = vector.load %arg5[%c7_111, %c0_112, %c0_113] : memref<20x8x256xf32, #tpu.memory_space<vmem>>, vector<1x8x256xf32>
    %207 = vector.shape_cast %206 : vector<1x8x256xf32> to vector<8x256xf32>
    %208 = arith.mulf %192, %197 : vector<32x256xbf16>
    %cst_114 = arith.constant dense<0.000000e+00> : vector<8x256xf32>
    %209 = tpu.matmul %5, %208, %cst_114 {dimension_numbers = #tpu.dot_dimension_numbers<[1], [0], [0], [1], [0, 0, 1, 1], [], []>} : vector<8x32xbf16>, vector<32x256xbf16>, vector<8x256xf32> -> vector<8x256xf32>
    %210 = arith.addf %207, %209 : vector<8x256xf32>
    %c7_115 = arith.constant 7 : index
    %c0_116 = arith.constant 0 : index
    %c0_117 = arith.constant 0 : index
    %211 = vector.load %arg5[%c7_115, %c0_116, %c0_117] : memref<20x8x256xf32, #tpu.memory_space<vmem>>, vector<1x8x256xf32>
    %212 = vector.shape_cast %211 : vector<1x8x256xf32> to vector<8x256xf32>
    %213 = vector.shape_cast %210 : vector<8x256xf32> to vector<1x8x256xf32>
    tpu.vector_store %arg5[%c7_115, %c0_116, %c0_117], %213 {strides = array<i32>} : memref<20x8x256xf32, #tpu.memory_space<vmem>>, vector<1x8x256xf32>,
    %c8_i32 = arith.constant 8 : i32
    %214 = vector.broadcast %c8_i32 : i32 to vector<32x256xi32>
    %215 = arith.cmpi eq, %3, %214 : vector<32x256xi32>
    %216 = arith.extui %215 : vector<32x256xi1> to vector<32x256xi32>
    %217 = arith.sitofp %216 : vector<32x256xi32> to vector<32x256xf32>
    %218 = arith.truncf %217 : vector<32x256xf32> to vector<32x256xbf16>
    %c8_i32_118 = arith.constant 8 : i32
    %219 = vector.broadcast %c8_i32_118 : i32 to vector<32x256xi32>
    %220 = arith.cmpi eq, %4, %219 : vector<32x256xi32>
    %221 = arith.extui %220 : vector<32x256xi1> to vector<32x256xi32>
    %222 = arith.sitofp %221 : vector<32x256xi32> to vector<32x256xf32>
    %223 = arith.truncf %222 : vector<32x256xf32> to vector<32x256xbf16>
    %c8 = arith.constant 8 : index
    %c0_119 = arith.constant 0 : index
    %c0_120 = arith.constant 0 : index
    %224 = vector.load %arg6[%c8, %c0_119, %c0_120] : memref<20x8x256xf32, #tpu.memory_space<vmem>>, vector<1x8x256xf32>
    %225 = vector.shape_cast %224 : vector<1x8x256xf32> to vector<8x256xf32>
    %226 = arith.addf %218, %223 : vector<32x256xbf16>
    %cst_121 = arith.constant dense<0.000000e+00> : vector<8x256xf32>
    %227 = tpu.matmul %5, %226, %cst_121 {dimension_numbers = #tpu.dot_dimension_numbers<[1], [0], [0], [1], [0, 0, 1, 1], [], []>} : vector<8x32xbf16>, vector<32x256xbf16>, vector<8x256xf32> -> vector<8x256xf32>
    %228 = arith.addf %225, %227 : vector<8x256xf32>
    %c8_122 = arith.constant 8 : index
    %c0_123 = arith.constant 0 : index
    %c0_124 = arith.constant 0 : index
    %229 = vector.load %arg6[%c8_122, %c0_123, %c0_124] : memref<20x8x256xf32, #tpu.memory_space<vmem>>, vector<1x8x256xf32>
    %230 = vector.shape_cast %229 : vector<1x8x256xf32> to vector<8x256xf32>
    %231 = vector.shape_cast %228 : vector<8x256xf32> to vector<1x8x256xf32>
    tpu.vector_store %arg6[%c8_122, %c0_123, %c0_124], %231 {strides = array<i32>} : memref<20x8x256xf32, #tpu.memory_space<vmem>>, vector<1x8x256xf32>,
    %c8_125 = arith.constant 8 : index
    %c0_126 = arith.constant 0 : index
    %c0_127 = arith.constant 0 : index
    %232 = vector.load %arg5[%c8_125, %c0_126, %c0_127] : memref<20x8x256xf32, #tpu.memory_space<vmem>>, vector<1x8x256xf32>
    %233 = vector.shape_cast %232 : vector<1x8x256xf32> to vector<8x256xf32>
    %234 = arith.mulf %218, %223 : vector<32x256xbf16>
    %cst_128 = arith.constant dense<0.000000e+00> : vector<8x256xf32>
    %235 = tpu.matmul %5, %234, %cst_128 {dimension_numbers = #tpu.dot_dimension_numbers<[1], [0], [0], [1], [0, 0, 1, 1], [], []>} : vector<8x32xbf16>, vector<32x256xbf16>, vector<8x256xf32> -> vector<8x256xf32>
    %236 = arith.addf %233, %235 : vector<8x256xf32>
    %c8_129 = arith.constant 8 : index
    %c0_130 = arith.constant 0 : index
    %c0_131 = arith.constant 0 : index
    %237 = vector.load %arg5[%c8_129, %c0_130, %c0_131] : memref<20x8x256xf32, #tpu.memory_space<vmem>>, vector<1x8x256xf32>
    %238 = vector.shape_cast %237 : vector<1x8x256xf32> to vector<8x256xf32>
    %239 = vector.shape_cast %236 : vector<8x256xf32> to vector<1x8x256xf32>
    tpu.vector_store %arg5[%c8_129, %c0_130, %c0_131], %239 {strides = array<i32>} : memref<20x8x256xf32, #tpu.memory_space<vmem>>, vector<1x8x256xf32>,
    %c9_i32 = arith.constant 9 : i32
    %240 = vector.broadcast %c9_i32 : i32 to vector<32x256xi32>
    %241 = arith.cmpi eq, %3, %240 : vector<32x256xi32>
    %242 = arith.extui %241 : vector<32x256xi1> to vector<32x256xi32>
    %243 = arith.sitofp %242 : vector<32x256xi32> to vector<32x256xf32>
    %244 = arith.truncf %243 : vector<32x256xf32> to vector<32x256xbf16>
    %c9_i32_132 = arith.constant 9 : i32
    %245 = vector.broadcast %c9_i32_132 : i32 to vector<32x256xi32>
    %246 = arith.cmpi eq, %4, %245 : vector<32x256xi32>
    %247 = arith.extui %246 : vector<32x256xi1> to vector<32x256xi32>
    %248 = arith.sitofp %247 : vector<32x256xi32> to vector<32x256xf32>
    %249 = arith.truncf %248 : vector<32x256xf32> to vector<32x256xbf16>
    %c9 = arith.constant 9 : index
    %c0_133 = arith.constant 0 : index
    %c0_134 = arith.constant 0 : index
    %250 = vector.load %arg6[%c9, %c0_133, %c0_134] : memref<20x8x256xf32, #tpu.memory_space<vmem>>, vector<1x8x256xf32>
    %251 = vector.shape_cast %250 : vector<1x8x256xf32> to vector<8x256xf32>
    %252 = arith.addf %244, %249 : vector<32x256xbf16>
    %cst_135 = arith.constant dense<0.000000e+00> : vector<8x256xf32>
    %253 = tpu.matmul %5, %252, %cst_135 {dimension_numbers = #tpu.dot_dimension_numbers<[1], [0], [0], [1], [0, 0, 1, 1], [], []>} : vector<8x32xbf16>, vector<32x256xbf16>, vector<8x256xf32> -> vector<8x256xf32>
    %254 = arith.addf %251, %253 : vector<8x256xf32>
    %c9_136 = arith.constant 9 : index
    %c0_137 = arith.constant 0 : index
    %c0_138 = arith.constant 0 : index
    %255 = vector.load %arg6[%c9_136, %c0_137, %c0_138] : memref<20x8x256xf32, #tpu.memory_space<vmem>>, vector<1x8x256xf32>
    %256 = vector.shape_cast %255 : vector<1x8x256xf32> to vector<8x256xf32>
    %257 = vector.shape_cast %254 : vector<8x256xf32> to vector<1x8x256xf32>
    tpu.vector_store %arg6[%c9_136, %c0_137, %c0_138], %257 {strides = array<i32>} : memref<20x8x256xf32, #tpu.memory_space<vmem>>, vector<1x8x256xf32>,
    %c9_139 = arith.constant 9 : index
    %c0_140 = arith.constant 0 : index
    %c0_141 = arith.constant 0 : index
    %258 = vector.load %arg5[%c9_139, %c0_140, %c0_141] : memref<20x8x256xf32, #tpu.memory_space<vmem>>, vector<1x8x256xf32>
    %259 = vector.shape_cast %258 : vector<1x8x256xf32> to vector<8x256xf32>
    %260 = arith.mulf %244, %249 : vector<32x256xbf16>
    %cst_142 = arith.constant dense<0.000000e+00> : vector<8x256xf32>
    %261 = tpu.matmul %5, %260, %cst_142 {dimension_numbers = #tpu.dot_dimension_numbers<[1], [0], [0], [1], [0, 0, 1, 1], [], []>} : vector<8x32xbf16>, vector<32x256xbf16>, vector<8x256xf32> -> vector<8x256xf32>
    %262 = arith.addf %259, %261 : vector<8x256xf32>
    %c9_143 = arith.constant 9 : index
    %c0_144 = arith.constant 0 : index
    %c0_145 = arith.constant 0 : index
    %263 = vector.load %arg5[%c9_143, %c0_144, %c0_145] : memref<20x8x256xf32, #tpu.memory_space<vmem>>, vector<1x8x256xf32>
    %264 = vector.shape_cast %263 : vector<1x8x256xf32> to vector<8x256xf32>
    %265 = vector.shape_cast %262 : vector<8x256xf32> to vector<1x8x256xf32>
    tpu.vector_store %arg5[%c9_143, %c0_144, %c0_145], %265 {strides = array<i32>} : memref<20x8x256xf32, #tpu.memory_space<vmem>>, vector<1x8x256xf32>,
    %c10_i32 = arith.constant 10 : i32
    %266 = vector.broadcast %c10_i32 : i32 to vector<32x256xi32>
    %267 = arith.cmpi eq, %3, %266 : vector<32x256xi32>
    %268 = arith.extui %267 : vector<32x256xi1> to vector<32x256xi32>
    %269 = arith.sitofp %268 : vector<32x256xi32> to vector<32x256xf32>
    %270 = arith.truncf %269 : vector<32x256xf32> to vector<32x256xbf16>
    %c10_i32_146 = arith.constant 10 : i32
    %271 = vector.broadcast %c10_i32_146 : i32 to vector<32x256xi32>
    %272 = arith.cmpi eq, %4, %271 : vector<32x256xi32>
    %273 = arith.extui %272 : vector<32x256xi1> to vector<32x256xi32>
    %274 = arith.sitofp %273 : vector<32x256xi32> to vector<32x256xf32>
    %275 = arith.truncf %274 : vector<32x256xf32> to vector<32x256xbf16>
    %c10 = arith.constant 10 : index
    %c0_147 = arith.constant 0 : index
    %c0_148 = arith.constant 0 : index
    %276 = vector.load %arg6[%c10, %c0_147, %c0_148] : memref<20x8x256xf32, #tpu.memory_space<vmem>>, vector<1x8x256xf32>
    %277 = vector.shape_cast %276 : vector<1x8x256xf32> to vector<8x256xf32>
    %278 = arith.addf %270, %275 : vector<32x256xbf16>
    %cst_149 = arith.constant dense<0.000000e+00> : vector<8x256xf32>
    %279 = tpu.matmul %5, %278, %cst_149 {dimension_numbers = #tpu.dot_dimension_numbers<[1], [0], [0], [1], [0, 0, 1, 1], [], []>} : vector<8x32xbf16>, vector<32x256xbf16>, vector<8x256xf32> -> vector<8x256xf32>
    %280 = arith.addf %277, %279 : vector<8x256xf32>
    %c10_150 = arith.constant 10 : index
    %c0_151 = arith.constant 0 : index
    %c0_152 = arith.constant 0 : index
    %281 = vector.load %arg6[%c10_150, %c0_151, %c0_152] : memref<20x8x256xf32, #tpu.memory_space<vmem>>, vector<1x8x256xf32>
    %282 = vector.shape_cast %281 : vector<1x8x256xf32> to vector<8x256xf32>
    %283 = vector.shape_cast %280 : vector<8x256xf32> to vector<1x8x256xf32>
    tpu.vector_store %arg6[%c10_150, %c0_151, %c0_152], %283 {strides = array<i32>} : memref<20x8x256xf32, #tpu.memory_space<vmem>>, vector<1x8x256xf32>,
    %c10_153 = arith.constant 10 : index
    %c0_154 = arith.constant 0 : index
    %c0_155 = arith.constant 0 : index
    %284 = vector.load %arg5[%c10_153, %c0_154, %c0_155] : memref<20x8x256xf32, #tpu.memory_space<vmem>>, vector<1x8x256xf32>
    %285 = vector.shape_cast %284 : vector<1x8x256xf32> to vector<8x256xf32>
    %286 = arith.mulf %270, %275 : vector<32x256xbf16>
    %cst_156 = arith.constant dense<0.000000e+00> : vector<8x256xf32>
    %287 = tpu.matmul %5, %286, %cst_156 {dimension_numbers = #tpu.dot_dimension_numbers<[1], [0], [0], [1], [0, 0, 1, 1], [], []>} : vector<8x32xbf16>, vector<32x256xbf16>, vector<8x256xf32> -> vector<8x256xf32>
    %288 = arith.addf %285, %287 : vector<8x256xf32>
    %c10_157 = arith.constant 10 : index
    %c0_158 = arith.constant 0 : index
    %c0_159 = arith.constant 0 : index
    %289 = vector.load %arg5[%c10_157, %c0_158, %c0_159] : memref<20x8x256xf32, #tpu.memory_space<vmem>>, vector<1x8x256xf32>
    %290 = vector.shape_cast %289 : vector<1x8x256xf32> to vector<8x256xf32>
    %291 = vector.shape_cast %288 : vector<8x256xf32> to vector<1x8x256xf32>
    tpu.vector_store %arg5[%c10_157, %c0_158, %c0_159], %291 {strides = array<i32>} : memref<20x8x256xf32, #tpu.memory_space<vmem>>, vector<1x8x256xf32>,
    %c11_i32 = arith.constant 11 : i32
    %292 = vector.broadcast %c11_i32 : i32 to vector<32x256xi32>
    %293 = arith.cmpi eq, %3, %292 : vector<32x256xi32>
    %294 = arith.extui %293 : vector<32x256xi1> to vector<32x256xi32>
    %295 = arith.sitofp %294 : vector<32x256xi32> to vector<32x256xf32>
    %296 = arith.truncf %295 : vector<32x256xf32> to vector<32x256xbf16>
    %c11_i32_160 = arith.constant 11 : i32
    %297 = vector.broadcast %c11_i32_160 : i32 to vector<32x256xi32>
    %298 = arith.cmpi eq, %4, %297 : vector<32x256xi32>
    %299 = arith.extui %298 : vector<32x256xi1> to vector<32x256xi32>
    %300 = arith.sitofp %299 : vector<32x256xi32> to vector<32x256xf32>
    %301 = arith.truncf %300 : vector<32x256xf32> to vector<32x256xbf16>
    %c11 = arith.constant 11 : index
    %c0_161 = arith.constant 0 : index
    %c0_162 = arith.constant 0 : index
    %302 = vector.load %arg6[%c11, %c0_161, %c0_162] : memref<20x8x256xf32, #tpu.memory_space<vmem>>, vector<1x8x256xf32>
    %303 = vector.shape_cast %302 : vector<1x8x256xf32> to vector<8x256xf32>
    %304 = arith.addf %296, %301 : vector<32x256xbf16>
    %cst_163 = arith.constant dense<0.000000e+00> : vector<8x256xf32>
    %305 = tpu.matmul %5, %304, %cst_163 {dimension_numbers = #tpu.dot_dimension_numbers<[1], [0], [0], [1], [0, 0, 1, 1], [], []>} : vector<8x32xbf16>, vector<32x256xbf16>, vector<8x256xf32> -> vector<8x256xf32>
    %306 = arith.addf %303, %305 : vector<8x256xf32>
    %c11_164 = arith.constant 11 : index
    %c0_165 = arith.constant 0 : index
    %c0_166 = arith.constant 0 : index
    %307 = vector.load %arg6[%c11_164, %c0_165, %c0_166] : memref<20x8x256xf32, #tpu.memory_space<vmem>>, vector<1x8x256xf32>
    %308 = vector.shape_cast %307 : vector<1x8x256xf32> to vector<8x256xf32>
    %309 = vector.shape_cast %306 : vector<8x256xf32> to vector<1x8x256xf32>
    tpu.vector_store %arg6[%c11_164, %c0_165, %c0_166], %309 {strides = array<i32>} : memref<20x8x256xf32, #tpu.memory_space<vmem>>, vector<1x8x256xf32>,
    %c11_167 = arith.constant 11 : index
    %c0_168 = arith.constant 0 : index
    %c0_169 = arith.constant 0 : index
    %310 = vector.load %arg5[%c11_167, %c0_168, %c0_169] : memref<20x8x256xf32, #tpu.memory_space<vmem>>, vector<1x8x256xf32>
    %311 = vector.shape_cast %310 : vector<1x8x256xf32> to vector<8x256xf32>
    %312 = arith.mulf %296, %301 : vector<32x256xbf16>
    %cst_170 = arith.constant dense<0.000000e+00> : vector<8x256xf32>
    %313 = tpu.matmul %5, %312, %cst_170 {dimension_numbers = #tpu.dot_dimension_numbers<[1], [0], [0], [1], [0, 0, 1, 1], [], []>} : vector<8x32xbf16>, vector<32x256xbf16>, vector<8x256xf32> -> vector<8x256xf32>
    %314 = arith.addf %311, %313 : vector<8x256xf32>
    %c11_171 = arith.constant 11 : index
    %c0_172 = arith.constant 0 : index
    %c0_173 = arith.constant 0 : index
    %315 = vector.load %arg5[%c11_171, %c0_172, %c0_173] : memref<20x8x256xf32, #tpu.memory_space<vmem>>, vector<1x8x256xf32>
    %316 = vector.shape_cast %315 : vector<1x8x256xf32> to vector<8x256xf32>
    %317 = vector.shape_cast %314 : vector<8x256xf32> to vector<1x8x256xf32>
    tpu.vector_store %arg5[%c11_171, %c0_172, %c0_173], %317 {strides = array<i32>} : memref<20x8x256xf32, #tpu.memory_space<vmem>>, vector<1x8x256xf32>,
    %c12_i32 = arith.constant 12 : i32
    %318 = vector.broadcast %c12_i32 : i32 to vector<32x256xi32>
    %319 = arith.cmpi eq, %3, %318 : vector<32x256xi32>
    %320 = arith.extui %319 : vector<32x256xi1> to vector<32x256xi32>
    %321 = arith.sitofp %320 : vector<32x256xi32> to vector<32x256xf32>
    %322 = arith.truncf %321 : vector<32x256xf32> to vector<32x256xbf16>
    %c12_i32_174 = arith.constant 12 : i32
    %323 = vector.broadcast %c12_i32_174 : i32 to vector<32x256xi32>
    %324 = arith.cmpi eq, %4, %323 : vector<32x256xi32>
    %325 = arith.extui %324 : vector<32x256xi1> to vector<32x256xi32>
    %326 = arith.sitofp %325 : vector<32x256xi32> to vector<32x256xf32>
    %327 = arith.truncf %326 : vector<32x256xf32> to vector<32x256xbf16>
    %c12 = arith.constant 12 : index
    %c0_175 = arith.constant 0 : index
    %c0_176 = arith.constant 0 : index
    %328 = vector.load %arg6[%c12, %c0_175, %c0_176] : memref<20x8x256xf32, #tpu.memory_space<vmem>>, vector<1x8x256xf32>
    %329 = vector.shape_cast %328 : vector<1x8x256xf32> to vector<8x256xf32>
    %330 = arith.addf %322, %327 : vector<32x256xbf16>
    %cst_177 = arith.constant dense<0.000000e+00> : vector<8x256xf32>
    %331 = tpu.matmul %5, %330, %cst_177 {dimension_numbers = #tpu.dot_dimension_numbers<[1], [0], [0], [1], [0, 0, 1, 1], [], []>} : vector<8x32xbf16>, vector<32x256xbf16>, vector<8x256xf32> -> vector<8x256xf32>
    %332 = arith.addf %329, %331 : vector<8x256xf32>
    %c12_178 = arith.constant 12 : index
    %c0_179 = arith.constant 0 : index
    %c0_180 = arith.constant 0 : index
    %333 = vector.load %arg6[%c12_178, %c0_179, %c0_180] : memref<20x8x256xf32, #tpu.memory_space<vmem>>, vector<1x8x256xf32>
    %334 = vector.shape_cast %333 : vector<1x8x256xf32> to vector<8x256xf32>
    %335 = vector.shape_cast %332 : vector<8x256xf32> to vector<1x8x256xf32>
    tpu.vector_store %arg6[%c12_178, %c0_179, %c0_180], %335 {strides = array<i32>} : memref<20x8x256xf32, #tpu.memory_space<vmem>>, vector<1x8x256xf32>,
    %c12_181 = arith.constant 12 : index
    %c0_182 = arith.constant 0 : index
    %c0_183 = arith.constant 0 : index
    %336 = vector.load %arg5[%c12_181, %c0_182, %c0_183] : memref<20x8x256xf32, #tpu.memory_space<vmem>>, vector<1x8x256xf32>
    %337 = vector.shape_cast %336 : vector<1x8x256xf32> to vector<8x256xf32>
    %338 = arith.mulf %322, %327 : vector<32x256xbf16>
    %cst_184 = arith.constant dense<0.000000e+00> : vector<8x256xf32>
    %339 = tpu.matmul %5, %338, %cst_184 {dimension_numbers = #tpu.dot_dimension_numbers<[1], [0], [0], [1], [0, 0, 1, 1], [], []>} : vector<8x32xbf16>, vector<32x256xbf16>, vector<8x256xf32> -> vector<8x256xf32>
    %340 = arith.addf %337, %339 : vector<8x256xf32>
    %c12_185 = arith.constant 12 : index
    %c0_186 = arith.constant 0 : index
    %c0_187 = arith.constant 0 : index
    %341 = vector.load %arg5[%c12_185, %c0_186, %c0_187] : memref<20x8x256xf32, #tpu.memory_space<vmem>>, vector<1x8x256xf32>
    %342 = vector.shape_cast %341 : vector<1x8x256xf32> to vector<8x256xf32>
    %343 = vector.shape_cast %340 : vector<8x256xf32> to vector<1x8x256xf32>
    tpu.vector_store %arg5[%c12_185, %c0_186, %c0_187], %343 {strides = array<i32>} : memref<20x8x256xf32, #tpu.memory_space<vmem>>, vector<1x8x256xf32>,
    %c13_i32 = arith.constant 13 : i32
    %344 = vector.broadcast %c13_i32 : i32 to vector<32x256xi32>
    %345 = arith.cmpi eq, %3, %344 : vector<32x256xi32>
    %346 = arith.extui %345 : vector<32x256xi1> to vector<32x256xi32>
    %347 = arith.sitofp %346 : vector<32x256xi32> to vector<32x256xf32>
    %348 = arith.truncf %347 : vector<32x256xf32> to vector<32x256xbf16>
    %c13_i32_188 = arith.constant 13 : i32
    %349 = vector.broadcast %c13_i32_188 : i32 to vector<32x256xi32>
    %350 = arith.cmpi eq, %4, %349 : vector<32x256xi32>
    %351 = arith.extui %350 : vector<32x256xi1> to vector<32x256xi32>
    %352 = arith.sitofp %351 : vector<32x256xi32> to vector<32x256xf32>
    %353 = arith.truncf %352 : vector<32x256xf32> to vector<32x256xbf16>
    %c13 = arith.constant 13 : index
    %c0_189 = arith.constant 0 : index
    %c0_190 = arith.constant 0 : index
    %354 = vector.load %arg6[%c13, %c0_189, %c0_190] : memref<20x8x256xf32, #tpu.memory_space<vmem>>, vector<1x8x256xf32>
    %355 = vector.shape_cast %354 : vector<1x8x256xf32> to vector<8x256xf32>
    %356 = arith.addf %348, %353 : vector<32x256xbf16>
    %cst_191 = arith.constant dense<0.000000e+00> : vector<8x256xf32>
    %357 = tpu.matmul %5, %356, %cst_191 {dimension_numbers = #tpu.dot_dimension_numbers<[1], [0], [0], [1], [0, 0, 1, 1], [], []>} : vector<8x32xbf16>, vector<32x256xbf16>, vector<8x256xf32> -> vector<8x256xf32>
    %358 = arith.addf %355, %357 : vector<8x256xf32>
    %c13_192 = arith.constant 13 : index
    %c0_193 = arith.constant 0 : index
    %c0_194 = arith.constant 0 : index
    %359 = vector.load %arg6[%c13_192, %c0_193, %c0_194] : memref<20x8x256xf32, #tpu.memory_space<vmem>>, vector<1x8x256xf32>
    %360 = vector.shape_cast %359 : vector<1x8x256xf32> to vector<8x256xf32>
    %361 = vector.shape_cast %358 : vector<8x256xf32> to vector<1x8x256xf32>
    tpu.vector_store %arg6[%c13_192, %c0_193, %c0_194], %361 {strides = array<i32>} : memref<20x8x256xf32, #tpu.memory_space<vmem>>, vector<1x8x256xf32>,
    %c13_195 = arith.constant 13 : index
    %c0_196 = arith.constant 0 : index
    %c0_197 = arith.constant 0 : index
    %362 = vector.load %arg5[%c13_195, %c0_196, %c0_197] : memref<20x8x256xf32, #tpu.memory_space<vmem>>, vector<1x8x256xf32>
    %363 = vector.shape_cast %362 : vector<1x8x256xf32> to vector<8x256xf32>
    %364 = arith.mulf %348, %353 : vector<32x256xbf16>
    %cst_198 = arith.constant dense<0.000000e+00> : vector<8x256xf32>
    %365 = tpu.matmul %5, %364, %cst_198 {dimension_numbers = #tpu.dot_dimension_numbers<[1], [0], [0], [1], [0, 0, 1, 1], [], []>} : vector<8x32xbf16>, vector<32x256xbf16>, vector<8x256xf32> -> vector<8x256xf32>
    %366 = arith.addf %363, %365 : vector<8x256xf32>
    %c13_199 = arith.constant 13 : index
    %c0_200 = arith.constant 0 : index
    %c0_201 = arith.constant 0 : index
    %367 = vector.load %arg5[%c13_199, %c0_200, %c0_201] : memref<20x8x256xf32, #tpu.memory_space<vmem>>, vector<1x8x256xf32>
    %368 = vector.shape_cast %367 : vector<1x8x256xf32> to vector<8x256xf32>
    %369 = vector.shape_cast %366 : vector<8x256xf32> to vector<1x8x256xf32>
    tpu.vector_store %arg5[%c13_199, %c0_200, %c0_201], %369 {strides = array<i32>} : memref<20x8x256xf32, #tpu.memory_space<vmem>>, vector<1x8x256xf32>,
    %c14_i32 = arith.constant 14 : i32
    %370 = vector.broadcast %c14_i32 : i32 to vector<32x256xi32>
    %371 = arith.cmpi eq, %3, %370 : vector<32x256xi32>
    %372 = arith.extui %371 : vector<32x256xi1> to vector<32x256xi32>
    %373 = arith.sitofp %372 : vector<32x256xi32> to vector<32x256xf32>
    %374 = arith.truncf %373 : vector<32x256xf32> to vector<32x256xbf16>
    %c14_i32_202 = arith.constant 14 : i32
    %375 = vector.broadcast %c14_i32_202 : i32 to vector<32x256xi32>
    %376 = arith.cmpi eq, %4, %375 : vector<32x256xi32>
    %377 = arith.extui %376 : vector<32x256xi1> to vector<32x256xi32>
    %378 = arith.sitofp %377 : vector<32x256xi32> to vector<32x256xf32>
    %379 = arith.truncf %378 : vector<32x256xf32> to vector<32x256xbf16>
    %c14 = arith.constant 14 : index
    %c0_203 = arith.constant 0 : index
    %c0_204 = arith.constant 0 : index
    %380 = vector.load %arg6[%c14, %c0_203, %c0_204] : memref<20x8x256xf32, #tpu.memory_space<vmem>>, vector<1x8x256xf32>
    %381 = vector.shape_cast %380 : vector<1x8x256xf32> to vector<8x256xf32>
    %382 = arith.addf %374, %379 : vector<32x256xbf16>
    %cst_205 = arith.constant dense<0.000000e+00> : vector<8x256xf32>
    %383 = tpu.matmul %5, %382, %cst_205 {dimension_numbers = #tpu.dot_dimension_numbers<[1], [0], [0], [1], [0, 0, 1, 1], [], []>} : vector<8x32xbf16>, vector<32x256xbf16>, vector<8x256xf32> -> vector<8x256xf32>
    %384 = arith.addf %381, %383 : vector<8x256xf32>
    %c14_206 = arith.constant 14 : index
    %c0_207 = arith.constant 0 : index
    %c0_208 = arith.constant 0 : index
    %385 = vector.load %arg6[%c14_206, %c0_207, %c0_208] : memref<20x8x256xf32, #tpu.memory_space<vmem>>, vector<1x8x256xf32>
    %386 = vector.shape_cast %385 : vector<1x8x256xf32> to vector<8x256xf32>
    %387 = vector.shape_cast %384 : vector<8x256xf32> to vector<1x8x256xf32>
    tpu.vector_store %arg6[%c14_206, %c0_207, %c0_208], %387 {strides = array<i32>} : memref<20x8x256xf32, #tpu.memory_space<vmem>>, vector<1x8x256xf32>,
    %c14_209 = arith.constant 14 : index
    %c0_210 = arith.constant 0 : index
    %c0_211 = arith.constant 0 : index
    %388 = vector.load %arg5[%c14_209, %c0_210, %c0_211] : memref<20x8x256xf32, #tpu.memory_space<vmem>>, vector<1x8x256xf32>
    %389 = vector.shape_cast %388 : vector<1x8x256xf32> to vector<8x256xf32>
    %390 = arith.mulf %374, %379 : vector<32x256xbf16>
    %cst_212 = arith.constant dense<0.000000e+00> : vector<8x256xf32>
    %391 = tpu.matmul %5, %390, %cst_212 {dimension_numbers = #tpu.dot_dimension_numbers<[1], [0], [0], [1], [0, 0, 1, 1], [], []>} : vector<8x32xbf16>, vector<32x256xbf16>, vector<8x256xf32> -> vector<8x256xf32>
    %392 = arith.addf %389, %391 : vector<8x256xf32>
    %c14_213 = arith.constant 14 : index
    %c0_214 = arith.constant 0 : index
    %c0_215 = arith.constant 0 : index
    %393 = vector.load %arg5[%c14_213, %c0_214, %c0_215] : memref<20x8x256xf32, #tpu.memory_space<vmem>>, vector<1x8x256xf32>
    %394 = vector.shape_cast %393 : vector<1x8x256xf32> to vector<8x256xf32>
    %395 = vector.shape_cast %392 : vector<8x256xf32> to vector<1x8x256xf32>
    tpu.vector_store %arg5[%c14_213, %c0_214, %c0_215], %395 {strides = array<i32>} : memref<20x8x256xf32, #tpu.memory_space<vmem>>, vector<1x8x256xf32>,
    %c15_i32 = arith.constant 15 : i32
    %396 = vector.broadcast %c15_i32 : i32 to vector<32x256xi32>
    %397 = arith.cmpi eq, %3, %396 : vector<32x256xi32>
    %398 = arith.extui %397 : vector<32x256xi1> to vector<32x256xi32>
    %399 = arith.sitofp %398 : vector<32x256xi32> to vector<32x256xf32>
    %400 = arith.truncf %399 : vector<32x256xf32> to vector<32x256xbf16>
    %c15_i32_216 = arith.constant 15 : i32
    %401 = vector.broadcast %c15_i32_216 : i32 to vector<32x256xi32>
    %402 = arith.cmpi eq, %4, %401 : vector<32x256xi32>
    %403 = arith.extui %402 : vector<32x256xi1> to vector<32x256xi32>
    %404 = arith.sitofp %403 : vector<32x256xi32> to vector<32x256xf32>
    %405 = arith.truncf %404 : vector<32x256xf32> to vector<32x256xbf16>
    %c15 = arith.constant 15 : index
    %c0_217 = arith.constant 0 : index
    %c0_218 = arith.constant 0 : index
    %406 = vector.load %arg6[%c15, %c0_217, %c0_218] : memref<20x8x256xf32, #tpu.memory_space<vmem>>, vector<1x8x256xf32>
    %407 = vector.shape_cast %406 : vector<1x8x256xf32> to vector<8x256xf32>
    %408 = arith.addf %400, %405 : vector<32x256xbf16>
    %cst_219 = arith.constant dense<0.000000e+00> : vector<8x256xf32>
    %409 = tpu.matmul %5, %408, %cst_219 {dimension_numbers = #tpu.dot_dimension_numbers<[1], [0], [0], [1], [0, 0, 1, 1], [], []>} : vector<8x32xbf16>, vector<32x256xbf16>, vector<8x256xf32> -> vector<8x256xf32>
    %410 = arith.addf %407, %409 : vector<8x256xf32>
    %c15_220 = arith.constant 15 : index
    %c0_221 = arith.constant 0 : index
    %c0_222 = arith.constant 0 : index
    %411 = vector.load %arg6[%c15_220, %c0_221, %c0_222] : memref<20x8x256xf32, #tpu.memory_space<vmem>>, vector<1x8x256xf32>
    %412 = vector.shape_cast %411 : vector<1x8x256xf32> to vector<8x256xf32>
    %413 = vector.shape_cast %410 : vector<8x256xf32> to vector<1x8x256xf32>
    tpu.vector_store %arg6[%c15_220, %c0_221, %c0_222], %413 {strides = array<i32>} : memref<20x8x256xf32, #tpu.memory_space<vmem>>, vector<1x8x256xf32>,
    %c15_223 = arith.constant 15 : index
    %c0_224 = arith.constant 0 : index
    %c0_225 = arith.constant 0 : index
    %414 = vector.load %arg5[%c15_223, %c0_224, %c0_225] : memref<20x8x256xf32, #tpu.memory_space<vmem>>, vector<1x8x256xf32>
    %415 = vector.shape_cast %414 : vector<1x8x256xf32> to vector<8x256xf32>
    %416 = arith.mulf %400, %405 : vector<32x256xbf16>
    %cst_226 = arith.constant dense<0.000000e+00> : vector<8x256xf32>
    %417 = tpu.matmul %5, %416, %cst_226 {dimension_numbers = #tpu.dot_dimension_numbers<[1], [0], [0], [1], [0, 0, 1, 1], [], []>} : vector<8x32xbf16>, vector<32x256xbf16>, vector<8x256xf32> -> vector<8x256xf32>
    %418 = arith.addf %415, %417 : vector<8x256xf32>
    %c15_227 = arith.constant 15 : index
    %c0_228 = arith.constant 0 : index
    %c0_229 = arith.constant 0 : index
    %419 = vector.load %arg5[%c15_227, %c0_228, %c0_229] : memref<20x8x256xf32, #tpu.memory_space<vmem>>, vector<1x8x256xf32>
    %420 = vector.shape_cast %419 : vector<1x8x256xf32> to vector<8x256xf32>
    %421 = vector.shape_cast %418 : vector<8x256xf32> to vector<1x8x256xf32>
    tpu.vector_store %arg5[%c15_227, %c0_228, %c0_229], %421 {strides = array<i32>} : memref<20x8x256xf32, #tpu.memory_space<vmem>>, vector<1x8x256xf32>,
    %c16_i32 = arith.constant 16 : i32
    %422 = vector.broadcast %c16_i32 : i32 to vector<32x256xi32>
    %423 = arith.cmpi eq, %3, %422 : vector<32x256xi32>
    %424 = arith.extui %423 : vector<32x256xi1> to vector<32x256xi32>
    %425 = arith.sitofp %424 : vector<32x256xi32> to vector<32x256xf32>
    %426 = arith.truncf %425 : vector<32x256xf32> to vector<32x256xbf16>
    %c16_i32_230 = arith.constant 16 : i32
    %427 = vector.broadcast %c16_i32_230 : i32 to vector<32x256xi32>
    %428 = arith.cmpi eq, %4, %427 : vector<32x256xi32>
    %429 = arith.extui %428 : vector<32x256xi1> to vector<32x256xi32>
    %430 = arith.sitofp %429 : vector<32x256xi32> to vector<32x256xf32>
    %431 = arith.truncf %430 : vector<32x256xf32> to vector<32x256xbf16>
    %c16 = arith.constant 16 : index
    %c0_231 = arith.constant 0 : index
    %c0_232 = arith.constant 0 : index
    %432 = vector.load %arg6[%c16, %c0_231, %c0_232] : memref<20x8x256xf32, #tpu.memory_space<vmem>>, vector<1x8x256xf32>
    %433 = vector.shape_cast %432 : vector<1x8x256xf32> to vector<8x256xf32>
    %434 = arith.addf %426, %431 : vector<32x256xbf16>
    %cst_233 = arith.constant dense<0.000000e+00> : vector<8x256xf32>
    %435 = tpu.matmul %5, %434, %cst_233 {dimension_numbers = #tpu.dot_dimension_numbers<[1], [0], [0], [1], [0, 0, 1, 1], [], []>} : vector<8x32xbf16>, vector<32x256xbf16>, vector<8x256xf32> -> vector<8x256xf32>
    %436 = arith.addf %433, %435 : vector<8x256xf32>
    %c16_234 = arith.constant 16 : index
    %c0_235 = arith.constant 0 : index
    %c0_236 = arith.constant 0 : index
    %437 = vector.load %arg6[%c16_234, %c0_235, %c0_236] : memref<20x8x256xf32, #tpu.memory_space<vmem>>, vector<1x8x256xf32>
    %438 = vector.shape_cast %437 : vector<1x8x256xf32> to vector<8x256xf32>
    %439 = vector.shape_cast %436 : vector<8x256xf32> to vector<1x8x256xf32>
    tpu.vector_store %arg6[%c16_234, %c0_235, %c0_236], %439 {strides = array<i32>} : memref<20x8x256xf32, #tpu.memory_space<vmem>>, vector<1x8x256xf32>,
    %c16_237 = arith.constant 16 : index
    %c0_238 = arith.constant 0 : index
    %c0_239 = arith.constant 0 : index
    %440 = vector.load %arg5[%c16_237, %c0_238, %c0_239] : memref<20x8x256xf32, #tpu.memory_space<vmem>>, vector<1x8x256xf32>
    %441 = vector.shape_cast %440 : vector<1x8x256xf32> to vector<8x256xf32>
    %442 = arith.mulf %426, %431 : vector<32x256xbf16>
    %cst_240 = arith.constant dense<0.000000e+00> : vector<8x256xf32>
    %443 = tpu.matmul %5, %442, %cst_240 {dimension_numbers = #tpu.dot_dimension_numbers<[1], [0], [0], [1], [0, 0, 1, 1], [], []>} : vector<8x32xbf16>, vector<32x256xbf16>, vector<8x256xf32> -> vector<8x256xf32>
    %444 = arith.addf %441, %443 : vector<8x256xf32>
    %c16_241 = arith.constant 16 : index
    %c0_242 = arith.constant 0 : index
    %c0_243 = arith.constant 0 : index
    %445 = vector.load %arg5[%c16_241, %c0_242, %c0_243] : memref<20x8x256xf32, #tpu.memory_space<vmem>>, vector<1x8x256xf32>
    %446 = vector.shape_cast %445 : vector<1x8x256xf32> to vector<8x256xf32>
    %447 = vector.shape_cast %444 : vector<8x256xf32> to vector<1x8x256xf32>
    tpu.vector_store %arg5[%c16_241, %c0_242, %c0_243], %447 {strides = array<i32>} : memref<20x8x256xf32, #tpu.memory_space<vmem>>, vector<1x8x256xf32>,
    %c17_i32 = arith.constant 17 : i32
    %448 = vector.broadcast %c17_i32 : i32 to vector<32x256xi32>
    %449 = arith.cmpi eq, %3, %448 : vector<32x256xi32>
    %450 = arith.extui %449 : vector<32x256xi1> to vector<32x256xi32>
    %451 = arith.sitofp %450 : vector<32x256xi32> to vector<32x256xf32>
    %452 = arith.truncf %451 : vector<32x256xf32> to vector<32x256xbf16>
    %c17_i32_244 = arith.constant 17 : i32
    %453 = vector.broadcast %c17_i32_244 : i32 to vector<32x256xi32>
    %454 = arith.cmpi eq, %4, %453 : vector<32x256xi32>
    %455 = arith.extui %454 : vector<32x256xi1> to vector<32x256xi32>
    %456 = arith.sitofp %455 : vector<32x256xi32> to vector<32x256xf32>
    %457 = arith.truncf %456 : vector<32x256xf32> to vector<32x256xbf16>
    %c17 = arith.constant 17 : index
    %c0_245 = arith.constant 0 : index
    %c0_246 = arith.constant 0 : index
    %458 = vector.load %arg6[%c17, %c0_245, %c0_246] : memref<20x8x256xf32, #tpu.memory_space<vmem>>, vector<1x8x256xf32>
    %459 = vector.shape_cast %458 : vector<1x8x256xf32> to vector<8x256xf32>
    %460 = arith.addf %452, %457 : vector<32x256xbf16>
    %cst_247 = arith.constant dense<0.000000e+00> : vector<8x256xf32>
    %461 = tpu.matmul %5, %460, %cst_247 {dimension_numbers = #tpu.dot_dimension_numbers<[1], [0], [0], [1], [0, 0, 1, 1], [], []>} : vector<8x32xbf16>, vector<32x256xbf16>, vector<8x256xf32> -> vector<8x256xf32>
    %462 = arith.addf %459, %461 : vector<8x256xf32>
    %c17_248 = arith.constant 17 : index
    %c0_249 = arith.constant 0 : index
    %c0_250 = arith.constant 0 : index
    %463 = vector.load %arg6[%c17_248, %c0_249, %c0_250] : memref<20x8x256xf32, #tpu.memory_space<vmem>>, vector<1x8x256xf32>
    %464 = vector.shape_cast %463 : vector<1x8x256xf32> to vector<8x256xf32>
    %465 = vector.shape_cast %462 : vector<8x256xf32> to vector<1x8x256xf32>
    tpu.vector_store %arg6[%c17_248, %c0_249, %c0_250], %465 {strides = array<i32>} : memref<20x8x256xf32, #tpu.memory_space<vmem>>, vector<1x8x256xf32>,
    %c17_251 = arith.constant 17 : index
    %c0_252 = arith.constant 0 : index
    %c0_253 = arith.constant 0 : index
    %466 = vector.load %arg5[%c17_251, %c0_252, %c0_253] : memref<20x8x256xf32, #tpu.memory_space<vmem>>, vector<1x8x256xf32>
    %467 = vector.shape_cast %466 : vector<1x8x256xf32> to vector<8x256xf32>
    %468 = arith.mulf %452, %457 : vector<32x256xbf16>
    %cst_254 = arith.constant dense<0.000000e+00> : vector<8x256xf32>
    %469 = tpu.matmul %5, %468, %cst_254 {dimension_numbers = #tpu.dot_dimension_numbers<[1], [0], [0], [1], [0, 0, 1, 1], [], []>} : vector<8x32xbf16>, vector<32x256xbf16>, vector<8x256xf32> -> vector<8x256xf32>
    %470 = arith.addf %467, %469 : vector<8x256xf32>
    %c17_255 = arith.constant 17 : index
    %c0_256 = arith.constant 0 : index
    %c0_257 = arith.constant 0 : index
    %471 = vector.load %arg5[%c17_255, %c0_256, %c0_257] : memref<20x8x256xf32, #tpu.memory_space<vmem>>, vector<1x8x256xf32>
    %472 = vector.shape_cast %471 : vector<1x8x256xf32> to vector<8x256xf32>
    %473 = vector.shape_cast %470 : vector<8x256xf32> to vector<1x8x256xf32>
    tpu.vector_store %arg5[%c17_255, %c0_256, %c0_257], %473 {strides = array<i32>} : memref<20x8x256xf32, #tpu.memory_space<vmem>>, vector<1x8x256xf32>,
    %c18_i32 = arith.constant 18 : i32
    %474 = vector.broadcast %c18_i32 : i32 to vector<32x256xi32>
    %475 = arith.cmpi eq, %3, %474 : vector<32x256xi32>
    %476 = arith.extui %475 : vector<32x256xi1> to vector<32x256xi32>
    %477 = arith.sitofp %476 : vector<32x256xi32> to vector<32x256xf32>
    %478 = arith.truncf %477 : vector<32x256xf32> to vector<32x256xbf16>
    %c18_i32_258 = arith.constant 18 : i32
    %479 = vector.broadcast %c18_i32_258 : i32 to vector<32x256xi32>
    %480 = arith.cmpi eq, %4, %479 : vector<32x256xi32>
    %481 = arith.extui %480 : vector<32x256xi1> to vector<32x256xi32>
    %482 = arith.sitofp %481 : vector<32x256xi32> to vector<32x256xf32>
    %483 = arith.truncf %482 : vector<32x256xf32> to vector<32x256xbf16>
    %c18 = arith.constant 18 : index
    %c0_259 = arith.constant 0 : index
    %c0_260 = arith.constant 0 : index
    %484 = vector.load %arg6[%c18, %c0_259, %c0_260] : memref<20x8x256xf32, #tpu.memory_space<vmem>>, vector<1x8x256xf32>
    %485 = vector.shape_cast %484 : vector<1x8x256xf32> to vector<8x256xf32>
    %486 = arith.addf %478, %483 : vector<32x256xbf16>
    %cst_261 = arith.constant dense<0.000000e+00> : vector<8x256xf32>
    %487 = tpu.matmul %5, %486, %cst_261 {dimension_numbers = #tpu.dot_dimension_numbers<[1], [0], [0], [1], [0, 0, 1, 1], [], []>} : vector<8x32xbf16>, vector<32x256xbf16>, vector<8x256xf32> -> vector<8x256xf32>
    %488 = arith.addf %485, %487 : vector<8x256xf32>
    %c18_262 = arith.constant 18 : index
    %c0_263 = arith.constant 0 : index
    %c0_264 = arith.constant 0 : index
    %489 = vector.load %arg6[%c18_262, %c0_263, %c0_264] : memref<20x8x256xf32, #tpu.memory_space<vmem>>, vector<1x8x256xf32>
    %490 = vector.shape_cast %489 : vector<1x8x256xf32> to vector<8x256xf32>
    %491 = vector.shape_cast %488 : vector<8x256xf32> to vector<1x8x256xf32>
    tpu.vector_store %arg6[%c18_262, %c0_263, %c0_264], %491 {strides = array<i32>} : memref<20x8x256xf32, #tpu.memory_space<vmem>>, vector<1x8x256xf32>,
    %c18_265 = arith.constant 18 : index
    %c0_266 = arith.constant 0 : index
    %c0_267 = arith.constant 0 : index
    %492 = vector.load %arg5[%c18_265, %c0_266, %c0_267] : memref<20x8x256xf32, #tpu.memory_space<vmem>>, vector<1x8x256xf32>
    %493 = vector.shape_cast %492 : vector<1x8x256xf32> to vector<8x256xf32>
    %494 = arith.mulf %478, %483 : vector<32x256xbf16>
    %cst_268 = arith.constant dense<0.000000e+00> : vector<8x256xf32>
    %495 = tpu.matmul %5, %494, %cst_268 {dimension_numbers = #tpu.dot_dimension_numbers<[1], [0], [0], [1], [0, 0, 1, 1], [], []>} : vector<8x32xbf16>, vector<32x256xbf16>, vector<8x256xf32> -> vector<8x256xf32>
    %496 = arith.addf %493, %495 : vector<8x256xf32>
    %c18_269 = arith.constant 18 : index
    %c0_270 = arith.constant 0 : index
    %c0_271 = arith.constant 0 : index
    %497 = vector.load %arg5[%c18_269, %c0_270, %c0_271] : memref<20x8x256xf32, #tpu.memory_space<vmem>>, vector<1x8x256xf32>
    %498 = vector.shape_cast %497 : vector<1x8x256xf32> to vector<8x256xf32>
    %499 = vector.shape_cast %496 : vector<8x256xf32> to vector<1x8x256xf32>
    tpu.vector_store %arg5[%c18_269, %c0_270, %c0_271], %499 {strides = array<i32>} : memref<20x8x256xf32, #tpu.memory_space<vmem>>, vector<1x8x256xf32>,
    %c19_i32 = arith.constant 19 : i32
    %500 = vector.broadcast %c19_i32 : i32 to vector<32x256xi32>
    %501 = arith.cmpi eq, %3, %500 : vector<32x256xi32>
    %502 = arith.extui %501 : vector<32x256xi1> to vector<32x256xi32>
    %503 = arith.sitofp %502 : vector<32x256xi32> to vector<32x256xf32>
    %504 = arith.truncf %503 : vector<32x256xf32> to vector<32x256xbf16>
    %c19_i32_272 = arith.constant 19 : i32
    %505 = vector.broadcast %c19_i32_272 : i32 to vector<32x256xi32>
    %506 = arith.cmpi eq, %4, %505 : vector<32x256xi32>
    %507 = arith.extui %506 : vector<32x256xi1> to vector<32x256xi32>
    %508 = arith.sitofp %507 : vector<32x256xi32> to vector<32x256xf32>
    %509 = arith.truncf %508 : vector<32x256xf32> to vector<32x256xbf16>
    %c19 = arith.constant 19 : index
    %c0_273 = arith.constant 0 : index
    %c0_274 = arith.constant 0 : index
    %510 = vector.load %arg6[%c19, %c0_273, %c0_274] : memref<20x8x256xf32, #tpu.memory_space<vmem>>, vector<1x8x256xf32>
    %511 = vector.shape_cast %510 : vector<1x8x256xf32> to vector<8x256xf32>
    %512 = arith.addf %504, %509 : vector<32x256xbf16>
    %cst_275 = arith.constant dense<0.000000e+00> : vector<8x256xf32>
    %513 = tpu.matmul %5, %512, %cst_275 {dimension_numbers = #tpu.dot_dimension_numbers<[1], [0], [0], [1], [0, 0, 1, 1], [], []>} : vector<8x32xbf16>, vector<32x256xbf16>, vector<8x256xf32> -> vector<8x256xf32>
    %514 = arith.addf %511, %513 : vector<8x256xf32>
    %c19_276 = arith.constant 19 : index
    %c0_277 = arith.constant 0 : index
    %c0_278 = arith.constant 0 : index
    %515 = vector.load %arg6[%c19_276, %c0_277, %c0_278] : memref<20x8x256xf32, #tpu.memory_space<vmem>>, vector<1x8x256xf32>
    %516 = vector.shape_cast %515 : vector<1x8x256xf32> to vector<8x256xf32>
    %517 = vector.shape_cast %514 : vector<8x256xf32> to vector<1x8x256xf32>
    tpu.vector_store %arg6[%c19_276, %c0_277, %c0_278], %517 {strides = array<i32>} : memref<20x8x256xf32, #tpu.memory_space<vmem>>, vector<1x8x256xf32>,
    %c19_279 = arith.constant 19 : index
    %c0_280 = arith.constant 0 : index
    %c0_281 = arith.constant 0 : index
    %518 = vector.load %arg5[%c19_279, %c0_280, %c0_281] : memref<20x8x256xf32, #tpu.memory_space<vmem>>, vector<1x8x256xf32>
    %519 = vector.shape_cast %518 : vector<1x8x256xf32> to vector<8x256xf32>
    %520 = arith.mulf %504, %509 : vector<32x256xbf16>
    %cst_282 = arith.constant dense<0.000000e+00> : vector<8x256xf32>
    %521 = tpu.matmul %5, %520, %cst_282 {dimension_numbers = #tpu.dot_dimension_numbers<[1], [0], [0], [1], [0, 0, 1, 1], [], []>} : vector<8x32xbf16>, vector<32x256xbf16>, vector<8x256xf32> -> vector<8x256xf32>
    %522 = arith.addf %519, %521 : vector<8x256xf32>
    %c19_283 = arith.constant 19 : index
    %c0_284 = arith.constant 0 : index
    %c0_285 = arith.constant 0 : index
    %523 = vector.load %arg5[%c19_283, %c0_284, %c0_285] : memref<20x8x256xf32, #tpu.memory_space<vmem>>, vector<1x8x256xf32>
    %524 = vector.shape_cast %523 : vector<1x8x256xf32> to vector<8x256xf32>
    %525 = vector.shape_cast %522 : vector<8x256xf32> to vector<1x8x256xf32>
    tpu.vector_store %arg5[%c19_283, %c0_284, %c0_285], %525 {strides = array<i32>} : memref<20x8x256xf32, #tpu.memory_space<vmem>>, vector<1x8x256xf32>,
    %c0_i32_286 = arith.constant 0 : i32
    %526 = arith.cmpi eq, %arg1, %c0_i32_286 : i32
    %527 = arith.extui %526 : i1 to i32
    %c0_i32_287 = arith.constant 0 : i32
    %528 = arith.cmpi ne, %527, %c0_i32_287 : i32
    scf.if %528 {
      %c0_288 = arith.constant 0 : index
      %c0_289 = arith.constant 0 : index
      %c0_290 = arith.constant 0 : index
      %529 = vector.load %arg5[%c0_288, %c0_289, %c0_290] : memref<20x8x256xf32, #tpu.memory_space<vmem>>, vector<20x8x256xf32>
      %cst_291 = arith.constant dense<0.000000e+00> : vector<20x8xf32>
      %530 = vector.multi_reduction <add>, %529, %cst_291 [2] : vector<20x8x256xf32> to vector<20x8xf32>
      %cst_292 = arith.constant dense<0.000000e+00> : vector<20xf32>
      %531 = vector.multi_reduction <add>, %530, %cst_292 [1] : vector<20x8xf32> to vector<20xf32>
      %532 = vector.shape_cast %531 : vector<20xf32> to vector<20x1xf32>
      %cst_293 = arith.constant 1.250000e-01 : f32
      %533 = vector.broadcast %cst_293 : f32 to vector<20x1xf32>
      %534 = arith.mulf %532, %533 : vector<20x1xf32>
      %c0_294 = arith.constant 0 : index
      %c0_295 = arith.constant 0 : index
      %c0_296 = arith.constant 0 : index
      %c0_297 = arith.constant 0 : index
      %535 = vector.load %arg4[%c0_294, %c0_295, %c0_296, %c0_297] : memref<1x2x20x1xf32, #tpu.memory_space<vmem>>, vector<1x1x20x1xf32>
      %536 = vector.shape_cast %535 : vector<1x1x20x1xf32> to vector<20x1xf32>
      %537 = vector.shape_cast %534 : vector<20x1xf32> to vector<1x1x20x1xf32>
      tpu.vector_store %arg4[%c0_294, %c0_295, %c0_296, %c0_297], %537 {strides = array<i32>} : memref<1x2x20x1xf32, #tpu.memory_space<vmem>>, vector<1x1x20x1xf32>,
      %c0_298 = arith.constant 0 : index
      %c0_299 = arith.constant 0 : index
      %c0_300 = arith.constant 0 : index
      %538 = vector.load %arg6[%c0_298, %c0_299, %c0_300] : memref<20x8x256xf32, #tpu.memory_space<vmem>>, vector<20x8x256xf32>
      %cst_301 = arith.constant dense<0.000000e+00> : vector<20x8xf32>
      %539 = vector.multi_reduction <add>, %538, %cst_301 [2] : vector<20x8x256xf32> to vector<20x8xf32>
      %cst_302 = arith.constant dense<0.000000e+00> : vector<20xf32>
      %540 = vector.multi_reduction <add>, %539, %cst_302 [1] : vector<20x8xf32> to vector<20xf32>
      %541 = vector.shape_cast %540 : vector<20xf32> to vector<20x1xf32>
      %cst_303 = arith.constant 1.250000e-01 : f32
      %542 = vector.broadcast %cst_303 : f32 to vector<20x1xf32>
      %543 = arith.mulf %541, %542 : vector<20x1xf32>
      %c0_304 = arith.constant 0 : index
      %c1_305 = arith.constant 1 : index
      %c0_306 = arith.constant 0 : index
      %c0_307 = arith.constant 0 : index
      %544 = vector.load %arg4[%c0_304, %c1_305, %c0_306, %c0_307] : memref<1x2x20x1xf32, #tpu.memory_space<vmem>>, vector<1x1x20x1xf32>
      %545 = vector.shape_cast %544 : vector<1x1x20x1xf32> to vector<20x1xf32>
      %546 = vector.shape_cast %543 : vector<20x1xf32> to vector<1x1x20x1xf32>
      tpu.vector_store %arg4[%c0_304, %c1_305, %c0_306, %c0_307], %546 {strides = array<i32>} : memref<1x2x20x1xf32, #tpu.memory_space<vmem>>, vector<1x1x20x1xf32>,
    } else {
    }
    return
  }
  func.func @transform_0(%arg0: i32, %arg1: i32) -> (i32, i32) {
    %c1_i32 = arith.constant 1 : i32
    %0 = arith.muli %arg0, %c1_i32 : i32
    %1 = arith.addi %0, %arg1 : i32
    %c0_i32 = arith.constant 0 : i32
    %c0_i32_0 = arith.constant 0 : i32
    return %1, %c0_i32 : i32, i32
  }
  func.func @transform_1(%arg0: i32, %arg1: i32) -> (i32, i32) {
    %c1_i32 = arith.constant 1 : i32
    %0 = arith.muli %arg0, %c1_i32 : i32
    %1 = arith.addi %0, %arg1 : i32
    %c0_i32 = arith.constant 0 : i32
    %c0_i32_0 = arith.constant 0 : i32
    return %1, %c0_i32 : i32, i32
  }
  func.func @transform_2(%arg0: i32, %arg1: i32) -> (i32, i32, i32, i32) {
    %c0_i32 = arith.constant 0 : i32
    %c0_i32_0 = arith.constant 0 : i32
    %c0_i32_1 = arith.constant 0 : i32
    %c0_i32_2 = arith.constant 0 : i32
    return %arg0, %c0_i32, %c0_i32_0, %c0_i32_1 : i32, i32, i32, i32
  }
}

</mosaic_0001>

<bundles_post_ra>
// kernel: tpu_custom_call.1
= control target key start
LH: loop header
LB: loop body
LE: loop exit
PB: predicated region body
PF: predicated region fallthrough
CT: control target
= control target key end

     0   :  { %7 = vsyncpa [#allocation5], 0  ;;  %s5337_s0 = inlined_call_operand.hbm [shape: s32[32,256], index: 0, kind: input, shape index: {}]   ;;  %s5338_s1 = inlined_call_operand.hbm [shape: s32[32,256], index: 1, kind: input, shape index: {}]   ;;  %s5339_s2 = inlined_call_operand.vmem [shape: f32[1,2,20,1], index: 2, kind: output, shape index: {}]  }
   0x1   :  { %8 = vsyncpa [#allocation7], 0  ;;  %s4300_s9 = smov [#allocation4]   ;;  %s4252_s13 = scalar_lea.hbm %s5337_s0, 1024 }
   0x2   :  { %s19_s10 = sshll.u32 %s4300_s9, 4  ;;  %p4253_p0 = scmp.ne.s32.totalorder %s5337_s0, %s4252_s13  ;;  %s20_s10 = int_to_ptr.vmem [resolvable:$true] %s19_s10 }
   0x3   :  { %p4256_p1 = scmp.lt.u32.totalorder %s4252_s13, %s5337_s0 }
   0x5   :  { %p4258_p2 = pnand %p4256_p1, %p4253_p0 }
   0x7   :  { %4261 = shalt.err (!%p4258_p2)
}
   0x8   :  { %s4262_s18 = scalar_lea.vmem %s20_s10, 1024  ;;  %p4267_p4 = scmp.lt.s32.totalorder %s20_s10, %s20_s10 }
   0x9   :  { %p4263_p3 = scmp.ne.s32.totalorder %s20_s10, %s4262_s18  ;;  %p4268_p5 = scmp.lt.s32.totalorder %s4262_s18, %s4262_s18 }
   0xb   :  { %p4269_p6 = por %p4268_p5, %p4267_p4 }
   0xd   :  { %p4270_p7 = pnand %p4269_p6, %p4263_p3 }
   0xf   :  { %4273 = shalt.err (!%p4270_p7)
}
  0x10   :  { %s4301_s19 = smov 256   ;;  %s4302_s20 = smov 16  }
  0x11   :  { %25 = dma.hbm_to_vmem [thread:$0]  %s5337_s0, 1024, %s20_s10, [#allocation5], %s4301_s19, %s4301_s19, %s4302_s20  }
  0x12   :  { %s4303_s23 = smov [#allocation6]   ;;  %s4274_s27 = scalar_lea.hbm %s5338_s1, 1024 }
  0x13   :  { %s36_s24 = sshll.u32 %s4303_s23, 4  ;;  %p4275_p8 = scmp.ne.s32.totalorder %s5338_s1, %s4274_s27  ;;  %s37_s24 = int_to_ptr.vmem [resolvable:$true] %s36_s24 }
  0x14   :  { %p4278_p9 = scmp.lt.u32.totalorder %s4274_s27, %s5338_s1 }
  0x16   :  { %p4280_p10 = pnand %p4278_p9, %p4275_p8 }
  0x18   :  { %4283 = shalt.err (!%p4280_p10)
}
  0x19   :  { %s4284_s4 = scalar_lea.vmem %s37_s24, 1024  ;;  %p4289_p12 = scmp.lt.s32.totalorder %s37_s24, %s37_s24 }
  0x1a   :  { %p4285_p11 = scmp.ne.s32.totalorder %s37_s24, %s4284_s4  ;;  %p4290_p13 = scmp.lt.s32.totalorder %s4284_s4, %s4284_s4 }
  0x1c   :  { %p4291_p0 = por %p4290_p13, %p4289_p12 }
  0x1e   :  { %p4292_p1 = pnand %p4291_p0, %p4285_p11 }
  0x20   :  { %4295 = shalt.err (!%p4292_p1)
}
  0x21   :  { %42 = dma.hbm_to_vmem [thread:$0]  %s5338_s1, 1024, %s37_s24, [#allocation7], %s4301_s19, %s4301_s19, %s4302_s20  }
  0x22   :  { %4296 = dma.done.wait [#allocation5], 1024  }
  0x23   :  { %4297 = vsyncadd [#allocation5], 4294966272 }
  0x24   :  { %4298 = dma.done.wait [#allocation7], 1024  }
  0x25   :  { %4299 = vsyncadd [#allocation7], 4294966272  ;;  %v4304_v0 = vmov 0   ;;  %v4348_v1 = vld [vmem:[#allocation4 + $0x8] sm:$0xff]  ;;  %v4350_v2 = vld [vmem:[#allocation4 + $0x18] sm:$0xff]  ;;  %v4305_v7 = vmov 0.0  }
  0x26   :  { %253 = vmatprep.mubr.bf16.mxu0 %v4304_v0  ;;  %304 = vmatprep.mubr.bf16.mxu1 %v4304_v0  ;;  %v4352_v3 = vld [vmem:[#allocation6 + $0x8] sm:$0xff]  ;;  %v4354_v4 = vld [vmem:[#allocation6 + $0x18] sm:$0xff]  ;;  %vm156_vm0 = vcmp.eq.s32.totalorder %v4348_v1, 0  ;;  %vm158_vm1 = vcmp.eq.s32.totalorder %v4350_v2, 0  ;;  %v4359_v5 = vld [vmem:[#allocation4] sm:$0xff]  ;;  %vm217_vm14 = vcmask 261120  }
  0x27   :  { %vm184_vm2 = vcmp.eq.s32.totalorder %v4352_v3, 0  ;;  %v4361_v6 = vld [vmem:[#allocation4 + $0x10] sm:$0xff]  ;;  %v3851_v8 = vsel %vm156_vm0, 1.0, %v4305_v7  ;;  %v3853_v9 = vsel %vm158_vm1, 1.0, %v4305_v7  ;;  %vm186_vm3 = vcmp.eq.s32.totalorder %v4354_v4, 0  ;;  %v4367_v11 = vld [vmem:[#allocation6] sm:$0xff] }
  0x28   :  { %v3859_v10 = vsel %vm184_vm2, 1.0, %v4305_v7  ;;  %v4369_v12 = vld [vmem:[#allocation6 + $0x10] sm:$0xff]  ;;  %v180_v13 = vpack.c.bf16 %v3853_v9, %v3851_v8  ;;  %v3861_v14 = vsel %vm186_vm3, 1.0, %v4305_v7  ;;  %vm155_vm4 = vcmp.eq.s32.totalorder %v4359_v5, 0  ;;  %v4374_v15 = vld [vmem:[#allocation4 + $0x28] sm:$0xff]  ;;  %v4376_v16 = vld [vmem:[#allocation4 + $0x38] sm:$0xff] }
  0x29   :  { %vm157_vm5 = vcmp.eq.s32.totalorder %v4361_v6, 0  ;;  %v208_v17 = vpack.c.bf16 %v3861_v14, %v3859_v10  ;;  %v3850_v18 = vsel %vm155_vm4, 1.0, %v4305_v7  ;;  %vm183_vm6 = vcmp.eq.s32.totalorder %v4367_v11, 0  ;;  %v4381_v20 = vld [vmem:[#allocation6 + $0x28] sm:$0xff]  ;;  %v4385_v23 = vld [vmem:[#allocation6 + $0x38] sm:$0xff]  ;;  %v4388_v24 = vld [vmem:[#allocation4 + $0x20] sm:$0xff] }
  0x2a   :  { %v3852_v19 = vsel %vm157_vm5, 1.0, %v4305_v7  ;;  %vm185_vm7 = vcmp.eq.s32.totalorder %v4369_v12, 0  ;;  %v3858_v22 = vsel %vm183_vm6, 1.0, %v4305_v7  ;;  %vm160_vm8 = vcmp.eq.s32.totalorder %v4374_v15, 0  ;;  %v4392_v28 = vld [vmem:[#allocation4 + $0x30] sm:$0xff]  ;;  %v4397_v32 = vld [vmem:[#allocation6 + $0x20] sm:$0xff] }
  0x2b   :  { %v179_v21 = vpack.c.bf16 %v3852_v19, %v3850_v18  ;;  %v214_v25 = vadd.bf16 %v208_v17, %v180_v13  ;;  %v269_v26 = vmul.bf16 %v208_v17, %v180_v13  ;;  %v3860_v27 = vsel %vm185_vm7, 1.0, %v4305_v7  ;;  %v4401_v35 = vld [vmem:[#allocation6 + $0x30] sm:$0xff] }
  0x2c   :  { %vm162_vm9 = vcmp.eq.s32.totalorder %v4376_v16, 0  ;;  %v207_v29 = vpack.c.bf16 %v3860_v27, %v3858_v22  ;;  %v3855_v30 = vsel %vm160_vm8, 1.0, %v4305_v7  ;;  %vm188_vm10 = vcmp.eq.s32.totalorder %v4381_v20, 0 }
  0x2d   :  { %v3857_v31 = vsel %vm162_vm9, 1.0, %v4305_v7  ;;  %221 = vmatprep.subr.bf16.mxu0 %v214_v25  ;;  %272 = vmatprep.subr.bf16.mxu1 %v269_v26  ;;  %vm190_vm11 = vcmp.eq.s32.totalorder %v4385_v23, 0  ;;  %v3863_v34 = vsel %vm188_vm10, 1.0, %v4305_v7  ;;  %vm159_vm12 = vcmp.eq.s32.totalorder %v4388_v24, 0 }
  0x2e   :  { %v182_v33 = vpack.c.bf16 %v3857_v31, %v3855_v30  ;;  %v213_v36 = vadd.bf16 %v207_v29, %v179_v21  ;;  %v268_v37 = vmul.bf16 %v207_v29, %v179_v21  ;;  %v3865_v38 = vsel %vm190_vm11, 1.0, %v4305_v7 }
  0x2f   :  { %vm161_vm13 = vcmp.eq.s32.totalorder %v4392_v28, 0  ;;  %v210_v39 = vpack.c.bf16 %v3865_v38, %v3863_v34  ;;  %v3854_v40 = vsel %vm159_vm12, 1.0, %v4305_v7  ;;  %vm187_vm15 = vcmp.eq.s32.totalorder %v4397_v32, 0 }
  0x30   :  { %v3856_v41 = vsel %vm161_vm13, 1.0, %v4305_v7  ;;  %222 = vmatpush1.bf16.msra.mxu0 %v213_v36  ;;  %273 = vmatpush1.bf16.msra.mxu1 %v268_v37  ;;  %vm189_vm0 = vcmp.eq.s32.totalorder %v4401_v35, 0  ;;  %v3862_v43 = vsel %vm187_vm15, 1.0, %v4305_v7  ;;  %vm318_vm1 = vcmp.eq.s32.totalorder %v4348_v1, 1 }
  0x31   :  { %v181_v42 = vpack.c.bf16 %v3856_v41, %v3854_v40  ;;  %v216_v44 = vadd.bf16 %v210_v39, %v182_v33  ;;  %v271_v45 = vmul.bf16 %v210_v39, %v182_v33  ;;  %v3864_v46 = vsel %vm189_vm0, 1.0, %v4305_v7 }
  0x32   :  { %vm320_vm2 = vcmp.eq.s32.totalorder %v4350_v2, 1  ;;  %v209_v47 = vpack.c.bf16 %v3864_v46, %v3862_v43  ;;  %v3869_v48 = vsel %vm318_vm1, 1.0, %v4305_v7  ;;  %vm346_vm3 = vcmp.eq.s32.totalorder %v4352_v3, 1 }
  0x33   :  { %v3871_v49 = vsel %vm320_vm2, 1.0, %v4305_v7  ;;  %223 = vmatprep.subr.bf16.mxu0 %v216_v44  ;;  %274 = vmatprep.subr.bf16.mxu1 %v271_v45  ;;  %vm348_vm4 = vcmp.eq.s32.totalorder %v4354_v4, 1  ;;  %v3877_v51 = vsel %vm346_vm3, 1.0, %v4305_v7  ;;  %vm317_vm5 = vcmp.eq.s32.totalorder %v4359_v5, 1 }
  0x34   :  { %v342_v50 = vpack.c.bf16 %v3871_v49, %v3869_v48  ;;  %v215_v52 = vadd.bf16 %v209_v47, %v181_v42  ;;  %v270_v53 = vmul.bf16 %v209_v47, %v181_v42  ;;  %v3879_v54 = vsel %vm348_vm4, 1.0, %v4305_v7 }
  0x35   :  { %vm319_vm6 = vcmp.eq.s32.totalorder %v4361_v6, 1  ;;  %v370_v55 = vpack.c.bf16 %v3879_v54, %v3877_v51  ;;  %v3868_v56 = vsel %vm317_vm5, 1.0, %v4305_v7  ;;  %vm345_vm7 = vcmp.eq.s32.totalorder %v4367_v11, 1 }
  0x36   :  { %v3870_v57 = vsel %vm319_vm6, 1.0, %v4305_v7  ;;  %224 = vmatpush1.bf16.msra.mxu0 %v215_v52  ;;  %275 = vmatpush1.bf16.msra.mxu1 %v270_v53  ;;  %vm347_vm8 = vcmp.eq.s32.totalorder %v4369_v12, 1  ;;  %v3876_v59 = vsel %vm345_vm7, 1.0, %v4305_v7  ;;  %vm322_vm9 = vcmp.eq.s32.totalorder %v4374_v15, 1 }
  0x37   :  { %v341_v58 = vpack.c.bf16 %v3870_v57, %v3868_v56  ;;  %v377_v60 = vadd.bf16 %v370_v55, %v342_v50  ;;  %v429_v61 = vmul.bf16 %v370_v55, %v342_v50  ;;  %v3878_v62 = vsel %vm347_vm8, 1.0, %v4305_v7 }
  0x38   :  { %vm324_vm10 = vcmp.eq.s32.totalorder %v4376_v16, 1  ;;  %v369_v63 = vpack.c.bf16 %v3878_v62, %v3876_v59  ;;  %v3873_v8 = vsel %vm322_vm9, 1.0, %v4305_v7  ;;  %vm350_vm11 = vcmp.eq.s32.totalorder %v4381_v20, 1 }
  0x39   :  { %v3875_v9 = vsel %vm324_vm10, 1.0, %v4305_v7  ;;  %v4306_v10 = vmov 1065369472   ;;  %vm352_vm12 = vcmp.eq.s32.totalorder %v4385_v23, 1  ;;  %v3881_v14 = vsel %vm350_vm11, 1.0, %v4305_v7  ;;  %380 = vmatprep.subr.bf16.mxu0 %v377_v60  ;;  %432 = vmatprep.subr.bf16.mxu1 %v429_v61 }
  0x3a   :  { %3866 = vmatmul.mubr.msk.bf16.vlgmr.msra.gmra.mrb[0].mxu0 %vm217_vm14, %v4306_v10  ;;  %3867 = vmatmul.mubr.msk.bf16.vlgmr.msra.gmra.mrb[0].mxu1 %vm217_vm14, %v4306_v10  ;;  %v344_v13 = vpack.c.bf16 %v3875_v9, %v3873_v8  ;;  %vm321_vm13 = vcmp.eq.s32.totalorder %v4388_v24, 1  ;;  %v376_v17 = vadd.bf16 %v369_v63, %v341_v58  ;;  %v428_v18 = vmul.bf16 %v369_v63, %v341_v58 }
  0x3b   :  { %v3883_v19 = vsel %vm352_vm12, 1.0, %v4305_v7  ;;  %vm323_vm15 = vcmp.eq.s32.totalorder %v4392_v28, 1  ;;  %v3872_v22 = vsel %vm321_vm13, 1.0, %v4305_v7  ;;  %vm349_vm0 = vcmp.eq.s32.totalorder %v4397_v32, 1  ;;  %412 = vmatprep.mubr.bf16.mxu0 %v4304_v0  ;;  %464 = vmatprep.mubr.bf16.mxu1 %v4304_v0 }
  0x3c   :  { %v372_v21 = vpack.c.bf16 %v3883_v19, %v3881_v14  ;;  %v3874_v25 = vsel %vm323_vm15, 1.0, %v4305_v7  ;;  %381 = vmatpush1.bf16.msra.mxu0 %v376_v17  ;;  %433 = vmatpush1.bf16.msra.mxu1 %v428_v18  ;;  %vm351_vm1 = vcmp.eq.s32.totalorder %v4401_v35, 1  ;;  %v3880_v27 = vsel %vm349_vm0, 1.0, %v4305_v7 }
  0x3d   :  { %v343_v26 = vpack.c.bf16 %v3874_v25, %v3872_v22  ;;  %vm478_vm2 = vcmp.eq.s32.totalorder %v4348_v1, 2  ;;  %v3882_v31 = vsel %vm351_vm1, 1.0, %v4305_v7  ;;  %vm480_vm3 = vcmp.eq.s32.totalorder %v4350_v2, 2 }
  0x3e   :  { %v379_v29 = vadd.bf16 %v372_v21, %v344_v13  ;;  %v431_v30 = vmul.bf16 %v372_v21, %v344_v13  ;;  %v371_v33 = vpack.c.bf16 %v3882_v31, %v3880_v27  ;;  %v3887_v34 = vsel %vm478_vm2, 1.0, %v4305_v7 }
  0x3f   :  { %v3889_v36 = vsel %vm480_vm3, 1.0, %v4305_v7  ;;  %vm506_vm4 = vcmp.eq.s32.totalorder %v4352_v3, 2  ;;  %vm508_vm5 = vcmp.eq.s32.totalorder %v4354_v4, 2  ;;  %vm477_vm6 = vcmp.eq.s32.totalorder %v4359_v5, 2 }
  0x40   :  { %382 = vmatprep.subr.bf16.mxu0 %v379_v29  ;;  %434 = vmatprep.subr.bf16.mxu1 %v431_v30  ;;  %v502_v37 = vpack.c.bf16 %v3889_v36, %v3887_v34  ;;  %v3895_v38 = vsel %vm506_vm4, 1.0, %v4305_v7  ;;  %v378_v39 = vadd.bf16 %v371_v33, %v343_v26  ;;  %v430_v40 = vmul.bf16 %v371_v33, %v343_v26 }
  0x41   :  { %v3897_v41 = vsel %vm508_vm5, 1.0, %v4305_v7  ;;  %vm479_vm7 = vcmp.eq.s32.totalorder %v4361_v6, 2  ;;  %v3886_v43 = vsel %vm477_vm6, 1.0, %v4305_v7  ;;  %vm505_vm8 = vcmp.eq.s32.totalorder %v4367_v11, 2 }
  0x42   :  { %v530_v42 = vpack.c.bf16 %v3897_v41, %v3895_v38  ;;  %v3888_v44 = vsel %vm479_vm7, 1.0, %v4305_v7  ;;  %383 = vmatpush1.bf16.msra.mxu0 %v378_v39  ;;  %435 = vmatpush1.bf16.msra.mxu1 %v430_v40  ;;  %vm507_vm9 = vcmp.eq.s32.totalorder %v4369_v12, 2  ;;  %v3894_v46 = vsel %vm505_vm8, 1.0, %v4305_v7 }
  0x43   :  { %v501_v45 = vpack.c.bf16 %v3888_v44, %v3886_v43  ;;  %vm482_vm10 = vcmp.eq.s32.totalorder %v4374_v15, 2  ;;  %v3896_v49 = vsel %vm507_vm9, 1.0, %v4305_v7  ;;  %vm484_vm11 = vcmp.eq.s32.totalorder %v4376_v16, 2 }
  0x44   :  { %v537_v47 = vadd.bf16 %v530_v42, %v502_v37  ;;  %v589_v48 = vmul.bf16 %v530_v42, %v502_v37  ;;  %v529_v50 = vpack.c.bf16 %v3896_v49, %v3894_v46  ;;  %v3891_v51 = vsel %vm482_vm10, 1.0, %v4305_v7 }
  0x45   :  { %v3893_v52 = vsel %vm484_vm11, 1.0, %v4305_v7  ;;  %vm510_vm12 = vcmp.eq.s32.totalorder %v4381_v20, 2  ;;  %3884 = vmatmul.mubr.msk.bf16.vlgmr.msra.gmra.mrb[4].mxu0 %vm217_vm14, %v4306_v10  ;;  %3885 = vmatmul.mubr.msk.bf16.vlgmr.msra.gmra.mrb[4].mxu1 %vm217_vm14, %v4306_v10  ;;  %vm512_vm13 = vcmp.eq.s32.totalorder %v4385_v23, 2  ;;  %vm481_vm15 = vcmp.eq.s32.totalorder %v4388_v24, 2 }
  0x46   :  { %v504_v53 = vpack.c.bf16 %v3893_v52, %v3891_v51  ;;  %v3899_v54 = vsel %vm510_vm12, 1.0, %v4305_v7  ;;  %540 = vmatprep.subr.bf16.mxu0 %v537_v47  ;;  %592 = vmatprep.subr.bf16.mxu1 %v589_v48  ;;  %v536_v55 = vadd.bf16 %v529_v50, %v501_v45  ;;  %v588_v56 = vmul.bf16 %v529_v50, %v501_v45 }
  0x47   :  { %v3901_v57 = vsel %vm512_vm13, 1.0, %v4305_v7  ;;  %vm483_vm0 = vcmp.eq.s32.totalorder %v4392_v28, 2  ;;  %v3890_v59 = vsel %vm481_vm15, 1.0, %v4305_v7  ;;  %vm509_vm1 = vcmp.eq.s32.totalorder %v4397_v32, 2  ;;  %572 = vmatprep.mubr.bf16.mxu0 %v4304_v0  ;;  %624 = vmatprep.mubr.bf16.mxu1 %v4304_v0 }
  0x48   :  { %v532_v58 = vpack.c.bf16 %v3901_v57, %v3899_v54  ;;  %v3892_v60 = vsel %vm483_vm0, 1.0, %v4305_v7  ;;  %541 = vmatpush1.bf16.msra.mxu0 %v536_v55  ;;  %593 = vmatpush1.bf16.msra.mxu1 %v588_v56  ;;  %vm511_vm2 = vcmp.eq.s32.totalorder %v4401_v35, 2  ;;  %v3898_v62 = vsel %vm509_vm1, 1.0, %v4305_v7 }
  0x49   :  { %v503_v61 = vpack.c.bf16 %v3892_v60, %v3890_v59  ;;  %vm638_vm3 = vcmp.eq.s32.totalorder %v4348_v1, 3  ;;  %v3900_v9 = vsel %vm511_vm2, 1.0, %v4305_v7  ;;  %vm640_vm4 = vcmp.eq.s32.totalorder %v4350_v2, 3 }
  0x4a   :  { %v539_v63 = vadd.bf16 %v532_v58, %v504_v53  ;;  %v591_v8 = vmul.bf16 %v532_v58, %v504_v53  ;;  %v531_v13 = vpack.c.bf16 %v3900_v9, %v3898_v62  ;;  %v3905_v14 = vsel %vm638_vm3, 1.0, %v4305_v7 }
  0x4b   :  { %v3907_v17 = vsel %vm640_vm4, 1.0, %v4305_v7  ;;  %vm666_vm5 = vcmp.eq.s32.totalorder %v4352_v3, 3  ;;  %vm668_vm6 = vcmp.eq.s32.totalorder %v4354_v4, 3  ;;  %vm637_vm7 = vcmp.eq.s32.totalorder %v4359_v5, 3 }
  0x4c   :  { %542 = vmatprep.subr.bf16.mxu0 %v539_v63  ;;  %594 = vmatprep.subr.bf16.mxu1 %v591_v8  ;;  %v662_v18 = vpack.c.bf16 %v3907_v17, %v3905_v14  ;;  %v3913_v19 = vsel %vm666_vm5, 1.0, %v4305_v7  ;;  %v538_v21 = vadd.bf16 %v531_v13, %v503_v61  ;;  %v590_v22 = vmul.bf16 %v531_v13, %v503_v61 }
  0x4d   :  { %v3915_v25 = vsel %vm668_vm6, 1.0, %v4305_v7  ;;  %vm639_vm8 = vcmp.eq.s32.totalorder %v4361_v6, 3  ;;  %v3904_v27 = vsel %vm637_vm7, 1.0, %v4305_v7  ;;  %vm665_vm9 = vcmp.eq.s32.totalorder %v4367_v11, 3 }
  0x4e   :  { %v690_v26 = vpack.c.bf16 %v3915_v25, %v3913_v19  ;;  %v3906_v29 = vsel %vm639_vm8, 1.0, %v4305_v7  ;;  %543 = vmatpush1.bf16.msra.mxu0 %v538_v21  ;;  %595 = vmatpush1.bf16.msra.mxu1 %v590_v22  ;;  %vm667_vm10 = vcmp.eq.s32.totalorder %v4369_v12, 3  ;;  %v3912_v31 = vsel %vm665_vm9, 1.0, %v4305_v7 }
  0x4f   :  { %v661_v30 = vpack.c.bf16 %v3906_v29, %v3904_v27  ;;  %vm642_vm11 = vcmp.eq.s32.totalorder %v4374_v15, 3  ;;  %v3914_v36 = vsel %vm667_vm10, 1.0, %v4305_v7  ;;  %vm644_vm12 = vcmp.eq.s32.totalorder %v4376_v16, 3 }
  0x50   :  { %v697_v33 = vadd.bf16 %v690_v26, %v662_v18  ;;  %v749_v34 = vmul.bf16 %v690_v26, %v662_v18  ;;  %v689_v37 = vpack.c.bf16 %v3914_v36, %v3912_v31  ;;  %v3909_v38 = vsel %vm642_vm11, 1.0, %v4305_v7 }
  0x51   :  { %v3911_v39 = vsel %vm644_vm12, 1.0, %v4305_v7  ;;  %vm670_vm13 = vcmp.eq.s32.totalorder %v4381_v20, 3  ;;  %3902 = vmatmul.mubr.msk.bf16.vlgmr.msra.gmra.mrb[8].mxu0 %vm217_vm14, %v4306_v10  ;;  %3903 = vmatmul.mubr.msk.bf16.vlgmr.msra.gmra.mrb[8].mxu1 %vm217_vm14, %v4306_v10  ;;  %vm672_vm15 = vcmp.eq.s32.totalorder %v4385_v23, 3  ;;  %vm641_vm0 = vcmp.eq.s32.totalorder %v4388_v24, 3 }
  0x52   :  { %v664_v40 = vpack.c.bf16 %v3911_v39, %v3909_v38  ;;  %v3917_v41 = vsel %vm670_vm13, 1.0, %v4305_v7  ;;  %700 = vmatprep.subr.bf16.mxu0 %v697_v33  ;;  %752 = vmatprep.subr.bf16.mxu1 %v749_v34  ;;  %v696_v42 = vadd.bf16 %v689_v37, %v661_v30  ;;  %v748_v43 = vmul.bf16 %v689_v37, %v661_v30 }
  0x53   :  { %v3919_v44 = vsel %vm672_vm15, 1.0, %v4305_v7  ;;  %vm643_vm1 = vcmp.eq.s32.totalorder %v4392_v28, 3  ;;  %v3908_v46 = vsel %vm641_vm0, 1.0, %v4305_v7  ;;  %vm669_vm2 = vcmp.eq.s32.totalorder %v4397_v32, 3  ;;  %732 = vmatprep.mubr.bf16.mxu0 %v4304_v0  ;;  %784 = vmatprep.mubr.bf16.mxu1 %v4304_v0 }
  0x54   :  { %v692_v45 = vpack.c.bf16 %v3919_v44, %v3917_v41  ;;  %v3910_v47 = vsel %vm643_vm1, 1.0, %v4305_v7  ;;  %701 = vmatpush1.bf16.msra.mxu0 %v696_v42  ;;  %753 = vmatpush1.bf16.msra.mxu1 %v748_v43  ;;  %vm671_vm3 = vcmp.eq.s32.totalorder %v4401_v35, 3  ;;  %v3916_v49 = vsel %vm669_vm2, 1.0, %v4305_v7 }
  0x55   :  { %v663_v48 = vpack.c.bf16 %v3910_v47, %v3908_v46  ;;  %vm798_vm4 = vcmp.eq.s32.totalorder %v4348_v1, 4  ;;  %v3918_v52 = vsel %vm671_vm3, 1.0, %v4305_v7  ;;  %vm800_vm5 = vcmp.eq.s32.totalorder %v4350_v2, 4 }
  0x56   :  { %v699_v50 = vadd.bf16 %v692_v45, %v664_v40  ;;  %v751_v51 = vmul.bf16 %v692_v45, %v664_v40  ;;  %v691_v53 = vpack.c.bf16 %v3918_v52, %v3916_v49  ;;  %v3923_v54 = vsel %vm798_vm4, 1.0, %v4305_v7 }
  0x57   :  { %v3925_v55 = vsel %vm800_vm5, 1.0, %v4305_v7  ;;  %vm826_vm6 = vcmp.eq.s32.totalorder %v4352_v3, 4  ;;  %vm828_vm7 = vcmp.eq.s32.totalorder %v4354_v4, 4  ;;  %vm797_vm8 = vcmp.eq.s32.totalorder %v4359_v5, 4 }
  0x58   :  { %702 = vmatprep.subr.bf16.mxu0 %v699_v50  ;;  %754 = vmatprep.subr.bf16.mxu1 %v751_v51  ;;  %v822_v56 = vpack.c.bf16 %v3925_v55, %v3923_v54  ;;  %v3931_v57 = vsel %vm826_vm6, 1.0, %v4305_v7  ;;  %v698_v58 = vadd.bf16 %v691_v53, %v663_v48  ;;  %v750_v59 = vmul.bf16 %v691_v53, %v663_v48 }
  0x59   :  { %v3933_v60 = vsel %vm828_vm7, 1.0, %v4305_v7  ;;  %vm799_vm9 = vcmp.eq.s32.totalorder %v4361_v6, 4  ;;  %v3922_v62 = vsel %vm797_vm8, 1.0, %v4305_v7  ;;  %vm825_vm10 = vcmp.eq.s32.totalorder %v4367_v11, 4 }
  0x5a   :  { %v850_v61 = vpack.c.bf16 %v3933_v60, %v3931_v57  ;;  %v3924_v63 = vsel %vm799_vm9, 1.0, %v4305_v7  ;;  %703 = vmatpush1.bf16.msra.mxu0 %v698_v58  ;;  %755 = vmatpush1.bf16.msra.mxu1 %v750_v59  ;;  %vm827_vm11 = vcmp.eq.s32.totalorder %v4369_v12, 4  ;;  %v3930_v9 = vsel %vm825_vm10, 1.0, %v4305_v7 }
  0x5b   :  { %v821_v8 = vpack.c.bf16 %v3924_v63, %v3922_v62  ;;  %vm802_vm12 = vcmp.eq.s32.totalorder %v4374_v15, 4  ;;  %v3932_v17 = vsel %vm827_vm11, 1.0, %v4305_v7  ;;  %vm804_vm13 = vcmp.eq.s32.totalorder %v4376_v16, 4 }
  0x5c   :  { %v857_v13 = vadd.bf16 %v850_v61, %v822_v56  ;;  %v909_v14 = vmul.bf16 %v850_v61, %v822_v56  ;;  %v849_v18 = vpack.c.bf16 %v3932_v17, %v3930_v9  ;;  %v3927_v19 = vsel %vm802_vm12, 1.0, %v4305_v7 }
  0x5d   :  { %v3929_v21 = vsel %vm804_vm13, 1.0, %v4305_v7  ;;  %vm830_vm15 = vcmp.eq.s32.totalorder %v4381_v20, 4  ;;  %3920 = vmatmul.mubr.msk.bf16.vlgmr.msra.gmra.mrb[12].mxu0 %vm217_vm14, %v4306_v10  ;;  %3921 = vmatmul.mubr.msk.bf16.vlgmr.msra.gmra.mrb[12].mxu1 %vm217_vm14, %v4306_v10  ;;  %vm832_vm0 = vcmp.eq.s32.totalorder %v4385_v23, 4  ;;  %vm801_vm1 = vcmp.eq.s32.totalorder %v4388_v24, 4 }
  0x5e   :  { %v824_v22 = vpack.c.bf16 %v3929_v21, %v3927_v19  ;;  %v3935_v25 = vsel %vm830_vm15, 1.0, %v4305_v7  ;;  %860 = vmatprep.subr.bf16.mxu0 %v857_v13  ;;  %912 = vmatprep.subr.bf16.mxu1 %v909_v14  ;;  %v856_v26 = vadd.bf16 %v849_v18, %v821_v8  ;;  %v908_v27 = vmul.bf16 %v849_v18, %v821_v8 }
  0x5f   :  { %v3937_v29 = vsel %vm832_vm0, 1.0, %v4305_v7  ;;  %vm803_vm2 = vcmp.eq.s32.totalorder %v4392_v28, 4  ;;  %v3926_v31 = vsel %vm801_vm1, 1.0, %v4305_v7  ;;  %vm829_vm3 = vcmp.eq.s32.totalorder %v4397_v32, 4  ;;  %892 = vmatprep.mubr.bf16.mxu0 %v4304_v0  ;;  %944 = vmatprep.mubr.bf16.mxu1 %v4304_v0 }
  0x60   :  { %v852_v30 = vpack.c.bf16 %v3937_v29, %v3935_v25  ;;  %v3928_v33 = vsel %vm803_vm2, 1.0, %v4305_v7  ;;  %861 = vmatpush1.bf16.msra.mxu0 %v856_v26  ;;  %913 = vmatpush1.bf16.msra.mxu1 %v908_v27  ;;  %vm831_vm4 = vcmp.eq.s32.totalorder %v4401_v35, 4  ;;  %v3934_v36 = vsel %vm829_vm3, 1.0, %v4305_v7 }
  0x61   :  { %v823_v34 = vpack.c.bf16 %v3928_v33, %v3926_v31  ;;  %vm958_vm5 = vcmp.eq.s32.totalorder %v4348_v1, 5  ;;  %v3936_v39 = vsel %vm831_vm4, 1.0, %v4305_v7  ;;  %vm960_vm6 = vcmp.eq.s32.totalorder %v4350_v2, 5 }
  0x62   :  { %v859_v37 = vadd.bf16 %v852_v30, %v824_v22  ;;  %v911_v38 = vmul.bf16 %v852_v30, %v824_v22  ;;  %v851_v40 = vpack.c.bf16 %v3936_v39, %v3934_v36  ;;  %v3941_v41 = vsel %vm958_vm5, 1.0, %v4305_v7 }
  0x63   :  { %v3943_v42 = vsel %vm960_vm6, 1.0, %v4305_v7  ;;  %vm986_vm7 = vcmp.eq.s32.totalorder %v4352_v3, 5  ;;  %vm988_vm8 = vcmp.eq.s32.totalorder %v4354_v4, 5  ;;  %vm957_vm9 = vcmp.eq.s32.totalorder %v4359_v5, 5 }
  0x64   :  { %862 = vmatprep.subr.bf16.mxu0 %v859_v37  ;;  %914 = vmatprep.subr.bf16.mxu1 %v911_v38  ;;  %v982_v43 = vpack.c.bf16 %v3943_v42, %v3941_v41  ;;  %v3949_v44 = vsel %vm986_vm7, 1.0, %v4305_v7  ;;  %v858_v45 = vadd.bf16 %v851_v40, %v823_v34  ;;  %v910_v46 = vmul.bf16 %v851_v40, %v823_v34 }
  0x65   :  { %v3951_v47 = vsel %vm988_vm8, 1.0, %v4305_v7  ;;  %vm959_vm10 = vcmp.eq.s32.totalorder %v4361_v6, 5  ;;  %v3940_v49 = vsel %vm957_vm9, 1.0, %v4305_v7  ;;  %vm985_vm11 = vcmp.eq.s32.totalorder %v4367_v11, 5 }
  0x66   :  { %v1010_v48 = vpack.c.bf16 %v3951_v47, %v3949_v44  ;;  %v3942_v50 = vsel %vm959_vm10, 1.0, %v4305_v7  ;;  %863 = vmatpush1.bf16.msra.mxu0 %v858_v45  ;;  %915 = vmatpush1.bf16.msra.mxu1 %v910_v46  ;;  %vm987_vm12 = vcmp.eq.s32.totalorder %v4369_v12, 5  ;;  %v3948_v52 = vsel %vm985_vm11, 1.0, %v4305_v7 }
  0x67   :  { %v981_v51 = vpack.c.bf16 %v3942_v50, %v3940_v49  ;;  %vm962_vm13 = vcmp.eq.s32.totalorder %v4374_v15, 5  ;;  %v3950_v55 = vsel %vm987_vm12, 1.0, %v4305_v7  ;;  %vm964_vm15 = vcmp.eq.s32.totalorder %v4376_v16, 5 }
  0x68   :  { %v1017_v53 = vadd.bf16 %v1010_v48, %v982_v43  ;;  %v1069_v54 = vmul.bf16 %v1010_v48, %v982_v43  ;;  %v1009_v56 = vpack.c.bf16 %v3950_v55, %v3948_v52  ;;  %v3945_v57 = vsel %vm962_vm13, 1.0, %v4305_v7 }
  0x69   :  { %v3947_v58 = vsel %vm964_vm15, 1.0, %v4305_v7  ;;  %vm990_vm0 = vcmp.eq.s32.totalorder %v4381_v20, 5  ;;  %3938 = vmatmul.mubr.msk.bf16.vlgmr.msra.gmra.mrb[16].mxu0 %vm217_vm14, %v4306_v10  ;;  %3939 = vmatmul.mubr.msk.bf16.vlgmr.msra.gmra.mrb[16].mxu1 %vm217_vm14, %v4306_v10  ;;  %vm992_vm1 = vcmp.eq.s32.totalorder %v4385_v23, 5  ;;  %vm961_vm2 = vcmp.eq.s32.totalorder %v4388_v24, 5 }
  0x6a   :  { %v984_v59 = vpack.c.bf16 %v3947_v58, %v3945_v57  ;;  %v3953_v60 = vsel %vm990_vm0, 1.0, %v4305_v7  ;;  %1020 = vmatprep.subr.bf16.mxu0 %v1017_v53  ;;  %1072 = vmatprep.subr.bf16.mxu1 %v1069_v54  ;;  %v1016_v61 = vadd.bf16 %v1009_v56, %v981_v51  ;;  %v1068_v62 = vmul.bf16 %v1009_v56, %v981_v51 }
  0x6b   :  { %v3955_v63 = vsel %vm992_vm1, 1.0, %v4305_v7  ;;  %vm963_vm3 = vcmp.eq.s32.totalorder %v4392_v28, 5  ;;  %v3944_v9 = vsel %vm961_vm2, 1.0, %v4305_v7  ;;  %vm989_vm4 = vcmp.eq.s32.totalorder %v4397_v32, 5  ;;  %1052 = vmatprep.mubr.bf16.mxu0 %v4304_v0  ;;  %1104 = vmatprep.mubr.bf16.mxu1 %v4304_v0 }
  0x6c   :  { %v1012_v8 = vpack.c.bf16 %v3955_v63, %v3953_v60  ;;  %v3946_v13 = vsel %vm963_vm3, 1.0, %v4305_v7  ;;  %1021 = vmatpush1.bf16.msra.mxu0 %v1016_v61  ;;  %1073 = vmatpush1.bf16.msra.mxu1 %v1068_v62  ;;  %vm991_vm5 = vcmp.eq.s32.totalorder %v4401_v35, 5  ;;  %v3952_v17 = vsel %vm989_vm4, 1.0, %v4305_v7 }
  0x6d   :  { %v983_v14 = vpack.c.bf16 %v3946_v13, %v3944_v9  ;;  %vm1118_vm6 = vcmp.eq.s32.totalorder %v4348_v1, 6  ;;  %v3954_v21 = vsel %vm991_vm5, 1.0, %v4305_v7  ;;  %vm1120_vm7 = vcmp.eq.s32.totalorder %v4350_v2, 6 }
  0x6e   :  { %v1019_v18 = vadd.bf16 %v1012_v8, %v984_v59  ;;  %v1071_v19 = vmul.bf16 %v1012_v8, %v984_v59  ;;  %v1011_v22 = vpack.c.bf16 %v3954_v21, %v3952_v17  ;;  %v3959_v25 = vsel %vm1118_vm6, 1.0, %v4305_v7 }
  0x6f   :  { %v3961_v26 = vsel %vm1120_vm7, 1.0, %v4305_v7  ;;  %vm1146_vm8 = vcmp.eq.s32.totalorder %v4352_v3, 6  ;;  %vm1148_vm9 = vcmp.eq.s32.totalorder %v4354_v4, 6  ;;  %vm1117_vm10 = vcmp.eq.s32.totalorder %v4359_v5, 6 }
  0x70   :  { %1022 = vmatprep.subr.bf16.mxu0 %v1019_v18  ;;  %1074 = vmatprep.subr.bf16.mxu1 %v1071_v19  ;;  %v1142_v27 = vpack.c.bf16 %v3961_v26, %v3959_v25  ;;  %v3967_v29 = vsel %vm1146_vm8, 1.0, %v4305_v7  ;;  %v1018_v30 = vadd.bf16 %v1011_v22, %v983_v14  ;;  %v1070_v31 = vmul.bf16 %v1011_v22, %v983_v14 }
  0x71   :  { %v3969_v33 = vsel %vm1148_vm9, 1.0, %v4305_v7  ;;  %vm1119_vm11 = vcmp.eq.s32.totalorder %v4361_v6, 6  ;;  %v3958_v36 = vsel %vm1117_vm10, 1.0, %v4305_v7  ;;  %vm1145_vm12 = vcmp.eq.s32.totalorder %v4367_v11, 6 }
  0x72   :  { %v1170_v34 = vpack.c.bf16 %v3969_v33, %v3967_v29  ;;  %v3960_v37 = vsel %vm1119_vm11, 1.0, %v4305_v7  ;;  %1023 = vmatpush1.bf16.msra.mxu0 %v1018_v30  ;;  %1075 = vmatpush1.bf16.msra.mxu1 %v1070_v31  ;;  %vm1147_vm13 = vcmp.eq.s32.totalorder %v4369_v12, 6  ;;  %v3966_v39 = vsel %vm1145_vm12, 1.0, %v4305_v7 }
  0x73   :  { %v1141_v38 = vpack.c.bf16 %v3960_v37, %v3958_v36  ;;  %vm1122_vm15 = vcmp.eq.s32.totalorder %v4374_v15, 6  ;;  %v3968_v42 = vsel %vm1147_vm13, 1.0, %v4305_v7  ;;  %vm1124_vm0 = vcmp.eq.s32.totalorder %v4376_v16, 6 }
  0x74   :  { %v1177_v40 = vadd.bf16 %v1170_v34, %v1142_v27  ;;  %v1229_v41 = vmul.bf16 %v1170_v34, %v1142_v27  ;;  %v1169_v43 = vpack.c.bf16 %v3968_v42, %v3966_v39  ;;  %v3963_v44 = vsel %vm1122_vm15, 1.0, %v4305_v7 }
  0x75   :  { %v3965_v45 = vsel %vm1124_vm0, 1.0, %v4305_v7  ;;  %vm1150_vm1 = vcmp.eq.s32.totalorder %v4381_v20, 6  ;;  %3956 = vmatmul.mubr.msk.bf16.vlgmr.msra.gmra.mrb[20].mxu0 %vm217_vm14, %v4306_v10  ;;  %3957 = vmatmul.mubr.msk.bf16.vlgmr.msra.gmra.mrb[20].mxu1 %vm217_vm14, %v4306_v10  ;;  %vm1152_vm2 = vcmp.eq.s32.totalorder %v4385_v23, 6  ;;  %vm1121_vm3 = vcmp.eq.s32.totalorder %v4388_v24, 6 }
  0x76   :  { %v1144_v46 = vpack.c.bf16 %v3965_v45, %v3963_v44  ;;  %v3971_v47 = vsel %vm1150_vm1, 1.0, %v4305_v7  ;;  %1180 = vmatprep.subr.bf16.mxu0 %v1177_v40  ;;  %1232 = vmatprep.subr.bf16.mxu1 %v1229_v41  ;;  %v1176_v48 = vadd.bf16 %v1169_v43, %v1141_v38  ;;  %v1228_v49 = vmul.bf16 %v1169_v43, %v1141_v38 }
  0x77   :  { %v3973_v50 = vsel %vm1152_vm2, 1.0, %v4305_v7  ;;  %vm1123_vm4 = vcmp.eq.s32.totalorder %v4392_v28, 6  ;;  %v3962_v52 = vsel %vm1121_vm3, 1.0, %v4305_v7  ;;  %vm1149_vm5 = vcmp.eq.s32.totalorder %v4397_v32, 6  ;;  %1212 = vmatprep.mubr.bf16.mxu0 %v4304_v0  ;;  %1264 = vmatprep.mubr.bf16.mxu1 %v4304_v0 }
  0x78   :  { %v1172_v51 = vpack.c.bf16 %v3973_v50, %v3971_v47  ;;  %v3964_v53 = vsel %vm1123_vm4, 1.0, %v4305_v7  ;;  %1181 = vmatpush1.bf16.msra.mxu0 %v1176_v48  ;;  %1233 = vmatpush1.bf16.msra.mxu1 %v1228_v49  ;;  %vm1151_vm6 = vcmp.eq.s32.totalorder %v4401_v35, 6  ;;  %v3970_v55 = vsel %vm1149_vm5, 1.0, %v4305_v7 }
  0x79   :  { %v1143_v54 = vpack.c.bf16 %v3964_v53, %v3962_v52  ;;  %vm1278_vm7 = vcmp.eq.s32.totalorder %v4348_v1, 7  ;;  %v3972_v58 = vsel %vm1151_vm6, 1.0, %v4305_v7  ;;  %vm1280_vm8 = vcmp.eq.s32.totalorder %v4350_v2, 7 }
  0x7a   :  { %v1179_v56 = vadd.bf16 %v1172_v51, %v1144_v46  ;;  %v1231_v57 = vmul.bf16 %v1172_v51, %v1144_v46  ;;  %v1171_v59 = vpack.c.bf16 %v3972_v58, %v3970_v55  ;;  %v3977_v60 = vsel %vm1278_vm7, 1.0, %v4305_v7 }
  0x7b   :  { %v3979_v61 = vsel %vm1280_vm8, 1.0, %v4305_v7  ;;  %vm1306_vm9 = vcmp.eq.s32.totalorder %v4352_v3, 7  ;;  %vm1308_vm10 = vcmp.eq.s32.totalorder %v4354_v4, 7  ;;  %vm1277_vm11 = vcmp.eq.s32.totalorder %v4359_v5, 7 }
  0x7c   :  { %1182 = vmatprep.subr.bf16.mxu0 %v1179_v56  ;;  %1234 = vmatprep.subr.bf16.mxu1 %v1231_v57  ;;  %v1302_v62 = vpack.c.bf16 %v3979_v61, %v3977_v60  ;;  %v3985_v63 = vsel %vm1306_vm9, 1.0, %v4305_v7  ;;  %v1178_v8 = vadd.bf16 %v1171_v59, %v1143_v54  ;;  %v1230_v9 = vmul.bf16 %v1171_v59, %v1143_v54 }
  0x7d   :  { %v3987_v13 = vsel %vm1308_vm10, 1.0, %v4305_v7  ;;  %vm1279_vm12 = vcmp.eq.s32.totalorder %v4361_v6, 7  ;;  %v3976_v17 = vsel %vm1277_vm11, 1.0, %v4305_v7  ;;  %vm1305_vm13 = vcmp.eq.s32.totalorder %v4367_v11, 7 }
  0x7e   :  { %v1330_v14 = vpack.c.bf16 %v3987_v13, %v3985_v63  ;;  %v3978_v18 = vsel %vm1279_vm12, 1.0, %v4305_v7  ;;  %1183 = vmatpush1.bf16.msra.mxu0 %v1178_v8  ;;  %1235 = vmatpush1.bf16.msra.mxu1 %v1230_v9  ;;  %vm1307_vm15 = vcmp.eq.s32.totalorder %v4369_v12, 7  ;;  %v3984_v21 = vsel %vm1305_vm13, 1.0, %v4305_v7 }
  0x7f   :  { %v1301_v19 = vpack.c.bf16 %v3978_v18, %v3976_v17  ;;  %vm1282_vm0 = vcmp.eq.s32.totalorder %v4374_v15, 7  ;;  %v3986_v26 = vsel %vm1307_vm15, 1.0, %v4305_v7  ;;  %vm1284_vm1 = vcmp.eq.s32.totalorder %v4376_v16, 7  ;;  %v4727_v18 = vld [vmem:[#allocation6 + $0x18] sm:$0xff] }
  0x80   :  { %v1337_v22 = vadd.bf16 %v1330_v14, %v1302_v62  ;;  %v1389_v25 = vmul.bf16 %v1330_v14, %v1302_v62  ;;  %v1329_v27 = vpack.c.bf16 %v3986_v26, %v3984_v21  ;;  %v3981_v29 = vsel %vm1282_vm0, 1.0, %v4305_v7  ;;  %v4715_v62 = vld [vmem:[#allocation4 + $0x8] sm:$0xff]  ;;  %v4731_v21 = vld [vmem:[#allocation4] sm:$0xff] }
  0x81   :  { %v3983_v30 = vsel %vm1284_vm1, 1.0, %v4305_v7  ;;  %vm1310_vm2 = vcmp.eq.s32.totalorder %v4381_v20, 7  ;;  %3974 = vmatmul.mubr.msk.bf16.vlgmr.msra.gmra.mrb[24].mxu0 %vm217_vm14, %v4306_v10  ;;  %3975 = vmatmul.mubr.msk.bf16.vlgmr.msra.gmra.mrb[24].mxu1 %vm217_vm14, %v4306_v10  ;;  %vm1312_vm3 = vcmp.eq.s32.totalorder %v4385_v23, 7  ;;  %vm1281_vm4 = vcmp.eq.s32.totalorder %v4388_v24, 7 }
  0x82   :  { %v1304_v31 = vpack.c.bf16 %v3983_v30, %v3981_v29  ;;  %v3989_v33 = vsel %vm1310_vm2, 1.0, %v4305_v7  ;;  %1340 = vmatprep.subr.bf16.mxu0 %v1337_v22  ;;  %1392 = vmatprep.subr.bf16.mxu1 %v1389_v25  ;;  %v1336_v34 = vadd.bf16 %v1329_v27, %v1301_v19  ;;  %v1388_v36 = vmul.bf16 %v1329_v27, %v1301_v19  ;;  %v4735_v27 = vld [vmem:[#allocation4 + $0x10] sm:$0xff] }
  0x83   :  { %v3991_v37 = vsel %vm1312_vm3, 1.0, %v4305_v7  ;;  %vm1283_vm5 = vcmp.eq.s32.totalorder %v4392_v28, 7  ;;  %v3980_v39 = vsel %vm1281_vm4, 1.0, %v4305_v7  ;;  %vm1309_vm6 = vcmp.eq.s32.totalorder %v4397_v32, 7  ;;  %1372 = vmatprep.mubr.bf16.mxu0 %v4304_v0  ;;  %1424 = vmatprep.mubr.bf16.mxu1 %v4304_v0 }
  0x84   :  { %v1332_v38 = vpack.c.bf16 %v3991_v37, %v3989_v33  ;;  %v3982_v40 = vsel %vm1283_vm5, 1.0, %v4305_v7  ;;  %1341 = vmatpush1.bf16.msra.mxu0 %v1336_v34  ;;  %1393 = vmatpush1.bf16.msra.mxu1 %v1388_v36  ;;  %vm1311_vm7 = vcmp.eq.s32.totalorder %v4401_v35, 7  ;;  %v3988_v42 = vsel %vm1309_vm6, 1.0, %v4305_v7  ;;  %v4740_v33 = vld [vmem:[#allocation6] sm:$0xff]  ;;  %v4743_v36 = vld [vmem:[#allocation6 + $0x10] sm:$0xff] }
  0x85   :  { %v1303_v41 = vpack.c.bf16 %v3982_v40, %v3980_v39  ;;  %vm1438_vm8 = vcmp.eq.s32.totalorder %v4348_v1, 8  ;;  %v3990_v45 = vsel %vm1311_vm7, 1.0, %v4305_v7  ;;  %vm1440_vm9 = vcmp.eq.s32.totalorder %v4350_v2, 8 }
  0x86   :  { %v1339_v43 = vadd.bf16 %v1332_v38, %v1304_v31  ;;  %v1391_v44 = vmul.bf16 %v1332_v38, %v1304_v31  ;;  %v1331_v46 = vpack.c.bf16 %v3990_v45, %v3988_v42  ;;  %v3995_v47 = vsel %vm1438_vm8, 1.0, %v4305_v7  ;;  %v4747_v38 = vld [vmem:[#allocation4 + $0x28] sm:$0xff]  ;;  %v4751_v42 = vld [vmem:[#allocation4 + $0x38] sm:$0xff] }
  0x87   :  { %v3997_v48 = vsel %vm1440_vm9, 1.0, %v4305_v7  ;;  %vm1466_vm10 = vcmp.eq.s32.totalorder %v4352_v3, 8  ;;  %vm1468_vm11 = vcmp.eq.s32.totalorder %v4354_v4, 8  ;;  %vm1437_vm12 = vcmp.eq.s32.totalorder %v4359_v5, 8 }
  0x88   :  { %1342 = vmatprep.subr.bf16.mxu0 %v1339_v43  ;;  %1394 = vmatprep.subr.bf16.mxu1 %v1391_v44  ;;  %v1462_v49 = vpack.c.bf16 %v3997_v48, %v3995_v47  ;;  %v4003_v1 = vsel %vm1466_vm10, 1.0, %v4305_v7  ;;  %v1338_v50 = vadd.bf16 %v1331_v46, %v1303_v41  ;;  %v1390_v51 = vmul.bf16 %v1331_v46, %v1303_v41  ;;  %v4756_v46 = vld [vmem:[#allocation6 + $0x28] sm:$0xff]  ;;  %v4763_v48 = vld [vmem:[#allocation6 + $0x38] sm:$0xff] }
  0x89   :  { %v4005_v2 = vsel %vm1468_vm11, 1.0, %v4305_v7  ;;  %vm1439_vm13 = vcmp.eq.s32.totalorder %v4361_v6, 8  ;;  %v3994_v53 = vsel %vm1437_vm12, 1.0, %v4305_v7  ;;  %vm1465_vm15 = vcmp.eq.s32.totalorder %v4367_v11, 8 }
  0x8a   :  { %v1490_v52 = vpack.c.bf16 %v4005_v2, %v4003_v1  ;;  %v3996_v3 = vsel %vm1439_vm13, 1.0, %v4305_v7  ;;  %1343 = vmatpush1.bf16.msra.mxu0 %v1338_v50  ;;  %1395 = vmatpush1.bf16.msra.mxu1 %v1390_v51  ;;  %vm1467_vm0 = vcmp.eq.s32.totalorder %v4369_v12, 8  ;;  %v4002_v5 = vsel %vm1465_vm15, 1.0, %v4305_v7  ;;  %v4767_v1 = vld [vmem:[#allocation4 + $0x20] sm:$0xff] }
  0x8b   :  { %v1461_v4 = vpack.c.bf16 %v3996_v3, %v3994_v53  ;;  %vm1442_vm1 = vcmp.eq.s32.totalorder %v4374_v15, 8  ;;  %v4004_v6 = vsel %vm1467_vm0, 1.0, %v4305_v7  ;;  %vm1444_vm2 = vcmp.eq.s32.totalorder %v4376_v16, 8 }
  0x8c   :  { %v1497_v54 = vadd.bf16 %v1490_v52, %v1462_v49  ;;  %v1549_v55 = vmul.bf16 %v1490_v52, %v1462_v49  ;;  %v1489_v56 = vpack.c.bf16 %v4004_v6, %v4002_v5  ;;  %v3999_v57 = vsel %vm1442_vm1, 1.0, %v4305_v7  ;;  %v4771_v52 = vld [vmem:[#allocation4 + $0x30] sm:$0xff]  ;;  %v4776_v5 = vld [vmem:[#allocation6 + $0x20] sm:$0xff] }
  0x8d   :  { %v4001_v11 = vsel %vm1444_vm2, 1.0, %v4305_v7  ;;  %vm1470_vm3 = vcmp.eq.s32.totalorder %v4381_v20, 8  ;;  %3992 = vmatmul.mubr.msk.bf16.vlgmr.msra.gmra.mrb[28].mxu0 %vm217_vm14, %v4306_v10  ;;  %3993 = vmatmul.mubr.msk.bf16.vlgmr.msra.gmra.mrb[28].mxu1 %vm217_vm14, %v4306_v10  ;;  %vm1472_vm4 = vcmp.eq.s32.totalorder %v4385_v23, 8  ;;  %vm1441_vm5 = vcmp.eq.s32.totalorder %v4388_v24, 8 }
  0x8e   :  { %v1464_v12 = vpack.c.bf16 %v4001_v11, %v3999_v57  ;;  %v4007_v15 = vsel %vm1470_vm3, 1.0, %v4305_v7  ;;  %1500 = vmatprep.subr.bf16.mxu0 %v1497_v54  ;;  %1552 = vmatprep.subr.bf16.mxu1 %v1549_v55  ;;  %v1496_v16 = vadd.bf16 %v1489_v56, %v1461_v4  ;;  %v1548_v58 = vmul.bf16 %v1489_v56, %v1461_v4  ;;  %v4781_v55 = vld [vmem:[#allocation6 + $0x30] sm:$0xff] }
  0x8f   :  { %v4009_v59 = vsel %vm1472_vm4, 1.0, %v4305_v7  ;;  %vm1443_vm6 = vcmp.eq.s32.totalorder %v4392_v28, 8  ;;  %v3998_v60 = vsel %vm1441_vm5, 1.0, %v4305_v7  ;;  %vm1469_vm7 = vcmp.eq.s32.totalorder %v4397_v32, 8  ;;  %1532 = vmatprep.mubr.bf16.mxu0 %v4304_v0  ;;  %1584 = vmatprep.mubr.bf16.mxu1 %v4304_v0  ;;  %v4719_v32 = vld [vmem:[#allocation4 + $0x18] sm:$0xff] }
  0x90   :  { %v1492_v20 = vpack.c.bf16 %v4009_v59, %v4007_v15  ;;  %v4000_v61 = vsel %vm1443_vm6, 1.0, %v4305_v7  ;;  %1501 = vmatpush1.bf16.msra.mxu0 %v1496_v16  ;;  %1553 = vmatpush1.bf16.msra.mxu1 %v1548_v58  ;;  %vm1471_vm8 = vcmp.eq.s32.totalorder %v4401_v35, 8  ;;  %v4006_v24 = vsel %vm1469_vm7, 1.0, %v4305_v7  ;;  %v4724_v35 = vld [vmem:[#allocation6 + $0x8] sm:$0xff] }
  0x91   :  { %v1463_v23 = vpack.c.bf16 %v4000_v61, %v3998_v60  ;;  %vm1598_vm9 = vcmp.eq.s32.totalorder %v4715_v62, 9  ;;  %v4008_v8 = vsel %vm1471_vm8, 1.0, %v4305_v7  ;;  %vm1600_vm10 = vcmp.eq.s32.totalorder %v4719_v32, 9 }
  0x92   :  { %v1499_v28 = vadd.bf16 %v1492_v20, %v1464_v12  ;;  %v1551_v63 = vmul.bf16 %v1492_v20, %v1464_v12  ;;  %v1491_v9 = vpack.c.bf16 %v4008_v8, %v4006_v24  ;;  %v4013_v13 = vsel %vm1598_vm9, 1.0, %v4305_v7 }
  0x93   :  { %v4015_v14 = vsel %vm1600_vm10, 1.0, %v4305_v7  ;;  %vm1626_vm11 = vcmp.eq.s32.totalorder %v4724_v35, 9  ;;  %vm1628_vm12 = vcmp.eq.s32.totalorder %v4727_v18, 9  ;;  %vm1597_vm13 = vcmp.eq.s32.totalorder %v4731_v21, 9 }
  0x94   :  { %1502 = vmatprep.subr.bf16.mxu0 %v1499_v28  ;;  %1554 = vmatprep.subr.bf16.mxu1 %v1551_v63  ;;  %v1622_v17 = vpack.c.bf16 %v4015_v14, %v4013_v13  ;;  %v4021_v19 = vsel %vm1626_vm11, 1.0, %v4305_v7  ;;  %v1498_v22 = vadd.bf16 %v1491_v9, %v1463_v23  ;;  %v1550_v25 = vmul.bf16 %v1491_v9, %v1463_v23 }
  0x95   :  { %v4023_v26 = vsel %vm1628_vm12, 1.0, %v4305_v7  ;;  %vm1599_vm15 = vcmp.eq.s32.totalorder %v4735_v27, 9  ;;  %v4012_v30 = vsel %vm1597_vm13, 1.0, %v4305_v7  ;;  %vm1625_vm0 = vcmp.eq.s32.totalorder %v4740_v33, 9 }
  0x96   :  { %v1650_v29 = vpack.c.bf16 %v4023_v26, %v4021_v19  ;;  %v4014_v31 = vsel %vm1599_vm15, 1.0, %v4305_v7  ;;  %1503 = vmatpush1.bf16.msra.mxu0 %v1498_v22  ;;  %1555 = vmatpush1.bf16.msra.mxu1 %v1550_v25  ;;  %vm1627_vm1 = vcmp.eq.s32.totalorder %v4743_v36, 9  ;;  %v4020_v37 = vsel %vm1625_vm0, 1.0, %v4305_v7 }
  0x97   :  { %v1621_v34 = vpack.c.bf16 %v4014_v31, %v4012_v30  ;;  %vm1602_vm2 = vcmp.eq.s32.totalorder %v4747_v38, 9  ;;  %v4022_v41 = vsel %vm1627_vm1, 1.0, %v4305_v7  ;;  %vm1604_vm3 = vcmp.eq.s32.totalorder %v4751_v42, 9 }
  0x98   :  { %v1657_v39 = vadd.bf16 %v1650_v29, %v1622_v17  ;;  %v1709_v40 = vmul.bf16 %v1650_v29, %v1622_v17  ;;  %v1649_v43 = vpack.c.bf16 %v4022_v41, %v4020_v37  ;;  %v4017_v44 = vsel %vm1602_vm2, 1.0, %v4305_v7 }
  0x99   :  { %v4019_v45 = vsel %vm1604_vm3, 1.0, %v4305_v7  ;;  %vm1630_vm4 = vcmp.eq.s32.totalorder %v4756_v46, 9  ;;  %4010 = vmatmul.mubr.msk.bf16.vlgmr.msra.gmra.mrb[32].mxu0 %vm217_vm14, %v4306_v10  ;;  %4011 = vmatmul.mubr.msk.bf16.vlgmr.msra.gmra.mrb[32].mxu1 %vm217_vm14, %v4306_v10  ;;  %vm1632_vm5 = vcmp.eq.s32.totalorder %v4763_v48, 9  ;;  %vm1601_vm6 = vcmp.eq.s32.totalorder %v4767_v1, 9 }
  0x9a   :  { %v1624_v47 = vpack.c.bf16 %v4019_v45, %v4017_v44  ;;  %v4025_v49 = vsel %vm1630_vm4, 1.0, %v4305_v7  ;;  %1660 = vmatprep.subr.bf16.mxu0 %v1657_v39  ;;  %1712 = vmatprep.subr.bf16.mxu1 %v1709_v40  ;;  %v1656_v50 = vadd.bf16 %v1649_v43, %v1621_v34  ;;  %v1708_v51 = vmul.bf16 %v1649_v43, %v1621_v34 }
  0x9b   :  { %v4027_v2 = vsel %vm1632_vm5, 1.0, %v4305_v7  ;;  %vm1603_vm7 = vcmp.eq.s32.totalorder %v4771_v52, 9  ;;  %v4016_v3 = vsel %vm1601_vm6, 1.0, %v4305_v7  ;;  %vm1629_vm8 = vcmp.eq.s32.totalorder %v4776_v5, 9  ;;  %1692 = vmatprep.mubr.bf16.mxu0 %v4304_v0  ;;  %1744 = vmatprep.mubr.bf16.mxu1 %v4304_v0 }
  0x9c   :  { %v1652_v53 = vpack.c.bf16 %v4027_v2, %v4025_v49  ;;  %v4018_v4 = vsel %vm1603_vm7, 1.0, %v4305_v7  ;;  %1661 = vmatpush1.bf16.msra.mxu0 %v1656_v50  ;;  %1713 = vmatpush1.bf16.msra.mxu1 %v1708_v51  ;;  %vm1631_vm9 = vcmp.eq.s32.totalorder %v4781_v55, 9  ;;  %v4024_v6 = vsel %vm1629_vm8, 1.0, %v4305_v7 }
  0x9d   :  { %v1623_v54 = vpack.c.bf16 %v4018_v4, %v4016_v3  ;;  %vm1758_vm10 = vcmp.eq.s32.totalorder %v4715_v62, 10  ;;  %v4026_v11 = vsel %vm1631_vm9, 1.0, %v4305_v7  ;;  %vm1760_vm11 = vcmp.eq.s32.totalorder %v4719_v32, 10 }
  0x9e   :  { %v1659_v56 = vadd.bf16 %v1652_v53, %v1624_v47  ;;  %v1711_v57 = vmul.bf16 %v1652_v53, %v1624_v47  ;;  %v1651_v12 = vpack.c.bf16 %v4026_v11, %v4024_v6  ;;  %v4031_v15 = vsel %vm1758_vm10, 1.0, %v4305_v7 }
  0x9f   :  { %v4033_v16 = vsel %vm1760_vm11, 1.0, %v4305_v7  ;;  %vm1786_vm12 = vcmp.eq.s32.totalorder %v4724_v35, 10  ;;  %vm1788_vm13 = vcmp.eq.s32.totalorder %v4727_v18, 10  ;;  %vm1757_vm15 = vcmp.eq.s32.totalorder %v4731_v21, 10 }
  0xa0   :  { %1662 = vmatprep.subr.bf16.mxu0 %v1659_v56  ;;  %1714 = vmatprep.subr.bf16.mxu1 %v1711_v57  ;;  %v1782_v58 = vpack.c.bf16 %v4033_v16, %v4031_v15  ;;  %v4039_v59 = vsel %vm1786_vm12, 1.0, %v4305_v7  ;;  %v1658_v20 = vadd.bf16 %v1651_v12, %v1623_v54  ;;  %v1710_v60 = vmul.bf16 %v1651_v12, %v1623_v54 }
  0xa1   :  { %v4041_v61 = vsel %vm1788_vm13, 1.0, %v4305_v7  ;;  %vm1759_vm0 = vcmp.eq.s32.totalorder %v4735_v27, 10  ;;  %v4030_v24 = vsel %vm1757_vm15, 1.0, %v4305_v7  ;;  %vm1785_vm1 = vcmp.eq.s32.totalorder %v4740_v33, 10 }
  0xa2   :  { %v1810_v23 = vpack.c.bf16 %v4041_v61, %v4039_v59  ;;  %v4032_v28 = vsel %vm1759_vm0, 1.0, %v4305_v7  ;;  %1663 = vmatpush1.bf16.msra.mxu0 %v1658_v20  ;;  %1715 = vmatpush1.bf16.msra.mxu1 %v1710_v60  ;;  %vm1787_vm2 = vcmp.eq.s32.totalorder %v4743_v36, 10  ;;  %v4038_v8 = vsel %vm1785_vm1, 1.0, %v4305_v7 }
  0xa3   :  { %v1781_v63 = vpack.c.bf16 %v4032_v28, %v4030_v24  ;;  %vm1762_vm3 = vcmp.eq.s32.totalorder %v4747_v38, 10  ;;  %v4040_v14 = vsel %vm1787_vm2, 1.0, %v4305_v7  ;;  %vm1764_vm4 = vcmp.eq.s32.totalorder %v4751_v42, 10 }
  0xa4   :  { %v1817_v9 = vadd.bf16 %v1810_v23, %v1782_v58  ;;  %v1869_v13 = vmul.bf16 %v1810_v23, %v1782_v58  ;;  %v1809_v17 = vpack.c.bf16 %v4040_v14, %v4038_v8  ;;  %v4035_v19 = vsel %vm1762_vm3, 1.0, %v4305_v7 }
  0xa5   :  { %v4037_v22 = vsel %vm1764_vm4, 1.0, %v4305_v7  ;;  %vm1790_vm5 = vcmp.eq.s32.totalorder %v4756_v46, 10  ;;  %4028 = vmatmul.mubr.msk.bf16.vlgmr.msra.gmra.mrb[36].mxu0 %vm217_vm14, %v4306_v10  ;;  %4029 = vmatmul.mubr.msk.bf16.vlgmr.msra.gmra.mrb[36].mxu1 %vm217_vm14, %v4306_v10  ;;  %vm1792_vm6 = vcmp.eq.s32.totalorder %v4763_v48, 10  ;;  %vm1761_vm7 = vcmp.eq.s32.totalorder %v4767_v1, 10 }
  0xa6   :  { %v1784_v25 = vpack.c.bf16 %v4037_v22, %v4035_v19  ;;  %v4043_v26 = vsel %vm1790_vm5, 1.0, %v4305_v7  ;;  %1820 = vmatprep.subr.bf16.mxu0 %v1817_v9  ;;  %1872 = vmatprep.subr.bf16.mxu1 %v1869_v13  ;;  %v1816_v29 = vadd.bf16 %v1809_v17, %v1781_v63  ;;  %v1868_v30 = vmul.bf16 %v1809_v17, %v1781_v63 }
  0xa7   :  { %v4045_v31 = vsel %vm1792_vm6, 1.0, %v4305_v7  ;;  %vm1763_vm8 = vcmp.eq.s32.totalorder %v4771_v52, 10  ;;  %v4034_v37 = vsel %vm1761_vm7, 1.0, %v4305_v7  ;;  %vm1789_vm9 = vcmp.eq.s32.totalorder %v4776_v5, 10  ;;  %1852 = vmatprep.mubr.bf16.mxu0 %v4304_v0  ;;  %1904 = vmatprep.mubr.bf16.mxu1 %v4304_v0 }
  0xa8   :  { %v1812_v34 = vpack.c.bf16 %v4045_v31, %v4043_v26  ;;  %v4036_v39 = vsel %vm1763_vm8, 1.0, %v4305_v7  ;;  %1821 = vmatpush1.bf16.msra.mxu0 %v1816_v29  ;;  %1873 = vmatpush1.bf16.msra.mxu1 %v1868_v30  ;;  %vm1791_vm10 = vcmp.eq.s32.totalorder %v4781_v55, 10  ;;  %v4042_v41 = vsel %vm1789_vm9, 1.0, %v4305_v7 }
  0xa9   :  { %v1783_v40 = vpack.c.bf16 %v4036_v39, %v4034_v37  ;;  %vm1918_vm11 = vcmp.eq.s32.totalorder %v4715_v62, 11  ;;  %v4044_v45 = vsel %vm1791_vm10, 1.0, %v4305_v7  ;;  %vm1920_vm12 = vcmp.eq.s32.totalorder %v4719_v32, 11 }
  0xaa   :  { %v1819_v43 = vadd.bf16 %v1812_v34, %v1784_v25  ;;  %v1871_v44 = vmul.bf16 %v1812_v34, %v1784_v25  ;;  %v1811_v47 = vpack.c.bf16 %v4044_v45, %v4042_v41  ;;  %v4049_v49 = vsel %vm1918_vm11, 1.0, %v4305_v7 }
  0xab   :  { %v4051_v50 = vsel %vm1920_vm12, 1.0, %v4305_v7  ;;  %vm1946_vm13 = vcmp.eq.s32.totalorder %v4724_v35, 11  ;;  %vm1948_vm15 = vcmp.eq.s32.totalorder %v4727_v18, 11  ;;  %vm1917_vm0 = vcmp.eq.s32.totalorder %v4731_v21, 11 }
  0xac   :  { %1822 = vmatprep.subr.bf16.mxu0 %v1819_v43  ;;  %1874 = vmatprep.subr.bf16.mxu1 %v1871_v44  ;;  %v1942_v51 = vpack.c.bf16 %v4051_v50, %v4049_v49  ;;  %v4057_v2 = vsel %vm1946_vm13, 1.0, %v4305_v7  ;;  %v1818_v53 = vadd.bf16 %v1811_v47, %v1783_v40  ;;  %v1870_v3 = vmul.bf16 %v1811_v47, %v1783_v40 }
  0xad   :  { %v4059_v4 = vsel %vm1948_vm15, 1.0, %v4305_v7  ;;  %vm1919_vm1 = vcmp.eq.s32.totalorder %v4735_v27, 11  ;;  %v4048_v6 = vsel %vm1917_vm0, 1.0, %v4305_v7  ;;  %vm1945_vm2 = vcmp.eq.s32.totalorder %v4740_v33, 11 }
  0xae   :  { %v1970_v54 = vpack.c.bf16 %v4059_v4, %v4057_v2  ;;  %v4050_v56 = vsel %vm1919_vm1, 1.0, %v4305_v7  ;;  %1823 = vmatpush1.bf16.msra.mxu0 %v1818_v53  ;;  %1875 = vmatpush1.bf16.msra.mxu1 %v1870_v3  ;;  %vm1947_vm3 = vcmp.eq.s32.totalorder %v4743_v36, 11  ;;  %v4056_v11 = vsel %vm1945_vm2, 1.0, %v4305_v7 }
  0xaf   :  { %v1941_v57 = vpack.c.bf16 %v4050_v56, %v4048_v6  ;;  %vm1922_vm4 = vcmp.eq.s32.totalorder %v4747_v38, 11  ;;  %v4058_v16 = vsel %vm1947_vm3, 1.0, %v4305_v7  ;;  %vm1924_vm5 = vcmp.eq.s32.totalorder %v4751_v42, 11 }
  0xb0   :  { %v1977_v12 = vadd.bf16 %v1970_v54, %v1942_v51  ;;  %v2029_v15 = vmul.bf16 %v1970_v54, %v1942_v51  ;;  %v1969_v58 = vpack.c.bf16 %v4058_v16, %v4056_v11  ;;  %v4053_v59 = vsel %vm1922_vm4, 1.0, %v4305_v7 }
  0xb1   :  { %v4055_v20 = vsel %vm1924_vm5, 1.0, %v4305_v7  ;;  %vm1950_vm6 = vcmp.eq.s32.totalorder %v4756_v46, 11  ;;  %4046 = vmatmul.mubr.msk.bf16.vlgmr.msra.gmra.mrb[40].mxu0 %vm217_vm14, %v4306_v10  ;;  %4047 = vmatmul.mubr.msk.bf16.vlgmr.msra.gmra.mrb[40].mxu1 %vm217_vm14, %v4306_v10  ;;  %vm1952_vm7 = vcmp.eq.s32.totalorder %v4763_v48, 11  ;;  %vm1921_vm8 = vcmp.eq.s32.totalorder %v4767_v1, 11 }
  0xb2   :  { %v1944_v60 = vpack.c.bf16 %v4055_v20, %v4053_v59  ;;  %v4061_v61 = vsel %vm1950_vm6, 1.0, %v4305_v7  ;;  %1980 = vmatprep.subr.bf16.mxu0 %v1977_v12  ;;  %2032 = vmatprep.subr.bf16.mxu1 %v2029_v15  ;;  %v1976_v23 = vadd.bf16 %v1969_v58, %v1941_v57  ;;  %v2028_v24 = vmul.bf16 %v1969_v58, %v1941_v57 }
  0xb3   :  { %v4063_v28 = vsel %vm1952_vm7, 1.0, %v4305_v7  ;;  %vm1923_vm9 = vcmp.eq.s32.totalorder %v4771_v52, 11  ;;  %v4052_v8 = vsel %vm1921_vm8, 1.0, %v4305_v7  ;;  %vm1949_vm10 = vcmp.eq.s32.totalorder %v4776_v5, 11  ;;  %2012 = vmatprep.mubr.bf16.mxu0 %v4304_v0  ;;  %2064 = vmatprep.mubr.bf16.mxu1 %v4304_v0 }
  0xb4   :  { %v1972_v63 = vpack.c.bf16 %v4063_v28, %v4061_v61  ;;  %v4054_v9 = vsel %vm1923_vm9, 1.0, %v4305_v7  ;;  %1981 = vmatpush1.bf16.msra.mxu0 %v1976_v23  ;;  %2033 = vmatpush1.bf16.msra.mxu1 %v2028_v24  ;;  %vm1951_vm11 = vcmp.eq.s32.totalorder %v4781_v55, 11  ;;  %v4060_v14 = vsel %vm1949_vm10, 1.0, %v4305_v7 }
  0xb5   :  { %v1943_v13 = vpack.c.bf16 %v4054_v9, %v4052_v8  ;;  %vm2078_vm12 = vcmp.eq.s32.totalorder %v4715_v62, 12  ;;  %v4062_v22 = vsel %vm1951_vm11, 1.0, %v4305_v7  ;;  %vm2080_vm13 = vcmp.eq.s32.totalorder %v4719_v32, 12 }
  0xb6   :  { %v1979_v17 = vadd.bf16 %v1972_v63, %v1944_v60  ;;  %v2031_v19 = vmul.bf16 %v1972_v63, %v1944_v60  ;;  %v1971_v25 = vpack.c.bf16 %v4062_v22, %v4060_v14  ;;  %v4067_v26 = vsel %vm2078_vm12, 1.0, %v4305_v7 }
  0xb7   :  { %v4069_v29 = vsel %vm2080_vm13, 1.0, %v4305_v7  ;;  %vm2106_vm15 = vcmp.eq.s32.totalorder %v4724_v35, 12  ;;  %vm2108_vm0 = vcmp.eq.s32.totalorder %v4727_v18, 12  ;;  %vm2077_vm1 = vcmp.eq.s32.totalorder %v4731_v21, 12 }
  0xb8   :  { %1982 = vmatprep.subr.bf16.mxu0 %v1979_v17  ;;  %2034 = vmatprep.subr.bf16.mxu1 %v2031_v19  ;;  %v2102_v30 = vpack.c.bf16 %v4069_v29, %v4067_v26  ;;  %v4075_v31 = vsel %vm2106_vm15, 1.0, %v4305_v7  ;;  %v1978_v34 = vadd.bf16 %v1971_v25, %v1943_v13  ;;  %v2030_v37 = vmul.bf16 %v1971_v25, %v1943_v13 }
  0xb9   :  { %v4077_v39 = vsel %vm2108_vm0, 1.0, %v4305_v7  ;;  %vm2079_vm2 = vcmp.eq.s32.totalorder %v4735_v27, 12  ;;  %v4066_v41 = vsel %vm2077_vm1, 1.0, %v4305_v7  ;;  %vm2105_vm3 = vcmp.eq.s32.totalorder %v4740_v33, 12 }
  0xba   :  { %v2130_v40 = vpack.c.bf16 %v4077_v39, %v4075_v31  ;;  %v4068_v43 = vsel %vm2079_vm2, 1.0, %v4305_v7  ;;  %1983 = vmatpush1.bf16.msra.mxu0 %v1978_v34  ;;  %2035 = vmatpush1.bf16.msra.mxu1 %v2030_v37  ;;  %vm2107_vm4 = vcmp.eq.s32.totalorder %v4743_v36, 12  ;;  %v4074_v45 = vsel %vm2105_vm3, 1.0, %v4305_v7 }
  0xbb   :  { %v2101_v44 = vpack.c.bf16 %v4068_v43, %v4066_v41  ;;  %vm2082_vm5 = vcmp.eq.s32.totalorder %v4747_v38, 12  ;;  %v4076_v50 = vsel %vm2107_vm4, 1.0, %v4305_v7  ;;  %vm2084_vm6 = vcmp.eq.s32.totalorder %v4751_v42, 12 }
  0xbc   :  { %v2137_v47 = vadd.bf16 %v2130_v40, %v2102_v30  ;;  %v2189_v49 = vmul.bf16 %v2130_v40, %v2102_v30  ;;  %v2129_v51 = vpack.c.bf16 %v4076_v50, %v4074_v45  ;;  %v4071_v2 = vsel %vm2082_vm5, 1.0, %v4305_v7 }
  0xbd   :  { %v4073_v53 = vsel %vm2084_vm6, 1.0, %v4305_v7  ;;  %vm2110_vm7 = vcmp.eq.s32.totalorder %v4756_v46, 12  ;;  %4064 = vmatmul.mubr.msk.bf16.vlgmr.msra.gmra.mrb[44].mxu0 %vm217_vm14, %v4306_v10  ;;  %4065 = vmatmul.mubr.msk.bf16.vlgmr.msra.gmra.mrb[44].mxu1 %vm217_vm14, %v4306_v10  ;;  %vm2112_vm8 = vcmp.eq.s32.totalorder %v4763_v48, 12  ;;  %vm2081_vm9 = vcmp.eq.s32.totalorder %v4767_v1, 12 }
  0xbe   :  { %v2104_v3 = vpack.c.bf16 %v4073_v53, %v4071_v2  ;;  %v4079_v4 = vsel %vm2110_vm7, 1.0, %v4305_v7  ;;  %2140 = vmatprep.subr.bf16.mxu0 %v2137_v47  ;;  %2192 = vmatprep.subr.bf16.mxu1 %v2189_v49  ;;  %v2136_v54 = vadd.bf16 %v2129_v51, %v2101_v44  ;;  %v2188_v6 = vmul.bf16 %v2129_v51, %v2101_v44 }
  0xbf   :  { %v4081_v56 = vsel %vm2112_vm8, 1.0, %v4305_v7  ;;  %vm2083_vm10 = vcmp.eq.s32.totalorder %v4771_v52, 12  ;;  %v4070_v11 = vsel %vm2081_vm9, 1.0, %v4305_v7  ;;  %vm2109_vm11 = vcmp.eq.s32.totalorder %v4776_v5, 12  ;;  %2172 = vmatprep.mubr.bf16.mxu0 %v4304_v0  ;;  %2224 = vmatprep.mubr.bf16.mxu1 %v4304_v0 }
  0xc0   :  { %v2132_v57 = vpack.c.bf16 %v4081_v56, %v4079_v4  ;;  %v4072_v12 = vsel %vm2083_vm10, 1.0, %v4305_v7  ;;  %2141 = vmatpush1.bf16.msra.mxu0 %v2136_v54  ;;  %2193 = vmatpush1.bf16.msra.mxu1 %v2188_v6  ;;  %vm2111_vm12 = vcmp.eq.s32.totalorder %v4781_v55, 12  ;;  %v4078_v16 = vsel %vm2109_vm11, 1.0, %v4305_v7 }
  0xc1   :  { %v2103_v15 = vpack.c.bf16 %v4072_v12, %v4070_v11  ;;  %vm2238_vm13 = vcmp.eq.s32.totalorder %v4715_v62, 13  ;;  %v4080_v20 = vsel %vm2111_vm12, 1.0, %v4305_v7  ;;  %vm2240_vm15 = vcmp.eq.s32.totalorder %v4719_v32, 13 }
  0xc2   :  { %v2139_v58 = vadd.bf16 %v2132_v57, %v2104_v3  ;;  %v2191_v59 = vmul.bf16 %v2132_v57, %v2104_v3  ;;  %v2131_v60 = vpack.c.bf16 %v4080_v20, %v4078_v16  ;;  %v4085_v61 = vsel %vm2238_vm13, 1.0, %v4305_v7 }
  0xc3   :  { %v4087_v23 = vsel %vm2240_vm15, 1.0, %v4305_v7  ;;  %vm2266_vm0 = vcmp.eq.s32.totalorder %v4724_v35, 13  ;;  %vm2268_vm1 = vcmp.eq.s32.totalorder %v4727_v18, 13  ;;  %vm2237_vm2 = vcmp.eq.s32.totalorder %v4731_v21, 13 }
  0xc4   :  { %2142 = vmatprep.subr.bf16.mxu0 %v2139_v58  ;;  %2194 = vmatprep.subr.bf16.mxu1 %v2191_v59  ;;  %v2262_v24 = vpack.c.bf16 %v4087_v23, %v4085_v61  ;;  %v4093_v28 = vsel %vm2266_vm0, 1.0, %v4305_v7  ;;  %v2138_v63 = vadd.bf16 %v2131_v60, %v2103_v15  ;;  %v2190_v8 = vmul.bf16 %v2131_v60, %v2103_v15 }
  0xc5   :  { %v4095_v9 = vsel %vm2268_vm1, 1.0, %v4305_v7  ;;  %vm2239_vm3 = vcmp.eq.s32.totalorder %v4735_v27, 13  ;;  %v4084_v14 = vsel %vm2237_vm2, 1.0, %v4305_v7  ;;  %vm2265_vm4 = vcmp.eq.s32.totalorder %v4740_v33, 13 }
  0xc6   :  { %v2290_v13 = vpack.c.bf16 %v4095_v9, %v4093_v28  ;;  %v4086_v17 = vsel %vm2239_vm3, 1.0, %v4305_v7  ;;  %2143 = vmatpush1.bf16.msra.mxu0 %v2138_v63  ;;  %2195 = vmatpush1.bf16.msra.mxu1 %v2190_v8  ;;  %vm2267_vm5 = vcmp.eq.s32.totalorder %v4743_v36, 13  ;;  %v4092_v22 = vsel %vm2265_vm4, 1.0, %v4305_v7 }
  0xc7   :  { %v2261_v19 = vpack.c.bf16 %v4086_v17, %v4084_v14  ;;  %vm2242_vm6 = vcmp.eq.s32.totalorder %v4747_v38, 13  ;;  %v4094_v29 = vsel %vm2267_vm5, 1.0, %v4305_v7  ;;  %vm2244_vm7 = vcmp.eq.s32.totalorder %v4751_v42, 13 }
  0xc8   :  { %v2297_v25 = vadd.bf16 %v2290_v13, %v2262_v24  ;;  %v2349_v26 = vmul.bf16 %v2290_v13, %v2262_v24  ;;  %v2289_v30 = vpack.c.bf16 %v4094_v29, %v4092_v22  ;;  %v4089_v31 = vsel %vm2242_vm6, 1.0, %v4305_v7 }
  0xc9   :  { %v4091_v34 = vsel %vm2244_vm7, 1.0, %v4305_v7  ;;  %vm2270_vm8 = vcmp.eq.s32.totalorder %v4756_v46, 13  ;;  %4082 = vmatmul.mubr.msk.bf16.vlgmr.msra.gmra.mrb[48].mxu0 %vm217_vm14, %v4306_v10  ;;  %4083 = vmatmul.mubr.msk.bf16.vlgmr.msra.gmra.mrb[48].mxu1 %vm217_vm14, %v4306_v10  ;;  %vm2272_vm9 = vcmp.eq.s32.totalorder %v4763_v48, 13  ;;  %vm2241_vm10 = vcmp.eq.s32.totalorder %v4767_v1, 13 }
  0xca   :  { %v2264_v37 = vpack.c.bf16 %v4091_v34, %v4089_v31  ;;  %v4097_v39 = vsel %vm2270_vm8, 1.0, %v4305_v7  ;;  %2300 = vmatprep.subr.bf16.mxu0 %v2297_v25  ;;  %2352 = vmatprep.subr.bf16.mxu1 %v2349_v26  ;;  %v2296_v40 = vadd.bf16 %v2289_v30, %v2261_v19  ;;  %v2348_v41 = vmul.bf16 %v2289_v30, %v2261_v19 }
  0xcb   :  { %v4099_v43 = vsel %vm2272_vm9, 1.0, %v4305_v7  ;;  %vm2243_vm11 = vcmp.eq.s32.totalorder %v4771_v52, 13  ;;  %v4088_v45 = vsel %vm2241_vm10, 1.0, %v4305_v7  ;;  %vm2269_vm12 = vcmp.eq.s32.totalorder %v4776_v5, 13  ;;  %2332 = vmatprep.mubr.bf16.mxu0 %v4304_v0  ;;  %2384 = vmatprep.mubr.bf16.mxu1 %v4304_v0 }
  0xcc   :  { %v2292_v44 = vpack.c.bf16 %v4099_v43, %v4097_v39  ;;  %v4090_v47 = vsel %vm2243_vm11, 1.0, %v4305_v7  ;;  %2301 = vmatpush1.bf16.msra.mxu0 %v2296_v40  ;;  %2353 = vmatpush1.bf16.msra.mxu1 %v2348_v41  ;;  %vm2271_vm13 = vcmp.eq.s32.totalorder %v4781_v55, 13  ;;  %v4096_v50 = vsel %vm2269_vm12, 1.0, %v4305_v7 }
  0xcd   :  { %v2263_v49 = vpack.c.bf16 %v4090_v47, %v4088_v45  ;;  %vm2398_vm15 = vcmp.eq.s32.totalorder %v4715_v62, 14  ;;  %v4098_v53 = vsel %vm2271_vm13, 1.0, %v4305_v7  ;;  %vm2400_vm0 = vcmp.eq.s32.totalorder %v4719_v32, 14 }
  0xce   :  { %v2299_v51 = vadd.bf16 %v2292_v44, %v2264_v37  ;;  %v2351_v2 = vmul.bf16 %v2292_v44, %v2264_v37  ;;  %v2291_v3 = vpack.c.bf16 %v4098_v53, %v4096_v50  ;;  %v4103_v4 = vsel %vm2398_vm15, 1.0, %v4305_v7 }
  0xcf   :  { %v4105_v54 = vsel %vm2400_vm0, 1.0, %v4305_v7  ;;  %vm2426_vm1 = vcmp.eq.s32.totalorder %v4724_v35, 14  ;;  %vm2428_vm2 = vcmp.eq.s32.totalorder %v4727_v18, 14  ;;  %vm2397_vm3 = vcmp.eq.s32.totalorder %v4731_v21, 14 }
  0xd0   :  { %2302 = vmatprep.subr.bf16.mxu0 %v2299_v51  ;;  %2354 = vmatprep.subr.bf16.mxu1 %v2351_v2  ;;  %v2422_v6 = vpack.c.bf16 %v4105_v54, %v4103_v4  ;;  %v4111_v56 = vsel %vm2426_vm1, 1.0, %v4305_v7  ;;  %v2298_v57 = vadd.bf16 %v2291_v3, %v2263_v49  ;;  %v2350_v11 = vmul.bf16 %v2291_v3, %v2263_v49 }
  0xd1   :  { %v4113_v12 = vsel %vm2428_vm2, 1.0, %v4305_v7  ;;  %vm2399_vm4 = vcmp.eq.s32.totalorder %v4735_v27, 14  ;;  %v4102_v16 = vsel %vm2397_vm3, 1.0, %v4305_v7  ;;  %vm2425_vm5 = vcmp.eq.s32.totalorder %v4740_v33, 14 }
  0xd2   :  { %v2450_v15 = vpack.c.bf16 %v4113_v12, %v4111_v56  ;;  %v4104_v58 = vsel %vm2399_vm4, 1.0, %v4305_v7  ;;  %2303 = vmatpush1.bf16.msra.mxu0 %v2298_v57  ;;  %2355 = vmatpush1.bf16.msra.mxu1 %v2350_v11  ;;  %vm2427_vm6 = vcmp.eq.s32.totalorder %v4743_v36, 14  ;;  %v4110_v20 = vsel %vm2425_vm5, 1.0, %v4305_v7 }
  0xd3   :  { %v2421_v59 = vpack.c.bf16 %v4104_v58, %v4102_v16  ;;  %vm2402_vm7 = vcmp.eq.s32.totalorder %v4747_v38, 14  ;;  %v4112_v23 = vsel %vm2427_vm6, 1.0, %v4305_v7  ;;  %vm2404_vm8 = vcmp.eq.s32.totalorder %v4751_v42, 14 }
  0xd4   :  { %v2457_v60 = vadd.bf16 %v2450_v15, %v2422_v6  ;;  %v2509_v61 = vmul.bf16 %v2450_v15, %v2422_v6  ;;  %v2449_v24 = vpack.c.bf16 %v4112_v23, %v4110_v20  ;;  %v4107_v28 = vsel %vm2402_vm7, 1.0, %v4305_v7 }
  0xd5   :  { %v4109_v63 = vsel %vm2404_vm8, 1.0, %v4305_v7  ;;  %vm2430_vm9 = vcmp.eq.s32.totalorder %v4756_v46, 14  ;;  %4100 = vmatmul.mubr.msk.bf16.vlgmr.msra.gmra.mrb[52].mxu0 %vm217_vm14, %v4306_v10  ;;  %4101 = vmatmul.mubr.msk.bf16.vlgmr.msra.gmra.mrb[52].mxu1 %vm217_vm14, %v4306_v10  ;;  %vm2432_vm10 = vcmp.eq.s32.totalorder %v4763_v48, 14  ;;  %vm2401_vm11 = vcmp.eq.s32.totalorder %v4767_v1, 14 }
  0xd6   :  { %v2424_v8 = vpack.c.bf16 %v4109_v63, %v4107_v28  ;;  %v4115_v9 = vsel %vm2430_vm9, 1.0, %v4305_v7  ;;  %2460 = vmatprep.subr.bf16.mxu0 %v2457_v60  ;;  %2512 = vmatprep.subr.bf16.mxu1 %v2509_v61  ;;  %v2456_v13 = vadd.bf16 %v2449_v24, %v2421_v59  ;;  %v2508_v14 = vmul.bf16 %v2449_v24, %v2421_v59 }
  0xd7   :  { %v4117_v17 = vsel %vm2432_vm10, 1.0, %v4305_v7  ;;  %vm2403_vm12 = vcmp.eq.s32.totalorder %v4771_v52, 14  ;;  %v4106_v22 = vsel %vm2401_vm11, 1.0, %v4305_v7  ;;  %vm2429_vm13 = vcmp.eq.s32.totalorder %v4776_v5, 14  ;;  %2492 = vmatprep.mubr.bf16.mxu0 %v4304_v0  ;;  %2544 = vmatprep.mubr.bf16.mxu1 %v4304_v0 }
  0xd8   :  { %v2452_v19 = vpack.c.bf16 %v4117_v17, %v4115_v9  ;;  %v4108_v25 = vsel %vm2403_vm12, 1.0, %v4305_v7  ;;  %2461 = vmatpush1.bf16.msra.mxu0 %v2456_v13  ;;  %2513 = vmatpush1.bf16.msra.mxu1 %v2508_v14  ;;  %vm2431_vm15 = vcmp.eq.s32.totalorder %v4781_v55, 14  ;;  %v4114_v29 = vsel %vm2429_vm13, 1.0, %v4305_v7 }
  0xd9   :  { %v2423_v26 = vpack.c.bf16 %v4108_v25, %v4106_v22  ;;  %vm2558_vm0 = vcmp.eq.s32.totalorder %v4715_v62, 15  ;;  %v4116_v34 = vsel %vm2431_vm15, 1.0, %v4305_v7  ;;  %vm2560_vm1 = vcmp.eq.s32.totalorder %v4719_v32, 15 }
  0xda   :  { %v2459_v30 = vadd.bf16 %v2452_v19, %v2424_v8  ;;  %v2511_v31 = vmul.bf16 %v2452_v19, %v2424_v8  ;;  %v2451_v37 = vpack.c.bf16 %v4116_v34, %v4114_v29  ;;  %v4121_v39 = vsel %vm2558_vm0, 1.0, %v4305_v7 }
  0xdb   :  { %v4123_v40 = vsel %vm2560_vm1, 1.0, %v4305_v7  ;;  %vm2586_vm2 = vcmp.eq.s32.totalorder %v4724_v35, 15  ;;  %vm2588_vm3 = vcmp.eq.s32.totalorder %v4727_v18, 15  ;;  %vm2557_vm4 = vcmp.eq.s32.totalorder %v4731_v21, 15 }
  0xdc   :  { %2462 = vmatprep.subr.bf16.mxu0 %v2459_v30  ;;  %2514 = vmatprep.subr.bf16.mxu1 %v2511_v31  ;;  %v2582_v41 = vpack.c.bf16 %v4123_v40, %v4121_v39  ;;  %v4129_v43 = vsel %vm2586_vm2, 1.0, %v4305_v7  ;;  %v2458_v44 = vadd.bf16 %v2451_v37, %v2423_v26  ;;  %v2510_v45 = vmul.bf16 %v2451_v37, %v2423_v26 }
  0xdd   :  { %v4131_v47 = vsel %vm2588_vm3, 1.0, %v4305_v7  ;;  %vm2559_vm5 = vcmp.eq.s32.totalorder %v4735_v27, 15  ;;  %v4120_v50 = vsel %vm2557_vm4, 1.0, %v4305_v7  ;;  %vm2585_vm6 = vcmp.eq.s32.totalorder %v4740_v33, 15 }
  0xde   :  { %v2610_v49 = vpack.c.bf16 %v4131_v47, %v4129_v43  ;;  %v4122_v51 = vsel %vm2559_vm5, 1.0, %v4305_v7  ;;  %2463 = vmatpush1.bf16.msra.mxu0 %v2458_v44  ;;  %2515 = vmatpush1.bf16.msra.mxu1 %v2510_v45  ;;  %vm2587_vm7 = vcmp.eq.s32.totalorder %v4743_v36, 15  ;;  %v4128_v53 = vsel %vm2585_vm6, 1.0, %v4305_v7 }
  0xdf   :  { %v2581_v2 = vpack.c.bf16 %v4122_v51, %v4120_v50  ;;  %vm2562_vm8 = vcmp.eq.s32.totalorder %v4747_v38, 15  ;;  %v4130_v54 = vsel %vm2587_vm7, 1.0, %v4305_v7  ;;  %vm2564_vm9 = vcmp.eq.s32.totalorder %v4751_v42, 15 }
  0xe0   :  { %v2617_v3 = vadd.bf16 %v2610_v49, %v2582_v41  ;;  %v2669_v4 = vmul.bf16 %v2610_v49, %v2582_v41  ;;  %v2609_v6 = vpack.c.bf16 %v4130_v54, %v4128_v53  ;;  %v4125_v56 = vsel %vm2562_vm8, 1.0, %v4305_v7 }
  0xe1   :  { %v4127_v57 = vsel %vm2564_vm9, 1.0, %v4305_v7  ;;  %vm2590_vm10 = vcmp.eq.s32.totalorder %v4756_v46, 15  ;;  %4118 = vmatmul.mubr.msk.bf16.vlgmr.msra.gmra.mrb[56].mxu0 %vm217_vm14, %v4306_v10  ;;  %4119 = vmatmul.mubr.msk.bf16.vlgmr.msra.gmra.mrb[56].mxu1 %vm217_vm14, %v4306_v10  ;;  %vm2592_vm11 = vcmp.eq.s32.totalorder %v4763_v48, 15  ;;  %vm2561_vm12 = vcmp.eq.s32.totalorder %v4767_v1, 15 }
  0xe2   :  { %v2584_v11 = vpack.c.bf16 %v4127_v57, %v4125_v56  ;;  %v4133_v12 = vsel %vm2590_vm10, 1.0, %v4305_v7  ;;  %2620 = vmatprep.subr.bf16.mxu0 %v2617_v3  ;;  %2672 = vmatprep.subr.bf16.mxu1 %v2669_v4  ;;  %v2616_v15 = vadd.bf16 %v2609_v6, %v2581_v2  ;;  %v2668_v16 = vmul.bf16 %v2609_v6, %v2581_v2 }
  0xe3   :  { %v4135_v58 = vsel %vm2592_vm11, 1.0, %v4305_v7  ;;  %vm2563_vm13 = vcmp.eq.s32.totalorder %v4771_v52, 15  ;;  %v4124_v20 = vsel %vm2561_vm12, 1.0, %v4305_v7  ;;  %vm2589_vm15 = vcmp.eq.s32.totalorder %v4776_v5, 15  ;;  %2652 = vmatprep.mubr.bf16.mxu0 %v4304_v0  ;;  %2704 = vmatprep.mubr.bf16.mxu1 %v4304_v0 }
  0xe4   :  { %v2612_v59 = vpack.c.bf16 %v4135_v58, %v4133_v12  ;;  %v4126_v60 = vsel %vm2563_vm13, 1.0, %v4305_v7  ;;  %2621 = vmatpush1.bf16.msra.mxu0 %v2616_v15  ;;  %2673 = vmatpush1.bf16.msra.mxu1 %v2668_v16  ;;  %vm2591_vm0 = vcmp.eq.s32.totalorder %v4781_v55, 15  ;;  %v4132_v23 = vsel %vm2589_vm15, 1.0, %v4305_v7 }
  0xe5   :  { %v2583_v61 = vpack.c.bf16 %v4126_v60, %v4124_v20  ;;  %vm2718_vm1 = vcmp.eq.s32.totalorder %v4715_v62, 16  ;;  %v4134_v63 = vsel %vm2591_vm0, 1.0, %v4305_v7  ;;  %vm2720_vm2 = vcmp.eq.s32.totalorder %v4719_v32, 16 }
  0xe6   :  { %v2619_v24 = vadd.bf16 %v2612_v59, %v2584_v11  ;;  %v2671_v28 = vmul.bf16 %v2612_v59, %v2584_v11  ;;  %v2611_v8 = vpack.c.bf16 %v4134_v63, %v4132_v23  ;;  %v4139_v9 = vsel %vm2718_vm1, 1.0, %v4305_v7 }
  0xe7   :  { %v4141_v13 = vsel %vm2720_vm2, 1.0, %v4305_v7  ;;  %vm2746_vm3 = vcmp.eq.s32.totalorder %v4724_v35, 16  ;;  %vm2748_vm4 = vcmp.eq.s32.totalorder %v4727_v18, 16  ;;  %vm2717_vm5 = vcmp.eq.s32.totalorder %v4731_v21, 16 }
  0xe8   :  { %2622 = vmatprep.subr.bf16.mxu0 %v2619_v24  ;;  %2674 = vmatprep.subr.bf16.mxu1 %v2671_v28  ;;  %v2742_v14 = vpack.c.bf16 %v4141_v13, %v4139_v9  ;;  %v4147_v17 = vsel %vm2746_vm3, 1.0, %v4305_v7  ;;  %v2618_v19 = vadd.bf16 %v2611_v8, %v2583_v61  ;;  %v2670_v22 = vmul.bf16 %v2611_v8, %v2583_v61 }
  0xe9   :  { %v4149_v25 = vsel %vm2748_vm4, 1.0, %v4305_v7  ;;  %vm2719_vm6 = vcmp.eq.s32.totalorder %v4735_v27, 16  ;;  %v4138_v29 = vsel %vm2717_vm5, 1.0, %v4305_v7  ;;  %vm2745_vm7 = vcmp.eq.s32.totalorder %v4740_v33, 16 }
  0xea   :  { %v2770_v26 = vpack.c.bf16 %v4149_v25, %v4147_v17  ;;  %v4140_v30 = vsel %vm2719_vm6, 1.0, %v4305_v7  ;;  %2623 = vmatpush1.bf16.msra.mxu0 %v2618_v19  ;;  %2675 = vmatpush1.bf16.msra.mxu1 %v2670_v22  ;;  %vm2747_vm8 = vcmp.eq.s32.totalorder %v4743_v36, 16  ;;  %v4146_v34 = vsel %vm2745_vm7, 1.0, %v4305_v7 }
  0xeb   :  { %v2741_v31 = vpack.c.bf16 %v4140_v30, %v4138_v29  ;;  %vm2722_vm9 = vcmp.eq.s32.totalorder %v4747_v38, 16  ;;  %v4148_v40 = vsel %vm2747_vm8, 1.0, %v4305_v7  ;;  %vm2724_vm10 = vcmp.eq.s32.totalorder %v4751_v42, 16  ;;  %v5101_v30 = vld [vmem:[#allocation6 + $0x18] sm:$0xff] }
  0xec   :  { %v2777_v37 = vadd.bf16 %v2770_v26, %v2742_v14  ;;  %v2829_v39 = vmul.bf16 %v2770_v26, %v2742_v14  ;;  %v2769_v41 = vpack.c.bf16 %v4148_v40, %v4146_v34  ;;  %v4143_v43 = vsel %vm2722_vm9, 1.0, %v4305_v7  ;;  %v5089_v14 = vld [vmem:[#allocation4 + $0x8] sm:$0xff]  ;;  %v5105_v34 = vld [vmem:[#allocation4] sm:$0xff] }
  0xed   :  { %v4145_v44 = vsel %vm2724_vm10, 1.0, %v4305_v7  ;;  %vm2750_vm11 = vcmp.eq.s32.totalorder %v4756_v46, 16  ;;  %4136 = vmatmul.mubr.msk.bf16.vlgmr.msra.gmra.mrb[60].mxu0 %vm217_vm14, %v4306_v10  ;;  %4137 = vmatmul.mubr.msk.bf16.vlgmr.msra.gmra.mrb[60].mxu1 %vm217_vm14, %v4306_v10  ;;  %vm2752_vm12 = vcmp.eq.s32.totalorder %v4763_v48, 16  ;;  %vm2721_vm13 = vcmp.eq.s32.totalorder %v4767_v1, 16 }
  0xee   :  { %v2744_v45 = vpack.c.bf16 %v4145_v44, %v4143_v43  ;;  %v4151_v47 = vsel %vm2750_vm11, 1.0, %v4305_v7  ;;  %2780 = vmatprep.subr.bf16.mxu0 %v2777_v37  ;;  %2832 = vmatprep.subr.bf16.mxu1 %v2829_v39  ;;  %v2776_v49 = vadd.bf16 %v2769_v41, %v2741_v31  ;;  %v2828_v50 = vmul.bf16 %v2769_v41, %v2741_v31  ;;  %v5109_v41 = vld [vmem:[#allocation4 + $0x10] sm:$0xff] }
  0xef   :  { %v4153_v51 = vsel %vm2752_vm12, 1.0, %v4305_v7  ;;  %vm2723_vm15 = vcmp.eq.s32.totalorder %v4771_v52, 16  ;;  %v4142_v53 = vsel %vm2721_vm13, 1.0, %v4305_v7  ;;  %vm2749_vm0 = vcmp.eq.s32.totalorder %v4776_v5, 16  ;;  %2812 = vmatprep.mubr.bf16.mxu0 %v4304_v0  ;;  %2864 = vmatprep.mubr.bf16.mxu1 %v4304_v0 }
  0xf0   :  { %v2772_v2 = vpack.c.bf16 %v4153_v51, %v4151_v47  ;;  %v4144_v3 = vsel %vm2723_vm15, 1.0, %v4305_v7  ;;  %2781 = vmatpush1.bf16.msra.mxu0 %v2776_v49  ;;  %2833 = vmatpush1.bf16.msra.mxu1 %v2828_v50  ;;  %vm2751_vm1 = vcmp.eq.s32.totalorder %v4781_v55, 16  ;;  %v4150_v54 = vsel %vm2749_vm0, 1.0, %v4305_v7  ;;  %v5114_v47 = vld [vmem:[#allocation6] sm:$0xff]  ;;  %v5117_v50 = vld [vmem:[#allocation6 + $0x10] sm:$0xff] }
  0xf1   :  { %v2743_v4 = vpack.c.bf16 %v4144_v3, %v4142_v53  ;;  %vm2878_vm2 = vcmp.eq.s32.totalorder %v4715_v62, 17  ;;  %v4152_v57 = vsel %vm2751_vm1, 1.0, %v4305_v7  ;;  %vm2880_vm3 = vcmp.eq.s32.totalorder %v4719_v32, 17 }
  0xf2   :  { %v2779_v6 = vadd.bf16 %v2772_v2, %v2744_v45  ;;  %v2831_v56 = vmul.bf16 %v2772_v2, %v2744_v45  ;;  %v2771_v11 = vpack.c.bf16 %v4152_v57, %v4150_v54  ;;  %v4157_v12 = vsel %vm2878_vm2, 1.0, %v4305_v7  ;;  %v5121_v2 = vld [vmem:[#allocation4 + $0x28] sm:$0xff]  ;;  %v5125_v54 = vld [vmem:[#allocation4 + $0x38] sm:$0xff] }
  0xf3   :  { %v4159_v15 = vsel %vm2880_vm3, 1.0, %v4305_v7  ;;  %vm2906_vm4 = vcmp.eq.s32.totalorder %v4724_v35, 17  ;;  %vm2908_vm5 = vcmp.eq.s32.totalorder %v4727_v18, 17  ;;  %vm2877_vm6 = vcmp.eq.s32.totalorder %v4731_v21, 17 }
  0xf4   :  { %2782 = vmatprep.subr.bf16.mxu0 %v2779_v6  ;;  %2834 = vmatprep.subr.bf16.mxu1 %v2831_v56  ;;  %v2902_v16 = vpack.c.bf16 %v4159_v15, %v4157_v12  ;;  %v4165_v62 = vsel %vm2906_vm4, 1.0, %v4305_v7  ;;  %v2778_v58 = vadd.bf16 %v2771_v11, %v2743_v4  ;;  %v2830_v59 = vmul.bf16 %v2771_v11, %v2743_v4  ;;  %v5130_v11 = vld [vmem:[#allocation6 + $0x28] sm:$0xff]  ;;  %v5137_v15 = vld [vmem:[#allocation6 + $0x38] sm:$0xff] }
  0xf5   :  { %v4167_v32 = vsel %vm2908_vm5, 1.0, %v4305_v7  ;;  %vm2879_vm7 = vcmp.eq.s32.totalorder %v4735_v27, 17  ;;  %v4156_v60 = vsel %vm2877_vm6, 1.0, %v4305_v7  ;;  %vm2905_vm8 = vcmp.eq.s32.totalorder %v4740_v33, 17 }
  0xf6   :  { %v2930_v20 = vpack.c.bf16 %v4167_v32, %v4165_v62  ;;  %v4158_v35 = vsel %vm2879_vm7, 1.0, %v4305_v7  ;;  %2783 = vmatpush1.bf16.msra.mxu0 %v2778_v58  ;;  %2835 = vmatpush1.bf16.msra.mxu1 %v2830_v59  ;;  %vm2907_vm9 = vcmp.eq.s32.totalorder %v4743_v36, 17  ;;  %v4164_v21 = vsel %vm2905_vm8, 1.0, %v4305_v7  ;;  %v5141_v62 = vld [vmem:[#allocation4 + $0x20] sm:$0xff] }
  0xf7   :  { %v2901_v18 = vpack.c.bf16 %v4158_v35, %v4156_v60  ;;  %vm2882_vm10 = vcmp.eq.s32.totalorder %v4747_v38, 17  ;;  %v4166_v27 = vsel %vm2907_vm9, 1.0, %v4305_v7  ;;  %vm2884_vm11 = vcmp.eq.s32.totalorder %v4751_v42, 17 }
  0xf8   :  { %v2937_v61 = vadd.bf16 %v2930_v20, %v2902_v16  ;;  %v2989_v23 = vmul.bf16 %v2930_v20, %v2902_v16  ;;  %v2929_v24 = vpack.c.bf16 %v4166_v27, %v4164_v21  ;;  %v4161_v28 = vsel %vm2882_vm10, 1.0, %v4305_v7  ;;  %v5145_v20 = vld [vmem:[#allocation4 + $0x30] sm:$0xff]  ;;  %v5150_v21 = vld [vmem:[#allocation6 + $0x20] sm:$0xff] }
  0xf9   :  { %v4163_v33 = vsel %vm2884_vm11, 1.0, %v4305_v7  ;;  %vm2910_vm12 = vcmp.eq.s32.totalorder %v4756_v46, 17  ;;  %4154 = vmatmul.mubr.msk.bf16.vlgmr.msra.gmra.mrb[64].mxu0 %vm217_vm14, %v4306_v10  ;;  %4155 = vmatmul.mubr.msk.bf16.vlgmr.msra.gmra.mrb[64].mxu1 %vm217_vm14, %v4306_v10  ;;  %vm2912_vm13 = vcmp.eq.s32.totalorder %v4763_v48, 17  ;;  %vm2881_vm15 = vcmp.eq.s32.totalorder %v4767_v1, 17 }
  0xfa   :  { %v2904_v36 = vpack.c.bf16 %v4163_v33, %v4161_v28  ;;  %v4169_v38 = vsel %vm2910_vm12, 1.0, %v4305_v7  ;;  %2940 = vmatprep.subr.bf16.mxu0 %v2937_v61  ;;  %2992 = vmatprep.subr.bf16.mxu1 %v2989_v23  ;;  %v2936_v42 = vadd.bf16 %v2929_v24, %v2901_v18  ;;  %v2988_v63 = vmul.bf16 %v2929_v24, %v2901_v18  ;;  %v5155_v23 = vld [vmem:[#allocation6 + $0x30] sm:$0xff] }
  0xfb   :  { %v4171_v8 = vsel %vm2912_vm13, 1.0, %v4305_v7  ;;  %vm2883_vm0 = vcmp.eq.s32.totalorder %v4771_v52, 17  ;;  %v4160_v9 = vsel %vm2881_vm15, 1.0, %v4305_v7  ;;  %vm2909_vm1 = vcmp.eq.s32.totalorder %v4776_v5, 17  ;;  %2972 = vmatprep.mubr.bf16.mxu0 %v4304_v0  ;;  %3024 = vmatprep.mubr.bf16.mxu1 %v4304_v0  ;;  %v5093_v5 = vld [vmem:[#allocation4 + $0x18] sm:$0xff] }
  0xfc   :  { %v2932_v46 = vpack.c.bf16 %v4171_v8, %v4169_v38  ;;  %v4162_v13 = vsel %vm2883_vm0, 1.0, %v4305_v7  ;;  %2941 = vmatpush1.bf16.msra.mxu0 %v2936_v42  ;;  %2993 = vmatpush1.bf16.msra.mxu1 %v2988_v63  ;;  %vm2911_vm2 = vcmp.eq.s32.totalorder %v4781_v55, 17  ;;  %v4168_v1 = vsel %vm2909_vm1, 1.0, %v4305_v7  ;;  %v5098_v55 = vld [vmem:[#allocation6 + $0x8] sm:$0xff] }
  0xfd   :  { %v2903_v48 = vpack.c.bf16 %v4162_v13, %v4160_v9  ;;  %vm3038_vm3 = vcmp.eq.s32.totalorder %v5089_v14, 18  ;;  %v4170_v19 = vsel %vm2911_vm2, 1.0, %v4305_v7  ;;  %vm3040_vm4 = vcmp.eq.s32.totalorder %v5093_v5, 18 }
  0xfe   :  { %v2939_v52 = vadd.bf16 %v2932_v46, %v2904_v36  ;;  %v2991_v17 = vmul.bf16 %v2932_v46, %v2904_v36  ;;  %v2931_v22 = vpack.c.bf16 %v4170_v19, %v4168_v1  ;;  %v4175_v25 = vsel %vm3038_vm3, 1.0, %v4305_v7 }
  0xff   :  { %v4177_v26 = vsel %vm3040_vm4, 1.0, %v4305_v7  ;;  %vm3066_vm5 = vcmp.eq.s32.totalorder %v5098_v55, 18  ;;  %vm3068_vm6 = vcmp.eq.s32.totalorder %v5101_v30, 18  ;;  %vm3037_vm7 = vcmp.eq.s32.totalorder %v5105_v34, 18 }
 0x100   :  { %2942 = vmatprep.subr.bf16.mxu0 %v2939_v52  ;;  %2994 = vmatprep.subr.bf16.mxu1 %v2991_v17  ;;  %v3062_v29 = vpack.c.bf16 %v4177_v26, %v4175_v25  ;;  %v4183_v31 = vsel %vm3066_vm5, 1.0, %v4305_v7  ;;  %v2938_v37 = vadd.bf16 %v2931_v22, %v2903_v48  ;;  %v2990_v39 = vmul.bf16 %v2931_v22, %v2903_v48 }
 0x101   :  { %v4185_v40 = vsel %vm3068_vm6, 1.0, %v4305_v7  ;;  %vm3039_vm8 = vcmp.eq.s32.totalorder %v5109_v41, 18  ;;  %v4174_v44 = vsel %vm3037_vm7, 1.0, %v4305_v7  ;;  %vm3065_vm9 = vcmp.eq.s32.totalorder %v5114_v47, 18 }
 0x102   :  { %v3090_v43 = vpack.c.bf16 %v4185_v40, %v4183_v31  ;;  %v4176_v45 = vsel %vm3039_vm8, 1.0, %v4305_v7  ;;  %2943 = vmatpush1.bf16.msra.mxu0 %v2938_v37  ;;  %2995 = vmatpush1.bf16.msra.mxu1 %v2990_v39  ;;  %vm3067_vm10 = vcmp.eq.s32.totalorder %v5117_v50, 18  ;;  %v4182_v51 = vsel %vm3065_vm9, 1.0, %v4305_v7 }
 0x103   :  { %v3061_v49 = vpack.c.bf16 %v4176_v45, %v4174_v44  ;;  %vm3042_vm11 = vcmp.eq.s32.totalorder %v5121_v2, 18  ;;  %v4184_v4 = vsel %vm3067_vm10, 1.0, %v4305_v7  ;;  %vm3044_vm12 = vcmp.eq.s32.totalorder %v5125_v54, 18 }
 0x104   :  { %v3097_v53 = vadd.bf16 %v3090_v43, %v3062_v29  ;;  %v3149_v3 = vmul.bf16 %v3090_v43, %v3062_v29  ;;  %v3089_v6 = vpack.c.bf16 %v4184_v4, %v4182_v51  ;;  %v4179_v56 = vsel %vm3042_vm11, 1.0, %v4305_v7 }
 0x105   :  { %v4181_v57 = vsel %vm3044_vm12, 1.0, %v4305_v7  ;;  %vm3070_vm13 = vcmp.eq.s32.totalorder %v5130_v11, 18  ;;  %4172 = vmatmul.mubr.msk.bf16.vlgmr.msra.gmra.mrb[68].mxu0 %vm217_vm14, %v4306_v10  ;;  %4173 = vmatmul.mubr.msk.bf16.vlgmr.msra.gmra.mrb[68].mxu1 %vm217_vm14, %v4306_v10  ;;  %vm3072_vm15 = vcmp.eq.s32.totalorder %v5137_v15, 18  ;;  %vm3041_vm0 = vcmp.eq.s32.totalorder %v5141_v62, 18 }
 0x106   :  { %v3064_v12 = vpack.c.bf16 %v4181_v57, %v4179_v56  ;;  %v4187_v16 = vsel %vm3070_vm13, 1.0, %v4305_v7  ;;  %3100 = vmatprep.subr.bf16.mxu0 %v3097_v53  ;;  %3152 = vmatprep.subr.bf16.mxu1 %v3149_v3  ;;  %v3096_v58 = vadd.bf16 %v3089_v6, %v3061_v49  ;;  %v3148_v59 = vmul.bf16 %v3089_v6, %v3061_v49 }
 0x107   :  { %v4189_v32 = vsel %vm3072_vm15, 1.0, %v4305_v7  ;;  %vm3043_vm1 = vcmp.eq.s32.totalorder %v5145_v20, 18  ;;  %v4178_v35 = vsel %vm3041_vm0, 1.0, %v4305_v7  ;;  %vm3069_vm2 = vcmp.eq.s32.totalorder %v5150_v21, 18  ;;  %3132 = vmatprep.mubr.bf16.mxu0 %v4304_v0  ;;  %3184 = vmatprep.mubr.bf16.mxu1 %v4304_v0 }
 0x108   :  { %v3092_v60 = vpack.c.bf16 %v4189_v32, %v4187_v16  ;;  %v4180_v18 = vsel %vm3043_vm1, 1.0, %v4305_v7  ;;  %3101 = vmatpush1.bf16.msra.mxu0 %v3096_v58  ;;  %3153 = vmatpush1.bf16.msra.mxu1 %v3148_v59  ;;  %vm3071_vm3 = vcmp.eq.s32.totalorder %v5155_v23, 18  ;;  %v4186_v27 = vsel %vm3069_vm2, 1.0, %v4305_v7 }
 0x109   :  { %v3063_v61 = vpack.c.bf16 %v4180_v18, %v4178_v35  ;;  %vm3198_vm4 = vcmp.eq.s32.totalorder %v5089_v14, 19  ;;  %v4188_v33 = vsel %vm3071_vm3, 1.0, %v4305_v7  ;;  %vm3200_vm5 = vcmp.eq.s32.totalorder %v5093_v5, 19 }
 0x10a   :  { %v3099_v24 = vadd.bf16 %v3092_v60, %v3064_v12  ;;  %v3151_v28 = vmul.bf16 %v3092_v60, %v3064_v12  ;;  %v3091_v36 = vpack.c.bf16 %v4188_v33, %v4186_v27  ;;  %v4193_v38 = vsel %vm3198_vm4, 1.0, %v4305_v7 }
 0x10b   :  { %v4195_v42 = vsel %vm3200_vm5, 1.0, %v4305_v7  ;;  %vm3226_vm6 = vcmp.eq.s32.totalorder %v5098_v55, 19  ;;  %vm3228_vm7 = vcmp.eq.s32.totalorder %v5101_v30, 19  ;;  %vm3197_vm8 = vcmp.eq.s32.totalorder %v5105_v34, 19 }
 0x10c   :  { %3102 = vmatprep.subr.bf16.mxu0 %v3099_v24  ;;  %3154 = vmatprep.subr.bf16.mxu1 %v3151_v28  ;;  %v3222_v63 = vpack.c.bf16 %v4195_v42, %v4193_v38  ;;  %v4201_v8 = vsel %vm3226_vm6, 1.0, %v4305_v7  ;;  %v3098_v46 = vadd.bf16 %v3091_v36, %v3063_v61  ;;  %v3150_v9 = vmul.bf16 %v3091_v36, %v3063_v61 }
 0x10d   :  { %v4203_v13 = vsel %vm3228_vm7, 1.0, %v4305_v7  ;;  %vm3199_vm9 = vcmp.eq.s32.totalorder %v5109_v41, 19  ;;  %v306_v48 = vpop.f32.mrb[0].mxu1  ;;  %v255_v1 = vpop.f32.mrb[0].mxu0  ;;  %v4192_v52 = vsel %vm3197_vm8, 1.0, %v4305_v7  ;;  %vm3225_vm10 = vcmp.eq.s32.totalorder %v5114_v47, 19 }
 0x10e   :  { %v3250_v14 = vpack.c.bf16 %v4203_v13, %v4201_v8  ;;  %v4194_v17 = vsel %vm3199_vm9, 1.0, %v4305_v7  ;;  %v308_v19 = vpop.f32.mrb[1].mxu1  ;;  %v257_v5 = vpop.f32.mrb[1].mxu0  ;;  %3103 = vmatpush1.bf16.msra.mxu0 %v3098_v46  ;;  %3155 = vmatpush1.bf16.msra.mxu1 %v3150_v9  ;;  %vm3227_vm11 = vcmp.eq.s32.totalorder %v5117_v50, 19  ;;  %v4200_v25 = vsel %vm3225_vm10, 1.0, %v4305_v7 }
 0x10f   :  { %v3221_v22 = vpack.c.bf16 %v4194_v17, %v4192_v52  ;;  %vm3202_vm12 = vcmp.eq.s32.totalorder %v5121_v2, 19  ;;  %v310_v26 = vpop.f32.mrb[2].mxu1  ;;  %v259_v55 = vpop.f32.mrb[2].mxu0  ;;  %v4202_v31 = vsel %vm3227_vm11, 1.0, %v4305_v7  ;;  %vm3204_vm13 = vcmp.eq.s32.totalorder %v5125_v54, 19 }
 0x110   :  { %v3257_v29 = vadd.bf16 %v3250_v14, %v3222_v63  ;;  %v3309_v30 = vmul.bf16 %v3250_v14, %v3222_v63  ;;  %v311_v34 = vpop.f32.mrb[3].mxu1  ;;  %v260_v37 = vpop.f32.mrb[3].mxu0  ;;  %v3249_v39 = vpack.c.bf16 %v4202_v31, %v4200_v25  ;;  %v4197_v40 = vsel %vm3202_vm12, 1.0, %v4305_v7 }
 0x111   :  { %v4199_v41 = vsel %vm3204_vm13, 1.0, %v4305_v7  ;;  %vm3230_vm15 = vcmp.eq.s32.totalorder %v5130_v11, 19  ;;  %4190 = vmatmul.mubr.msk.bf16.vlgmr.msra.gmra.mrb[72].mxu0 %vm217_vm14, %v4306_v10  ;;  %4191 = vmatmul.mubr.msk.bf16.vlgmr.msra.gmra.mrb[72].mxu1 %vm217_vm14, %v4306_v10  ;;  %vm3232_vm0 = vcmp.eq.s32.totalorder %v5137_v15, 19  ;;  %vm3201_vm1 = vcmp.eq.s32.totalorder %v5141_v62, 19 }
 0x112   :  { %v3224_v43 = vpack.c.bf16 %v4199_v41, %v4197_v40  ;;  %v4205_v44 = vsel %vm3230_vm15, 1.0, %v4305_v7  ;;  %3260 = vmatprep.subr.bf16.mxu0 %v3257_v29  ;;  %3312 = vmatprep.subr.bf16.mxu1 %v3309_v30  ;;  %v3256_v45 = vadd.bf16 %v3249_v39, %v3221_v22  ;;  %v3308_v47 = vmul.bf16 %v3249_v39, %v3221_v22 }
 0x113   :  { %v4207_v49 = vsel %vm3232_vm0, 1.0, %v4305_v7  ;;  %vm3203_vm2 = vcmp.eq.s32.totalorder %v5145_v20, 19  ;;  %v4196_v51 = vsel %vm3201_vm1, 1.0, %v4305_v7  ;;  %vm3229_vm3 = vcmp.eq.s32.totalorder %v5150_v21, 19  ;;  %3292 = vmatprep.mubr.bf16.mxu0 %v4304_v0  ;;  %3344 = vmatprep.mubr.bf16.mxu1 %v4304_v0 }
 0x114   :  { %v3252_v50 = vpack.c.bf16 %v4207_v49, %v4205_v44  ;;  %v4198_v2 = vsel %vm3203_vm2, 1.0, %v4305_v7  ;;  %3261 = vmatpush1.bf16.msra.mxu0 %v3256_v45  ;;  %3313 = vmatpush1.bf16.msra.mxu1 %v3308_v47  ;;  %vm3231_vm4 = vcmp.eq.s32.totalorder %v5155_v23, 19  ;;  %v4204_v3 = vsel %vm3229_vm3, 1.0, %v4305_v7 }
 0x115   :  { %v3223_v53 = vpack.c.bf16 %v4198_v2, %v4196_v51  ;;  %v3648_v4 = vadd.f32 %v257_v5, %v255_v1  ;;  %v4206_v56 = vsel %vm3231_vm4, 1.0, %v4305_v7  ;;  %v3400_v57 = vadd.f32 %v308_v19, %v306_v48 }
 0x116   :  { %v3259_v54 = vadd.bf16 %v3252_v50, %v3224_v43  ;;  %v3311_v6 = vmul.bf16 %v3252_v50, %v3224_v43  ;;  %v3251_v11 = vpack.c.bf16 %v4206_v56, %v4204_v3  ;;  %vm3564_vm5 = vcmask 1042434  }
 0x117   :  { %3401 = vadd.xlane.f32.xlu0 %v3400_v57  ;;  %vm3566_vm6 = vcmask 1043459   ;;  %vm3568_vm7 = vcmask 1044484   ;;  %vm3570_vm8 = vcmask 1045509   ;;  %vm3572_vm9 = vcmask 1046534  }
 0x118   :  { %3262 = vmatprep.subr.bf16.mxu0 %v3259_v54  ;;  %3314 = vmatprep.subr.bf16.mxu1 %v3311_v6  ;;  %v3258_v12 = vadd.bf16 %v3251_v11, %v3223_v53  ;;  %v3310_v15 = vmul.bf16 %v3251_v11, %v3223_v53  ;;  %v466_v0 = vpop.f32.mrb[4].mxu1  ;;  %v414_v16 = vpop.f32.mrb[4].mxu0  ;;  %vm3574_vm10 = vcmask 1047559   ;;  %vm3589_vm11 = vcmask 64512  }
 0x119   :  { %v416_v62 = vpop.f32.mrb[5].mxu0  ;;  %v468_v58 = vpop.f32.mrb[5].mxu1  ;;  %vm3596_vm12 = vcmask 60416   ;;  %vm3603_vm13 = vcmask 7168   ;;  %vm3606_vm15 = vcmask 3072  }
 0x11a   :  { %3263 = vmatpush1.bf16.msra.mxu0 %v3258_v12  ;;  %3315 = vmatpush1.bf16.msra.mxu1 %v3310_v15  ;;  %v3403_v59 = vadd.f32 %v468_v58, %v466_v0  ;;  %v470_v32 = vpop.f32.mrb[6].mxu1  ;;  %v3651_v20 = vadd.f32 %v416_v62, %v414_v16  ;;  %v418_v60 = vpop.f32.mrb[6].mxu0 }
 0x11b   :  { %v471_v35 = vpop.f32.mrb[7].mxu1  ;;  %v419_v18 = vpop.f32.mrb[7].mxu0  ;;  %3649 = vadd.xlane.f32.xlu0 %v3648_v4 }
 0x11c   :  { %3652 = vadd.xlane.f32.xlu1 %v3651_v20 }
 0x11d   :  { %4208 = vmatmul.mubr.msk.bf16.vlgmr.msra.gmra.mrb[76].mxu0 %vm217_vm14, %v4306_v10  ;;  %4209 = vmatmul.mubr.msk.bf16.vlgmr.msra.gmra.mrb[76].mxu1 %vm217_vm14, %v4306_v10  ;;  %vm3562_vm14 = vcmask 1041409  }
 0x11f   :  { %3404 = vadd.xlane.f32.xlu0 %v3403_v59 }
 0x124   :  { %v626_v7 = vpop.f32.mrb[8].mxu1  ;;  %v574_v21 = vpop.f32.mrb[8].mxu0 }
 0x125   :  { %v628_v61 = vpop.f32.mrb[9].mxu1  ;;  %v576_v23 = vpop.f32.mrb[9].mxu0 }
 0x126   :  { %v3406_v27 = vadd.f32 %v628_v61, %v626_v7  ;;  %v630_v24 = vpop.f32.mrb[10].mxu1  ;;  %v3654_v28 = vadd.f32 %v576_v23, %v574_v21  ;;  %v578_v33 = vpop.f32.mrb[10].mxu0 }
 0x127   :  { %v631_v36 = vpop.f32.mrb[11].mxu1  ;;  %v579_v38 = vpop.f32.mrb[11].mxu0 }
 0x128   :  { %3407 = vadd.xlane.f32.xlu0 %v3406_v27 }
 0x12c   :  { %3655 = vadd.xlane.f32.xlu0 %v3654_v28 }
 0x130   :  { %v786_v42 = vpop.f32.mrb[12].mxu1  ;;  %v734_v63 = vpop.f32.mrb[12].mxu0 }
 0x131   :  { %v788_v8 = vpop.f32.mrb[13].mxu1  ;;  %v736_v46 = vpop.f32.mrb[13].mxu0 }
 0x132   :  { %v3409_v9 = vadd.f32 %v788_v8, %v786_v42  ;;  %v790_v13 = vpop.f32.mrb[14].mxu1  ;;  %v3657_v10 = vadd.f32 %v736_v46, %v734_v63  ;;  %v738_v48 = vpop.f32.mrb[14].mxu0 }
 0x133   :  { %v791_v1 = vpop.f32.mrb[15].mxu1  ;;  %v739_v14 = vpop.f32.mrb[15].mxu0 }
 0x134   :  { %3410 = vadd.xlane.f32.xlu0 %v3409_v9 }
 0x138   :  { %3658 = vadd.xlane.f32.xlu0 %v3657_v10 }
 0x13c   :  { %v946_v52 = vpop.f32.mrb[16].mxu1  ;;  %v894_v17 = vpop.f32.mrb[16].mxu0 }
 0x13d   :  { %v948_v19 = vpop.f32.mrb[17].mxu1  ;;  %v896_v5 = vpop.f32.mrb[17].mxu0 }
 0x13e   :  { %v3412_v22 = vadd.f32 %v948_v19, %v946_v52  ;;  %v950_v25 = vpop.f32.mrb[18].mxu1  ;;  %v3660_v26 = vadd.f32 %v896_v5, %v894_v17  ;;  %v898_v55 = vpop.f32.mrb[18].mxu0 }
 0x13f   :  { %v951_v29 = vpop.f32.mrb[19].mxu1  ;;  %v899_v30 = vpop.f32.mrb[19].mxu0 }
 0x140   :  { %3413 = vadd.xlane.f32.xlu0 %v3412_v22 }
 0x144   :  { %3661 = vadd.xlane.f32.xlu0 %v3660_v26 }
 0x148   :  { %v1106_v31 = vpop.f32.mrb[20].mxu1  ;;  %v1054_v34 = vpop.f32.mrb[20].mxu0 }
 0x149   :  { %v1108_v37 = vpop.f32.mrb[21].mxu1  ;;  %v1056_v39 = vpop.f32.mrb[21].mxu0 }
 0x14a   :  { %v3415_v40 = vadd.f32 %v1108_v37, %v1106_v31  ;;  %v1110_v41 = vpop.f32.mrb[22].mxu1  ;;  %v3663_v43 = vadd.f32 %v1056_v39, %v1054_v34  ;;  %v1058_v44 = vpop.f32.mrb[22].mxu0 }
 0x14b   :  { %v1111_v45 = vpop.f32.mrb[23].mxu1  ;;  %v1059_v47 = vpop.f32.mrb[23].mxu0 }
 0x14c   :  { %3416 = vadd.xlane.f32.xlu0 %v3415_v40 }
 0x150   :  { %3664 = vadd.xlane.f32.xlu0 %v3663_v43 }
 0x154   :  { %v1266_v49 = vpop.f32.mrb[24].mxu1  ;;  %v1214_v50 = vpop.f32.mrb[24].mxu0 }
 0x155   :  { %v1216_v51 = vpop.f32.mrb[25].mxu0  ;;  %v1268_v2 = vpop.f32.mrb[25].mxu1 }
 0x156   :  { %v3666_v53 = vadd.f32 %v1216_v51, %v1214_v50  ;;  %v3418_v3 = vadd.f32 %v1268_v2, %v1266_v49  ;;  %v1270_v4 = vpop.f32.mrb[26].mxu1  ;;  %v1218_v54 = vpop.f32.mrb[26].mxu0 }
 0x157   :  { %v1271_v6 = vpop.f32.mrb[27].mxu1  ;;  %v1219_v56 = vpop.f32.mrb[27].mxu0 }
 0x158   :  { %3419 = vadd.xlane.f32.xlu0 %v3418_v3  ;;  %3667 = vadd.xlane.f32.xlu1 %v3666_v53 }
 0x160   :  { %v1374_v57 = vpop.f32.mrb[28].mxu0  ;;  %v1426_v11 = vpop.f32.mrb[28].mxu1 }
 0x161   :  { %v1376_v12 = vpop.f32.mrb[29].mxu0  ;;  %v1428_v15 = vpop.f32.mrb[29].mxu1 }
 0x162   :  { %v3669_v0 = vadd.f32 %v1376_v12, %v1374_v57  ;;  %v3421_v16 = vadd.f32 %v1428_v15, %v1426_v11  ;;  %v1430_v62 = vpop.f32.mrb[30].mxu1  ;;  %v1378_v58 = vpop.f32.mrb[30].mxu0 }
 0x163   :  { %v1431_v59 = vpop.f32.mrb[31].mxu1  ;;  %v1379_v32 = vpop.f32.mrb[31].mxu0 }
 0x164   :  { %3422 = vadd.xlane.f32.xlu0 %v3421_v16  ;;  %3670 = vadd.xlane.f32.xlu1 %v3669_v0 }
 0x16c   :  { %v1586_v20 = vpop.f32.mrb[32].mxu1  ;;  %v1534_v60 = vpop.f32.mrb[32].mxu0 }
 0x16d   :  { %v1588_v35 = vpop.f32.mrb[33].mxu1  ;;  %v1536_v18 = vpop.f32.mrb[33].mxu0 }
 0x16e   :  { %v3424_v7 = vadd.f32 %v1588_v35, %v1586_v20  ;;  %v1590_v21 = vpop.f32.mrb[34].mxu1  ;;  %v3672_v61 = vadd.f32 %v1536_v18, %v1534_v60  ;;  %v1538_v23 = vpop.f32.mrb[34].mxu0 }
 0x16f   :  { %v1591_v27 = vpop.f32.mrb[35].mxu1  ;;  %v1539_v24 = vpop.f32.mrb[35].mxu0 }
 0x170   :  { %3425 = vadd.xlane.f32.xlu1 %v3424_v7  ;;  %3673 = vadd.xlane.f32.xlu0 %v3672_v61 }
 0x178   :  { %v1746_v28 = vpop.f32.mrb[36].mxu1  ;;  %v1694_v33 = vpop.f32.mrb[36].mxu0 }
 0x179   :  { %v1748_v36 = vpop.f32.mrb[37].mxu1  ;;  %v1696_v38 = vpop.f32.mrb[37].mxu0 }
 0x17a   :  { %v3427_v42 = vadd.f32 %v1748_v36, %v1746_v28  ;;  %v1750_v63 = vpop.f32.mrb[38].mxu1  ;;  %v3675_v8 = vadd.f32 %v1696_v38, %v1694_v33  ;;  %v1698_v46 = vpop.f32.mrb[38].mxu0 }
 0x17b   :  { %v1751_v9 = vpop.f32.mrb[39].mxu1  ;;  %v1699_v13 = vpop.f32.mrb[39].mxu0 }
 0x17c   :  { %3428 = vadd.xlane.f32.xlu1 %v3427_v42 }
 0x180   :  { %3676 = vadd.xlane.f32.xlu1 %v3675_v8 }
 0x184   :  { %v1906_v10 = vpop.f32.mrb[40].mxu1  ;;  %v1854_v48 = vpop.f32.mrb[40].mxu0 }
 0x185   :  { %v1908_v1 = vpop.f32.mrb[41].mxu1  ;;  %v1856_v14 = vpop.f32.mrb[41].mxu0 }
 0x186   :  { %v3430_v52 = vadd.f32 %v1908_v1, %v1906_v10  ;;  %v1910_v17 = vpop.f32.mrb[42].mxu1  ;;  %v3678_v19 = vadd.f32 %v1856_v14, %v1854_v48  ;;  %v1858_v5 = vpop.f32.mrb[42].mxu0 }
 0x187   :  { %v1911_v22 = vpop.f32.mrb[43].mxu1  ;;  %v1859_v25 = vpop.f32.mrb[43].mxu0 }
 0x188   :  { %3431 = vadd.xlane.f32.xlu1 %v3430_v52 }
 0x18c   :  { %3679 = vadd.xlane.f32.xlu1 %v3678_v19 }
 0x190   :  { %v2066_v26 = vpop.f32.mrb[44].mxu1  ;;  %v2014_v55 = vpop.f32.mrb[44].mxu0 }
 0x191   :  { %v2068_v29 = vpop.f32.mrb[45].mxu1  ;;  %v2016_v30 = vpop.f32.mrb[45].mxu0 }
 0x192   :  { %v3433_v31 = vadd.f32 %v2068_v29, %v2066_v26  ;;  %v2070_v34 = vpop.f32.mrb[46].mxu1  ;;  %v3681_v37 = vadd.f32 %v2016_v30, %v2014_v55  ;;  %v2018_v39 = vpop.f32.mrb[46].mxu0 }
 0x193   :  { %v2071_v40 = vpop.f32.mrb[47].mxu1  ;;  %v2019_v41 = vpop.f32.mrb[47].mxu0 }
 0x194   :  { %3434 = vadd.xlane.f32.xlu1 %v3433_v31 }
 0x198   :  { %3682 = vadd.xlane.f32.xlu1 %v3681_v37 }
 0x19c   :  { %v2226_v43 = vpop.f32.mrb[48].mxu1  ;;  %v2174_v44 = vpop.f32.mrb[48].mxu0 }
 0x19d   :  { %v2228_v45 = vpop.f32.mrb[49].mxu1  ;;  %v2176_v47 = vpop.f32.mrb[49].mxu0 }
 0x19e   :  { %v3436_v49 = vadd.f32 %v2228_v45, %v2226_v43  ;;  %v2230_v50 = vpop.f32.mrb[50].mxu1  ;;  %v3684_v51 = vadd.f32 %v2176_v47, %v2174_v44  ;;  %v2178_v2 = vpop.f32.mrb[50].mxu0 }
 0x19f   :  { %v2231_v53 = vpop.f32.mrb[51].mxu1  ;;  %v2179_v3 = vpop.f32.mrb[51].mxu0  ;;  %v3480_v50 = vlaneseq }
 0x1a0   :  { %3437 = vadd.xlane.f32.xlu1 %v3436_v49 }
 0x1a4   :  { %3685 = vadd.xlane.f32.xlu1 %v3684_v51  ;;  %v5202_v62 = vpop.xlane.xlu0 %3401 }
 0x1a8   :  { %v2386_v4 = vpop.f32.mrb[52].mxu1  ;;  %v2334_v54 = vpop.f32.mrb[52].mxu0 }
 0x1a9   :  { %v2388_v6 = vpop.f32.mrb[53].mxu1  ;;  %v2336_v56 = vpop.f32.mrb[53].mxu0 }
 0x1aa   :  { %v3439_v57 = vadd.f32 %v2388_v6, %v2386_v4  ;;  %v2390_v11 = vpop.f32.mrb[54].mxu1  ;;  %v3687_v12 = vadd.f32 %v2336_v56, %v2334_v54  ;;  %v2338_v15 = vpop.f32.mrb[54].mxu0  ;;  %v3481_v54 = vand.u32 127, %v3480_v50  ;;  %v3483_v6 = vshrl.u32 %v3480_v50, 7 }
 0x1ab   :  { %v2391_v0 = vpop.f32.mrb[55].mxu1  ;;  %v2339_v16 = vpop.f32.mrb[55].mxu0 }
 0x1ac   :  { %3440 = vadd.xlane.f32.xlu1 %v3439_v57  ;;  %v5204_v58 = vpop.xlane.xlu0 %3649  ;;  %v3653_v16 = vpop.xlane.xlu1 %3652 }
 0x1b0   :  { %3688 = vadd.xlane.f32.xlu1 %v3687_v12  ;;  %v5206_v27 = vpop.xlane.xlu0 %3404 }
 0x1b4   :  { %v2546_v59 = vpop.f32.mrb[56].mxu1  ;;  %v2494_v32 = vpop.f32.mrb[56].mxu0 }
 0x1b5   :  { %v2496_v20 = vpop.f32.mrb[57].mxu0  ;;  %v2548_v60 = vpop.f32.mrb[57].mxu1 }
 0x1b6   :  { %v3690_v35 = vadd.f32 %v2496_v20, %v2494_v32  ;;  %v3442_v18 = vadd.f32 %v2548_v60, %v2546_v59  ;;  %v2550_v7 = vpop.f32.mrb[58].mxu1  ;;  %v2498_v21 = vpop.f32.mrb[58].mxu0  ;;  %v5224_v32 = vsub.s32 %v3481_v54, %v3483_v6 }
 0x1b7   :  { %v2551_v61 = vpop.f32.mrb[59].mxu1  ;;  %v2499_v23 = vpop.f32.mrb[59].mxu0 }
 0x1b8   :  { %3443 = vadd.xlane.f32.xlu1 %v3442_v18  ;;  %3691 = vadd.xlane.f32.xlu0 %v3690_v35  ;;  %v5208_v24 = vpop.xlane.xlu0 %3407  ;;  %v3489_v20 = vrot.slane %v5206_v27, %v5224_v32  ;;  %v3735_v60 = vrot.slane %v3653_v16, %v5224_v32  ;;  %v3485_v7 = vrot.slane %v5202_v62, %v5224_v32 }
 0x1b9   :  { %v3493_v35 = vrot.slane %v5208_v24, %v5224_v32  ;;  %v3731_v21 = vrot.slane %v5204_v58, %v5224_v32 }
 0x1bb   :  { %v3808_v62 = vsel %vm3562_vm14, %v3735_v60, %v3731_v21 }
 0x1bc   :  { %v5212_v10 = vpop.xlane.xlu0 %3655 }
 0x1bd   :  { %v3739_v18 = vrot.slane %v5212_v10, %v5224_v32 }
 0x1c0   :  { %v2706_v28 = vpop.f32.mrb[60].mxu1  ;;  %v2654_v33 = vpop.f32.mrb[60].mxu0 }
 0x1c1   :  { %v2708_v36 = vpop.f32.mrb[61].mxu1  ;;  %v2656_v38 = vpop.f32.mrb[61].mxu0 }
 0x1c2   :  { %v3445_v42 = vadd.f32 %v2708_v36, %v2706_v28  ;;  %v2710_v63 = vpop.f32.mrb[62].mxu1  ;;  %v5210_v8 = vadd.f32 %v2656_v38, %v2654_v33  ;;  %v2658_v46 = vpop.f32.mrb[62].mxu0  ;;  %v3563_v36 = vsel %vm3562_vm14, %v3489_v20, %v3485_v7 }
 0x1c3   :  { %v2711_v9 = vpop.f32.mrb[63].mxu1  ;;  %v2659_v13 = vpop.f32.mrb[63].mxu0  ;;  %v3565_v46 = vsel %vm3564_vm5, %v3493_v35, %v3563_v36 }
 0x1c4   :  { %3446 = vadd.xlane.f32.xlu1 %v3445_v42  ;;  %v5214_v48 = vpop.xlane.xlu0 %3410  ;;  %v3809_v9 = vsel %vm3564_vm5, %v3739_v18, %v3808_v62 }
 0x1c5   :  { %v3497_v61 = vrot.slane %v5214_v48, %v5224_v32 }
 0x1c8   :  { %v5216_v29 = vpop.xlane.xlu0 %3658 }
 0x1c9   :  { %v3743_v23 = vrot.slane %v5216_v29, %v5224_v32 }
 0x1cc   :  { %v2866_v1 = vpop.f32.mrb[64].mxu1  ;;  %v2814_v14 = vpop.f32.mrb[64].mxu0 }
 0x1cd   :  { %v2868_v52 = vpop.f32.mrb[65].mxu1  ;;  %v2816_v17 = vpop.f32.mrb[65].mxu0 }
 0x1ce   :  { %v3448_v19 = vadd.f32 %v2868_v52, %v2866_v1  ;;  %v2870_v5 = vpop.f32.mrb[66].mxu1  ;;  %v3696_v22 = vadd.f32 %v2816_v17, %v2814_v14  ;;  %v2818_v25 = vpop.f32.mrb[66].mxu0 }
 0x1cf   :  { %v2871_v26 = vpop.f32.mrb[67].mxu1  ;;  %v2819_v55 = vpop.f32.mrb[67].mxu0  ;;  %v3567_v25 = vsel %vm3566_vm6, %v3497_v61, %v3565_v46 }
 0x1d0   :  { %3449 = vadd.xlane.f32.xlu0 %v3448_v19  ;;  %v5218_v30 = vpop.xlane.xlu0 %3413  ;;  %v3810_v26 = vsel %vm3566_vm6, %v3743_v23, %v3809_v9 }
 0x1d1   :  { %v3501_v58 = vrot.slane %v5218_v30, %v5224_v32 }
 0x1d3   :  { %v3569_v55 = vsel %vm3568_vm7, %v3501_v58, %v3567_v25 }
 0x1d4   :  { %3697 = vadd.xlane.f32.xlu0 %v3696_v22  ;;  %v5220_v49 = vpop.xlane.xlu0 %3661 }
 0x1d5   :  { %v3747_v38 = vrot.slane %v5220_v49, %v5224_v32 }
 0x1d7   :  { %v3811_v29 = vsel %vm3568_vm7, %v3747_v38, %v3810_v26 }
 0x1d8   :  { %v3026_v31 = vpop.f32.mrb[68].mxu1  ;;  %v2974_v34 = vpop.f32.mrb[68].mxu0 }
 0x1d9   :  { %v3028_v37 = vpop.f32.mrb[69].mxu1  ;;  %v2976_v39 = vpop.f32.mrb[69].mxu0 }
 0x1da   :  { %v3451_v40 = vadd.f32 %v3028_v37, %v3026_v31  ;;  %v3030_v41 = vpop.f32.mrb[70].mxu1  ;;  %v3699_v43 = vadd.f32 %v2976_v39, %v2974_v34  ;;  %v2978_v44 = vpop.f32.mrb[70].mxu0 }
 0x1db   :  { %v3031_v45 = vpop.f32.mrb[71].mxu1  ;;  %v2979_v47 = vpop.f32.mrb[71].mxu0 }
 0x1dc   :  { %3452 = vadd.xlane.f32.xlu1 %v3451_v40  ;;  %v5222_v51 = vpop.xlane.xlu0 %3416 }
 0x1dd   :  { %v3505_v13 = vrot.slane %v5222_v51, %v5224_v32 }
 0x1df   :  { %v3571_v34 = vsel %vm3570_vm8, %v3505_v13, %v3569_v55 }
 0x1e0   :  { %3700 = vadd.xlane.f32.xlu1 %v3699_v43  ;;  %v3665_v59 = vpop.xlane.xlu0 %3664 }
 0x1e1   :  { %v3751_v10 = vrot.slane %v3665_v59, %v5224_v32 }
 0x1e3   :  { %v3812_v37 = vsel %vm3570_vm8, %v3751_v10, %v3811_v29 }
 0x1e4   :  { %v3186_v2 = vpop.f32.mrb[72].mxu1  ;;  %v3134_v53 = vpop.f32.mrb[72].mxu0 }
 0x1e5   :  { %v3136_v3 = vpop.f32.mrb[73].mxu0  ;;  %v3188_v4 = vpop.f32.mrb[73].mxu1 }
 0x1e6   :  { %v3702_v56 = vadd.f32 %v3136_v3, %v3134_v53  ;;  %v3454_v57 = vadd.f32 %v3188_v4, %v3186_v2  ;;  %v3190_v11 = vpop.f32.mrb[74].mxu1  ;;  %v3138_v12 = vpop.f32.mrb[74].mxu0 }
 0x1e7   :  { %v3191_v15 = vpop.f32.mrb[75].mxu1  ;;  %v3139_v0 = vpop.f32.mrb[75].mxu0 }
 0x1e8   :  { %3455 = vadd.xlane.f32.xlu0 %v3454_v57  ;;  %3703 = vadd.xlane.f32.xlu1 %v3702_v56  ;;  %v3420_v27 = vpop.xlane.xlu0 %3419  ;;  %v3668_v24 = vpop.xlane.xlu1 %3667 }
 0x1e9   :  { %v3509_v17 = vrot.slane %v3420_v27, %v5224_v32  ;;  %v3755_v19 = vrot.slane %v3668_v24, %v5224_v32 }
 0x1eb   :  { %v3573_v41 = vsel %vm3572_vm9, %v3509_v17, %v3571_v34  ;;  %v3813_v43 = vsel %vm3572_vm9, %v3755_v19, %v3812_v37 }
 0x1f0   :  { %v3294_v28 = vpop.f32.mrb[76].mxu0  ;;  %v3346_v33 = vpop.f32.mrb[76].mxu1 }
 0x1f1   :  { %v3348_v42 = vpop.f32.mrb[77].mxu1  ;;  %v3296_v63 = vpop.f32.mrb[77].mxu0 }
 0x1f2   :  { %v3457_v48 = vadd.f32 %v3348_v42, %v3346_v33  ;;  %v3705_v1 = vadd.f32 %v3296_v63, %v3294_v28  ;;  %v3350_v14 = vpop.f32.mrb[78].mxu1  ;;  %v3298_v52 = vpop.f32.mrb[78].mxu0 }
 0x1f3   :  { %v3351_v5 = vpop.f32.mrb[79].mxu1  ;;  %v3299_v22 = vpop.f32.mrb[79].mxu0 }
 0x1f4   :  { %3458 = vadd.xlane.f32.xlu0 %v3457_v48  ;;  %3706 = vadd.xlane.f32.xlu1 %v3705_v1  ;;  %v3423_v30 = vpop.xlane.xlu0 %3422  ;;  %v3671_v31 = vpop.xlane.xlu1 %3670 }
 0x1f5   :  { %v3513_v39 = vrot.slane %v3423_v30, %v5224_v32  ;;  %v3759_v40 = vrot.slane %v3671_v31, %v5224_v32 }
 0x1f7   :  { %v3575_v44 = vsel %vm3574_vm10, %v3513_v39, %v3573_v41  ;;  %v3814_v45 = vsel %vm3574_vm10, %v3759_v40, %v3813_v43 }
 0x1f8   :  { %3694 = vadd.xlane.f32.xlu0 %v5210_v8  ;;  %v3828_v47 = vsel %vm3589_vm11, %v3814_v45, 0.0  ;;  %v3590_v49 = vsel %vm3589_vm11, %v3575_v44, 0.0 }
 0x1f9   :  { %3829 = vadd.xlane.f32.xlu1 %v3828_v47 }
 0x1fc   :  { %3591 = vadd.xlane.f32.xlu0 %v3590_v49 }
 0x1fd   :  { %v3426_v50 = vpop.xlane.xlu1 %3425  ;;  %v3674_v3 = vpop.xlane.xlu0 %3673 }
 0x1fe   :  { %v3763_v54 = vrot.slane %v3674_v3, %v5224_v32  ;;  %v3517_v61 = vrot.slane %v3426_v50, %v5224_v32 }
 0x209   :  { %v3429_v51 = vpop.xlane.xlu1 %3428 }
 0x20a   :  { %v3521_v7 = vrot.slane %v3429_v51, %v5224_v32 }
 0x20c   :  { %v3576_v28 = vsel %vm3562_vm14, %v3521_v7, %v3517_v61 }
 0x20d   :  { %v3677_v2 = vpop.xlane.xlu1 %3676 }
 0x20e   :  { %v3767_v4 = vrot.slane %v3677_v2, %v5224_v32 }
 0x210   :  { %v3815_v8 = vsel %vm3562_vm14, %v3767_v4, %v3763_v54 }
 0x215   :  { %v3432_v53 = vpop.xlane.xlu1 %3431 }
 0x216   :  { %v3525_v21 = vrot.slane %v3432_v53, %v5224_v32 }
 0x218   :  { %v3577_v36 = vsel %vm3564_vm5, %v3525_v21, %v3576_v28 }
 0x219   :  { %v3680_v6 = vpop.xlane.xlu1 %3679 }
 0x21a   :  { %v3771_v56 = vrot.slane %v3680_v6, %v5224_v32 }
 0x21c   :  { %v3816_v57 = vsel %vm3564_vm5, %v3771_v56, %v3815_v8 }
 0x221   :  { %v3435_v11 = vpop.xlane.xlu1 %3434 }
 0x222   :  { %v3529_v23 = vrot.slane %v3435_v11, %v5224_v32 }
 0x224   :  { %v3578_v58 = vsel %vm3566_vm6, %v3529_v23, %v3577_v36 }
 0x225   :  { %v3683_v12 = vpop.xlane.xlu1 %3682 }
 0x226   :  { %v3775_v15 = vrot.slane %v3683_v12, %v5224_v32 }
 0x228   :  { %v3817_v0 = vsel %vm3566_vm6, %v3775_v15, %v3816_v57 }
 0x22d   :  { %v3438_v16 = vpop.xlane.xlu1 %3437 }
 0x22e   :  { %v3533_v24 = vrot.slane %v3438_v16, %v5224_v32 }
 0x230   :  { %v3579_v38 = vsel %vm3568_vm7, %v3533_v24, %v3578_v58 }
 0x231   :  { %v3686_v59 = vpop.xlane.xlu1 %3685 }
 0x232   :  { %v3779_v20 = vrot.slane %v3686_v59, %v5224_v32 }
 0x234   :  { %v3818_v60 = vsel %vm3568_vm7, %v3779_v20, %v3817_v0 }
 0x239   :  { %v3441_v35 = vpop.xlane.xlu1 %3440 }
 0x23a   :  { %v3537_v33 = vrot.slane %v3441_v35, %v5224_v32 }
 0x23c   :  { %v3580_v63 = vsel %vm3570_vm8, %v3537_v33, %v3579_v38 }
 0x23d   :  { %v3689_v18 = vpop.xlane.xlu1 %3688 }
 0x23e   :  { %v3783_v31 = vrot.slane %v3689_v18, %v5224_v32 }
 0x240   :  { %v3819_v3 = vsel %vm3570_vm8, %v3783_v31, %v3818_v60 }
 0x245   :  { %v3444_v27 = vpop.xlane.xlu1 %3443  ;;  %v3692_v48 = vpop.xlane.xlu0 %3691 }
 0x246   :  { %v3541_v62 = vrot.slane %v3444_v27, %v5224_v32  ;;  %v3787_v44 = vrot.slane %v3692_v48, %v5224_v32 }
 0x248   :  { %v3581_v9 = vsel %vm3572_vm9, %v3541_v62, %v3580_v63  ;;  %v3820_v6 = vsel %vm3572_vm9, %v3787_v44, %v3819_v3 }
 0x251   :  { %v3447_v42 = vpop.xlane.xlu1 %3446 }
 0x252   :  { %v3545_v46 = vrot.slane %v3447_v42, %v5224_v32 }
 0x254   :  { %v3582_v13 = vsel %vm3574_vm10, %v3545_v46, %v3581_v9 }
 0x255   :  { %v3593_v10 = vsel %vm3589_vm11, %v3582_v13, 0.0 }
 0x256   :  { %3594 = vadd.xlane.f32.xlu1 %v3593_v10 }
 0x25d   :  { %v3450_v14 = vpop.xlane.xlu0 %3449 }
 0x25e   :  { %v3549_v29 = vrot.slane %v3450_v14, %v5224_v32 }
 0x261   :  { %v3698_v17 = vpop.xlane.xlu0 %3697 }
 0x262   :  { %v3795_v30 = vrot.slane %v3698_v17, %v5224_v32 }
 0x269   :  { %v3453_v1 = vpop.xlane.xlu1 %3452 }
 0x26a   :  { %v3553_v22 = vrot.slane %v3453_v1, %v5224_v32 }
 0x26c   :  { %v3583_v39 = vsel %vm3562_vm14, %v3553_v22, %v3549_v29 }
 0x26d   :  { %v3701_v52 = vpop.xlane.xlu1 %3700 }
 0x26e   :  { %v3799_v25 = vrot.slane %v3701_v52, %v5224_v32 }
 0x270   :  { %v3822_v40 = vsel %vm3562_vm14, %v3799_v25, %v3795_v30 }
 0x275   :  { %v3456_v19 = vpop.xlane.xlu0 %3455  ;;  %v3704_v5 = vpop.xlane.xlu1 %3703 }
 0x276   :  { %v3557_v26 = vrot.slane %v3456_v19, %v5224_v32  ;;  %v3803_v55 = vrot.slane %v3704_v5, %v5224_v32 }
 0x278   :  { %v3584_v45 = vsel %vm3564_vm5, %v3557_v26, %v3583_v39  ;;  %v3823_v47 = vsel %vm3564_vm5, %v3803_v55, %v3822_v40 }
 0x281   :  { %v3459_v34 = vpop.xlane.xlu0 %3458  ;;  %v3707_v37 = vpop.xlane.xlu1 %3706 }
 0x282   :  { %v3561_v41 = vrot.slane %v3459_v34, %v5224_v32  ;;  %v3807_v43 = vrot.slane %v3707_v37, %v5224_v32 }
 0x284   :  { %v3585_v49 = vsel %vm3566_vm6, %v3561_v41, %v3584_v45  ;;  %v3824_v50 = vsel %vm3566_vm6, %v3807_v43, %v3823_v47 }
 0x285   :  { %v3695_v51 = vpop.xlane.xlu0 %3694  ;;  %v3597_v2 = vsel %vm3596_vm12, %v3585_v49, 0.0  ;;  %v3834_v53 = vsel %vm3596_vm12, %v3824_v50, 0.0 }
 0x286   :  { %v3791_v4 = vrot.slane %v3695_v51, %v5224_v32  ;;  %3598 = vadd.xlane.f32.xlu0 %v3597_v2  ;;  %3835 = vadd.xlane.f32.xlu1 %v3834_v53  ;;  %v3830_v54 = vpop.xlane.xlu1 %3829 }
 0x287   :  { %v3837_v56 = vmul.f32 0.125, %v3830_v54 }
 0x288   :  { %v3821_v8 = vsel %vm3574_vm10, %v3791_v4, %v3820_v6 }
 0x289   :  { %v3831_v57 = vsel %vm3589_vm11, %v3821_v8, 0.0  ;;  %v3592_v11 = vpop.xlane.xlu0 %3591  ;;  %4210 = vst.msk [vmem:[%s5339_s2 + $0x18] sm:$0xff] %vm3603_vm13, %v3837_v56 }
 0x28a   :  { %3832 = vadd.xlane.f32.xlu0 %v3831_v57  ;;  %v3600_v12 = vmul.f32 0.125, %v3592_v11 }
 0x28c   :  { %3604 = vst.msk [vmem:[%s5339_s2] sm:$0xff] %vm3603_vm13, %v3600_v12 }
 0x2e3   :  { %v3595_v32 = vpop.xlane.xlu1 %3594 }
 0x2e4   :  { %v3601_v15 = vmul.f32 0.125, %v3595_v32 }
 0x2e6   :  { %3605 = vst.msk [vmem:[%s5339_s2 + $0x8] sm:$0xff] %vm3603_vm13, %v3601_v15 }
 0x313   :  { %v3599_v0 = vpop.xlane.xlu0 %3598  ;;  %v3836_v16 = vpop.xlane.xlu1 %3835 }
 0x314   :  { %v3602_v59 = vmul.f32 0.125, %v3599_v0  ;;  %v3839_v20 = vmul.f32 0.125, %v3836_v16 }
 0x316   :  { %3607 = vst.msk [vmem:[%s5339_s2 + $0x10] sm:$0xf] %vm3606_vm15, %v3602_v59  ;;  %4212 = vst.msk [vmem:[%s5339_s2 + $0x28] sm:$0xf] %vm3606_vm15, %v3839_v20 }
 0x317   :  { %v3833_v60 = vpop.xlane.xlu0 %3832 }
 0x318   :  { %v3838_v35 = vmul.f32 0.125, %v3833_v60 }
 0x31a   :  { %4211 = vst.msk [vmem:[%s5339_s2 + $0x20] sm:$0xff] %vm3603_vm13, %v3838_v35 }
 0x31b   :  { %3848 = vsyncpa [#allocation5], 1 }
 0x31c   :  { %3849 = vsyncpa [#allocation7], 1 }

</bundles_post_ra>
